<compile_context>
chip_gen: v7x
topology: tpu7x:2x2x1
jax: 0.10.0
libtpu: 0.0.40
codegen_flags: <defaults>
</compile_context>

<pallas_src>
import functools

import jax
import jax.numpy as jnp
from jax import lax
from jax.experimental import pallas as pl
from jax.experimental.pallas import tpu as pltpu

LEAKY_SLOPE = 0.01   # nn.LeakyReLU default
LN_EPS = 1e-5        # nn.LayerNorm default


def _leaky_relu(h):
    return jnp.where(h >= 0, h, LEAKY_SLOPE * h)


def _layernorm_features_first(h, gamma, beta):
    """Two-pass LayerNorm over axis 0 (features on sublanes, batch on lanes).

    Two-pass matches PyTorch's LayerNorm numerics (no E[x^2]-mean^2 cancellation);
    the extra sublane reduction is tiny (H rows) and lands on the XLU slot.
    """
    inv_n = 1.0 / h.shape[0]
    mu = jnp.sum(h, axis=0, keepdims=True) * inv_n
    d = h - mu
    var = jnp.sum(d * d, axis=0, keepdims=True) * inv_n
    return d * lax.rsqrt(var + LN_EPS) * gamma + beta


def critic_kernel(x_ref, a_ref, w1_ref, w2a_ref, w2b_ref, vec_ref, b3_ref,
                  v_ref, *, chunk, n_chunks):
    # Weights and packed per-feature vectors are VMEM-resident (constant index
    # maps) — read them once per grid step, outside the chunk loop.
    vec = vec_ref[...]                       # (H, 8) packed per-feature params
    b1, g1, be1 = vec[:, 0:1], vec[:, 1:2], vec[:, 2:3]
    b2, g2, be2 = vec[:, 3:4], vec[:, 4:5], vec[:, 5:6]
    w3 = vec[:, 6:7]                         # (H, 1)
    b3 = b3_ref[0, 0]                        # scalar from SMEM

    w1 = w1_ref[...]                         # (H, NIN)
    w2a = w2a_ref[...]                       # (H, H)
    w2b = w2b_ref[...]                       # (H, NA)

    # Contract the LAST dims of both operands: (H, K) . (TB, K) -> (H, TB).
    # Mosaic performs the operand transpose in-kernel (XLU/MXU slack).
    dn_nt = (((1,), (1,)), ((), ()))
    hp = lax.Precision.HIGHEST

    def compute(x, a):
        # fc1 -> ln1 -> leaky_relu : (H, NIN) x (chunk, NIN) -> (H, chunk)
        h1 = lax.dot_general(w1, x, dn_nt,
                             preferred_element_type=jnp.float32,
                             precision=hp) + b1
        h1 = _leaky_relu(_layernorm_features_first(h1, g1, be1))

        # fc2 on concat([h1; a]) == W2a^T @ h1 + W2b^T @ a ; then ln2 -> leaky_relu
        h2 = (jnp.dot(w2a, h1, preferred_element_type=jnp.float32, precision=hp)
              + lax.dot_general(w2b, a, dn_nt,
                                preferred_element_type=jnp.float32,
                                precision=hp)
              + b2)
        h2 = _leaky_relu(_layernorm_features_first(h2, g2, be2))

        # V head: VPU multiply + sublane reduce -> lane-dense (1, chunk) row.
        return jnp.sum(h2 * w3, axis=0, keepdims=True) + b3

    if n_chunks == 1:
        v_ref[...] = compute(x_ref[...], a_ref[...])
    else:
        # Inner chunk loop bounds vreg pressure of h1/h2 while the large batch
        # block amortizes DMA + per-grid-step overhead.
        def body(c, carry):
            start = pl.multiple_of(c * chunk, chunk)   # 128-aligned lane/sublane offsets
            v_ref[:, pl.ds(start, chunk)] = compute(
                x_ref[pl.ds(start, chunk), :],
                a_ref[pl.ds(start, chunk), :])
            return carry

        lax.fori_loop(0, n_chunks, body, 0, unroll=True)


def _round_up(x, m):
    return (x + m - 1) // m * m


def critic_forward(inputs, actions, kparams, *, tb=8192, chunk=512):
    """inputs: (B, NIN), actions: (B, NA) -> (B, 1) f32."""
    B, nin = inputs.shape
    na = actions.shape[1]
    hidden = kparams["w1t"].shape[0]

    # Optional bf16 storage (v6e/v7x): cast the streaming inputs to the weight
    # dtype; all accumulation stays f32 via preferred_element_type.
    io_dtype = kparams["w1t"].dtype
    if inputs.dtype != io_dtype:
        inputs = inputs.astype(io_dtype)
    if actions.dtype != io_dtype:
        actions = actions.astype(io_dtype)

    # Batch tile: one full-extent block for small B, otherwise lane-dense
    # 128-multiples.  No wrapper pad/transpose; a ragged last block is handled
    # by Pallas (garbage OOB columns are per-sample independent and clipped on
    # output writeback).
    if B <= tb:
        tb_eff = B
    else:
        tb_eff = _round_up(tb, 128)

    # Inner compute chunk (128-aligned lanes).  If it doesn't divide the block,
    # fall back to a single full-extent chunk (static indexing).
    chunk = max(128, _round_up(chunk, 128))
    if tb_eff % chunk == 0:
        chunk_eff = chunk
    else:
        chunk_eff = tb_eff
    n_chunks = tb_eff // chunk_eff

    grid = (pl.cdiv(B, tb_eff),)
    batch_in = lambda i: (i, 0)
    batch_out = lambda i: (0, i)
    const = lambda i: (0, 0)

    kernel = functools.partial(critic_kernel, chunk=chunk_eff, n_chunks=n_chunks)

    out = pl.pallas_call(
        kernel,
        out_shape=jax.ShapeDtypeStruct((1, B), jnp.float32),
        grid=grid,
        in_specs=[
            pl.BlockSpec((tb_eff, nin), batch_in),              # inputs  (B, NIN)
            pl.BlockSpec((tb_eff, na), batch_in),               # actions (B, NA)
            pl.BlockSpec((hidden, nin), const),                 # w1t  (VMEM-resident)
            pl.BlockSpec((hidden, hidden), const),              # w2at (VMEM-resident)
            pl.BlockSpec((hidden, na), const),                  # w2bt (VMEM-resident)
            pl.BlockSpec((hidden, 8), const),                   # packed per-feature vectors
            pl.BlockSpec(memory_space=pltpu.MemorySpace.SMEM),  # b3 scalar
        ],
        out_specs=pl.BlockSpec((1, tb_eff), batch_out),
        compiler_params=pltpu.CompilerParams(
            dimension_semantics=("parallel",)),
    )(
        inputs, actions,
        kparams["w1t"], kparams["w2at"], kparams["w2bt"],
        kparams["vecs"], kparams["b3"],
    )

    return out.T   # (1, B) -> (B, 1); trivial reshape of a tiny array


def init_params(key, num_inputs, hidden, action_space):
    """PyTorch-equivalent init: uniform +/- 1/sqrt(fan_in); V layer scaled by 0.1."""
    ks = jax.random.split(key, 6)

    def lin(kw, kb, fan_in, fan_out):
        bound = 1.0 / jnp.sqrt(fan_in)
        w = jax.random.uniform(kw, (fan_in, fan_out), jnp.float32, -bound, bound)
        b = jax.random.uniform(kb, (fan_out,), jnp.float32, -bound, bound)
        return w, b

    w1, b1 = lin(ks[0], ks[1], num_inputs, hidden)
    w2, b2 = lin(ks[2], ks[3], hidden + action_space, hidden)
    w3, b3 = lin(ks[4], ks[5], hidden, 1)
    w3 = w3 * 0.1
    b3 = b3 * 0.1

    return {
        "w1": w1, "b1": b1,
        "g1": jnp.ones((hidden,), jnp.float32), "be1": jnp.zeros((hidden,), jnp.float32),
        "w2": w2, "b2": b2,
        "g2": jnp.ones((hidden,), jnp.float32), "be2": jnp.zeros((hidden,), jnp.float32),
        "w3": w3, "b3": b3,
    }


def pack_params(p, hidden, action_space, weight_dtype=jnp.float32):
    """Transpose weights for the (features, batch) kernel layout, pack the seven
    per-feature vectors into one (H, 8) array, and put b3 in a (1,1) SMEM scalar.
    weight_dtype=jnp.bfloat16 halves weight+input HBM bytes on v6e/v7x."""
    w1t = p["w1"].T.astype(weight_dtype)                 # (H, NIN)
    w2at = p["w2"][:hidden, :].T.astype(weight_dtype)    # (H, H)
    w2bt = p["w2"][hidden:, :].T.astype(weight_dtype)    # (H, NA)
    vecs = jnp.stack(
        [p["b1"], p["g1"], p["be1"], p["b2"], p["g2"], p["be2"], p["w3"][:, 0],
         jnp.zeros((hidden,), jnp.float32)],
        axis=1,
    ).astype(jnp.float32)                                # (H, 8)
    b3 = p["b3"].reshape(1, 1).astype(jnp.float32)       # SMEM scalar
    return {"w1t": w1t, "w2at": w2at, "w2bt": w2bt, "vecs": vecs, "b3": b3}


def critic_reference(inputs, actions, p):
    """Pure-JAX reference of the PyTorch forward (two-pass LayerNorm, f32 matmuls)."""
    hp = lax.Precision.HIGHEST

    def ln(h, g, b):
        mu = jnp.mean(h, axis=-1, keepdims=True)
        var = jnp.mean((h - mu) ** 2, axis=-1, keepdims=True)
        return (h - mu) * lax.rsqrt(var + LN_EPS) * g + b

    h1 = jnp.dot(inputs, p["w1"], precision=hp) + p["b1"]
    h1 = _leaky_relu(ln(h1, p["g1"], p["be1"]))
    cat = jnp.concatenate([h1, actions], axis=1)
    h2 = jnp.dot(cat, p["w2"], precision=hp) + p["b2"]
    h2 = _leaky_relu(ln(h2, p["g2"], p["be2"]))
    return jnp.dot(h2, p["w3"], precision=hp) + p["b3"]


if __name__ == "__main__":
    B, NUM_INPUTS, HIDDEN, ACTION_SPACE = 512, 16, 32, 4

    key = jax.random.PRNGKey(0)
    k_in, k_act, k_par = jax.random.split(key, 3)

    inputs = jax.random.normal(k_in, (B, NUM_INPUTS), jnp.float32)
    actions = jax.random.normal(k_act, (B, ACTION_SPACE), jnp.float32)
    params = init_params(k_par, NUM_INPUTS, HIDDEN, ACTION_SPACE)
    kparams = pack_params(params, HIDDEN, ACTION_SPACE)

    # Small tb/chunk so the demo exercises both the 2-step pipelined batch grid
    # and the inner vreg-bounding chunk loop (production default: tb=8192, chunk=512).
    v = critic_forward(inputs, actions, kparams, tb=256, chunk=128)
    v = jax.block_until_ready(v)

    v_ref = critic_reference(inputs, actions, params)
    assert v.shape == (B, 1), v.shape
    max_err = float(jnp.max(jnp.abs(v - v_ref)))
    assert jnp.allclose(v, v_ref, atol=1e-4, rtol=1e-4), max_err

    print("KERNEL_OK")
</pallas_src>

<mosaic_0001>
module attributes {stable_mosaic.version = 11 : i64} {
  func.func @critic_kernel(%arg0: i32, %arg1: memref<256x16xf32, #tpu.memory_space<vmem>>, %arg2: memref<256x4xf32, #tpu.memory_space<vmem>>, %arg3: memref<32x16xf32, #tpu.memory_space<vmem>>, %arg4: memref<32x32xf32, #tpu.memory_space<vmem>>, %arg5: memref<32x4xf32, #tpu.memory_space<vmem>>, %arg6: memref<32x8xf32, #tpu.memory_space<vmem>>, %arg7: memref<1x1xf32, #tpu.memory_space<smem>>, %arg8: memref<1x256xf32, #tpu.memory_space<vmem>>) attributes {dimension_semantics = [#tpu.dimension_semantics<parallel>], iteration_bounds = array<i64: 2>, scalar_prefetch = 0 : i64, scratch_operands = 0 : i64, tpu.core_type = #tpu.core_type<tc>, window_params = [{transform_indices = @transform_0, window_bounds = array<i64: 256, 16>}, {transform_indices = @transform_1, window_bounds = array<i64: 256, 4>}, {pipeline_mode = #tpu.pipeline_mode<synchronous>, transform_indices = @transform_2, window_bounds = array<i64: 32, 16>}, {pipeline_mode = #tpu.pipeline_mode<synchronous>, transform_indices = @transform_3, window_bounds = array<i64: 32, 32>}, {pipeline_mode = #tpu.pipeline_mode<synchronous>, transform_indices = @transform_4, window_bounds = array<i64: 32, 4>}, {pipeline_mode = #tpu.pipeline_mode<synchronous>, transform_indices = @transform_5, window_bounds = array<i64: 32, 8>}, {transform_indices = @transform_6, window_bounds = array<i64: 1, 1>}, {transform_indices = @transform_7, window_bounds = array<i64: 1, 256>}]} {
    %c0 = arith.constant 0 : index
    %c0_0 = arith.constant 0 : index
    %0 = vector.load %arg6[%c0, %c0_0] : memref<32x8xf32, #tpu.memory_space<vmem>>, vector<32x8xf32>
    %1 = vector.extract_strided_slice %0 {offsets = [0, 0], sizes = [32, 1], strides = [1, 1]} : vector<32x8xf32> to vector<32x1xf32>
    %2 = vector.extract_strided_slice %0 {offsets = [0, 1], sizes = [32, 1], strides = [1, 1]} : vector<32x8xf32> to vector<32x1xf32>
    %3 = vector.extract_strided_slice %0 {offsets = [0, 2], sizes = [32, 1], strides = [1, 1]} : vector<32x8xf32> to vector<32x1xf32>
    %4 = vector.extract_strided_slice %0 {offsets = [0, 3], sizes = [32, 1], strides = [1, 1]} : vector<32x8xf32> to vector<32x1xf32>
    %5 = vector.extract_strided_slice %0 {offsets = [0, 4], sizes = [32, 1], strides = [1, 1]} : vector<32x8xf32> to vector<32x1xf32>
    %6 = vector.extract_strided_slice %0 {offsets = [0, 5], sizes = [32, 1], strides = [1, 1]} : vector<32x8xf32> to vector<32x1xf32>
    %7 = vector.extract_strided_slice %0 {offsets = [0, 6], sizes = [32, 1], strides = [1, 1]} : vector<32x8xf32> to vector<32x1xf32>
    %c0_1 = arith.constant 0 : index
    %c0_2 = arith.constant 0 : index
    %8 = memref.load %arg7[%c0_1, %c0_2] : memref<1x1xf32, #tpu.memory_space<smem>>
    %c0_3 = arith.constant 0 : index
    %c0_4 = arith.constant 0 : index
    %9 = vector.load %arg3[%c0_3, %c0_4] : memref<32x16xf32, #tpu.memory_space<vmem>>, vector<32x16xf32>
    %c0_5 = arith.constant 0 : index
    %c0_6 = arith.constant 0 : index
    %10 = vector.load %arg4[%c0_5, %c0_6] : memref<32x32xf32, #tpu.memory_space<vmem>>, vector<32x32xf32>
    %c0_7 = arith.constant 0 : index
    %c0_8 = arith.constant 0 : index
    %11 = vector.load %arg5[%c0_7, %c0_8] : memref<32x4xf32, #tpu.memory_space<vmem>>, vector<32x4xf32>
    %c0_i32 = arith.constant 0 : i32
    %c128_i32 = arith.constant 128 : i32
    %12 = arith.muli %c0_i32, %c128_i32 : i32
    %13 = tpu.assume_multiple %12, 128 : i32
    %14 = arith.index_cast %13 : i32 to index
    %c0_9 = arith.constant 0 : index
    %15 = vector.load %arg1[%14, %c0_9] : memref<256x16xf32, #tpu.memory_space<vmem>>, vector<128x16xf32>
    %16 = arith.index_cast %13 : i32 to index
    %c0_10 = arith.constant 0 : index
    %17 = vector.load %arg2[%16, %c0_10] : memref<256x4xf32, #tpu.memory_space<vmem>>, vector<128x4xf32>
    %cst = arith.constant dense<0.000000e+00> : vector<32x128xf32>
    %18 = tpu.matmul %9, %15, %cst {dimension_numbers = #tpu.dot_dimension_numbers<[1], [1], [0], [0], [0, 0, 1, 0], [], []>, precision = #tpu.contract_precision<fp32>} : vector<32x16xf32>, vector<128x16xf32>, vector<32x128xf32> -> vector<32x128xf32>
    %19 = vector.broadcast %1 : vector<32x1xf32> to vector<32x128xf32>
    %20 = arith.addf %18, %19 : vector<32x128xf32>
    %cst_11 = arith.constant dense<0.000000e+00> : vector<128xf32>
    %21 = vector.multi_reduction <add>, %20, %cst_11 [0] : vector<32x128xf32> to vector<128xf32>
    %22 = vector.shape_cast %21 : vector<128xf32> to vector<1x128xf32>
    %cst_12 = arith.constant 3.125000e-02 : f32
    %23 = vector.broadcast %cst_12 : f32 to vector<1x128xf32>
    %24 = arith.mulf %22, %23 : vector<1x128xf32>
    %25 = vector.broadcast %24 : vector<1x128xf32> to vector<32x128xf32>
    %26 = arith.subf %20, %25 : vector<32x128xf32>
    %27 = arith.mulf %26, %26 : vector<32x128xf32>
    %cst_13 = arith.constant dense<0.000000e+00> : vector<128xf32>
    %28 = vector.multi_reduction <add>, %27, %cst_13 [0] : vector<32x128xf32> to vector<128xf32>
    %29 = vector.shape_cast %28 : vector<128xf32> to vector<1x128xf32>
    %cst_14 = arith.constant 3.125000e-02 : f32
    %30 = vector.broadcast %cst_14 : f32 to vector<1x128xf32>
    %31 = arith.mulf %29, %30 : vector<1x128xf32>
    %cst_15 = arith.constant 9.99999974E-6 : f32
    %32 = vector.broadcast %cst_15 : f32 to vector<1x128xf32>
    %33 = arith.addf %31, %32 : vector<1x128xf32>
    %34 = math.rsqrt %33 : vector<1x128xf32>
    %35 = vector.broadcast %34 : vector<1x128xf32> to vector<32x128xf32>
    %36 = arith.mulf %26, %35 : vector<32x128xf32>
    %37 = vector.broadcast %2 : vector<32x1xf32> to vector<32x128xf32>
    %38 = arith.mulf %36, %37 : vector<32x128xf32>
    %39 = vector.broadcast %3 : vector<32x1xf32> to vector<32x128xf32>
    %40 = arith.addf %38, %39 : vector<32x128xf32>
    %cst_16 = arith.constant 0.000000e+00 : f32
    %41 = vector.broadcast %cst_16 : f32 to vector<32x128xf32>
    %42 = arith.cmpf oge, %40, %41 : vector<32x128xf32>
    %cst_17 = arith.constant 0.00999999977 : f32
    %43 = vector.broadcast %cst_17 : f32 to vector<32x128xf32>
    %44 = arith.mulf %43, %40 : vector<32x128xf32>
    %45 = arith.select %42, %40, %44 : vector<32x128xi1>, vector<32x128xf32>
    %cst_18 = arith.constant dense<0.000000e+00> : vector<32x128xf32>
    %46 = tpu.matmul %10, %45, %cst_18 {dimension_numbers = #tpu.dot_dimension_numbers<[1], [0], [0], [1], [0, 0, 1, 1], [], []>, precision = #tpu.contract_precision<fp32>} : vector<32x32xf32>, vector<32x128xf32>, vector<32x128xf32> -> vector<32x128xf32>
    %cst_19 = arith.constant dense<0.000000e+00> : vector<32x128xf32>
    %47 = tpu.matmul %11, %17, %cst_19 {dimension_numbers = #tpu.dot_dimension_numbers<[1], [1], [0], [0], [0, 0, 1, 0], [], []>, precision = #tpu.contract_precision<fp32>} : vector<32x4xf32>, vector<128x4xf32>, vector<32x128xf32> -> vector<32x128xf32>
    %48 = arith.addf %46, %47 : vector<32x128xf32>
    %49 = vector.broadcast %4 : vector<32x1xf32> to vector<32x128xf32>
    %50 = arith.addf %48, %49 : vector<32x128xf32>
    %cst_20 = arith.constant dense<0.000000e+00> : vector<128xf32>
    %51 = vector.multi_reduction <add>, %50, %cst_20 [0] : vector<32x128xf32> to vector<128xf32>
    %52 = vector.shape_cast %51 : vector<128xf32> to vector<1x128xf32>
    %cst_21 = arith.constant 3.125000e-02 : f32
    %53 = vector.broadcast %cst_21 : f32 to vector<1x128xf32>
    %54 = arith.mulf %52, %53 : vector<1x128xf32>
    %55 = vector.broadcast %54 : vector<1x128xf32> to vector<32x128xf32>
    %56 = arith.subf %50, %55 : vector<32x128xf32>
    %57 = arith.mulf %56, %56 : vector<32x128xf32>
    %cst_22 = arith.constant dense<0.000000e+00> : vector<128xf32>
    %58 = vector.multi_reduction <add>, %57, %cst_22 [0] : vector<32x128xf32> to vector<128xf32>
    %59 = vector.shape_cast %58 : vector<128xf32> to vector<1x128xf32>
    %cst_23 = arith.constant 3.125000e-02 : f32
    %60 = vector.broadcast %cst_23 : f32 to vector<1x128xf32>
    %61 = arith.mulf %59, %60 : vector<1x128xf32>
    %cst_24 = arith.constant 9.99999974E-6 : f32
    %62 = vector.broadcast %cst_24 : f32 to vector<1x128xf32>
    %63 = arith.addf %61, %62 : vector<1x128xf32>
    %64 = math.rsqrt %63 : vector<1x128xf32>
    %65 = vector.broadcast %64 : vector<1x128xf32> to vector<32x128xf32>
    %66 = arith.mulf %56, %65 : vector<32x128xf32>
    %67 = vector.broadcast %5 : vector<32x1xf32> to vector<32x128xf32>
    %68 = arith.mulf %66, %67 : vector<32x128xf32>
    %69 = vector.broadcast %6 : vector<32x1xf32> to vector<32x128xf32>
    %70 = arith.addf %68, %69 : vector<32x128xf32>
    %cst_25 = arith.constant 0.000000e+00 : f32
    %71 = vector.broadcast %cst_25 : f32 to vector<32x128xf32>
    %72 = arith.cmpf oge, %70, %71 : vector<32x128xf32>
    %cst_26 = arith.constant 0.00999999977 : f32
    %73 = vector.broadcast %cst_26 : f32 to vector<32x128xf32>
    %74 = arith.mulf %73, %70 : vector<32x128xf32>
    %75 = arith.select %72, %70, %74 : vector<32x128xi1>, vector<32x128xf32>
    %76 = vector.broadcast %7 : vector<32x1xf32> to vector<32x128xf32>
    %77 = arith.mulf %75, %76 : vector<32x128xf32>
    %cst_27 = arith.constant dense<0.000000e+00> : vector<128xf32>
    %78 = vector.multi_reduction <add>, %77, %cst_27 [0] : vector<32x128xf32> to vector<128xf32>
    %79 = vector.shape_cast %78 : vector<128xf32> to vector<1x128xf32>
    %80 = vector.broadcast %8 : f32 to vector<1x128xf32>
    %81 = arith.addf %79, %80 : vector<1x128xf32>
    %c0_28 = arith.constant 0 : index
    %82 = arith.index_cast %13 : i32 to index
    %83 = vector.load %arg8[%c0_28, %82] : memref<1x256xf32, #tpu.memory_space<vmem>>, vector<1x128xf32>
    tpu.vector_store %arg8[%c0_28, %82], %81 {strides = array<i32>} : memref<1x256xf32, #tpu.memory_space<vmem>>, vector<1x128xf32>,
    %c1_i32 = arith.constant 1 : i32
    %c128_i32_29 = arith.constant 128 : i32
    %84 = arith.muli %c1_i32, %c128_i32_29 : i32
    %85 = tpu.assume_multiple %84, 128 : i32
    %86 = arith.index_cast %85 : i32 to index
    %c0_30 = arith.constant 0 : index
    %87 = vector.load %arg1[%86, %c0_30] : memref<256x16xf32, #tpu.memory_space<vmem>>, vector<128x16xf32>
    %88 = arith.index_cast %85 : i32 to index
    %c0_31 = arith.constant 0 : index
    %89 = vector.load %arg2[%88, %c0_31] : memref<256x4xf32, #tpu.memory_space<vmem>>, vector<128x4xf32>
    %cst_32 = arith.constant dense<0.000000e+00> : vector<32x128xf32>
    %90 = tpu.matmul %9, %87, %cst_32 {dimension_numbers = #tpu.dot_dimension_numbers<[1], [1], [0], [0], [0, 0, 1, 0], [], []>, precision = #tpu.contract_precision<fp32>} : vector<32x16xf32>, vector<128x16xf32>, vector<32x128xf32> -> vector<32x128xf32>
    %91 = vector.broadcast %1 : vector<32x1xf32> to vector<32x128xf32>
    %92 = arith.addf %90, %91 : vector<32x128xf32>
    %cst_33 = arith.constant dense<0.000000e+00> : vector<128xf32>
    %93 = vector.multi_reduction <add>, %92, %cst_33 [0] : vector<32x128xf32> to vector<128xf32>
    %94 = vector.shape_cast %93 : vector<128xf32> to vector<1x128xf32>
    %cst_34 = arith.constant 3.125000e-02 : f32
    %95 = vector.broadcast %cst_34 : f32 to vector<1x128xf32>
    %96 = arith.mulf %94, %95 : vector<1x128xf32>
    %97 = vector.broadcast %96 : vector<1x128xf32> to vector<32x128xf32>
    %98 = arith.subf %92, %97 : vector<32x128xf32>
    %99 = arith.mulf %98, %98 : vector<32x128xf32>
    %cst_35 = arith.constant dense<0.000000e+00> : vector<128xf32>
    %100 = vector.multi_reduction <add>, %99, %cst_35 [0] : vector<32x128xf32> to vector<128xf32>
    %101 = vector.shape_cast %100 : vector<128xf32> to vector<1x128xf32>
    %cst_36 = arith.constant 3.125000e-02 : f32
    %102 = vector.broadcast %cst_36 : f32 to vector<1x128xf32>
    %103 = arith.mulf %101, %102 : vector<1x128xf32>
    %cst_37 = arith.constant 9.99999974E-6 : f32
    %104 = vector.broadcast %cst_37 : f32 to vector<1x128xf32>
    %105 = arith.addf %103, %104 : vector<1x128xf32>
    %106 = math.rsqrt %105 : vector<1x128xf32>
    %107 = vector.broadcast %106 : vector<1x128xf32> to vector<32x128xf32>
    %108 = arith.mulf %98, %107 : vector<32x128xf32>
    %109 = vector.broadcast %2 : vector<32x1xf32> to vector<32x128xf32>
    %110 = arith.mulf %108, %109 : vector<32x128xf32>
    %111 = vector.broadcast %3 : vector<32x1xf32> to vector<32x128xf32>
    %112 = arith.addf %110, %111 : vector<32x128xf32>
    %cst_38 = arith.constant 0.000000e+00 : f32
    %113 = vector.broadcast %cst_38 : f32 to vector<32x128xf32>
    %114 = arith.cmpf oge, %112, %113 : vector<32x128xf32>
    %cst_39 = arith.constant 0.00999999977 : f32
    %115 = vector.broadcast %cst_39 : f32 to vector<32x128xf32>
    %116 = arith.mulf %115, %112 : vector<32x128xf32>
    %117 = arith.select %114, %112, %116 : vector<32x128xi1>, vector<32x128xf32>
    %cst_40 = arith.constant dense<0.000000e+00> : vector<32x128xf32>
    %118 = tpu.matmul %10, %117, %cst_40 {dimension_numbers = #tpu.dot_dimension_numbers<[1], [0], [0], [1], [0, 0, 1, 1], [], []>, precision = #tpu.contract_precision<fp32>} : vector<32x32xf32>, vector<32x128xf32>, vector<32x128xf32> -> vector<32x128xf32>
    %cst_41 = arith.constant dense<0.000000e+00> : vector<32x128xf32>
    %119 = tpu.matmul %11, %89, %cst_41 {dimension_numbers = #tpu.dot_dimension_numbers<[1], [1], [0], [0], [0, 0, 1, 0], [], []>, precision = #tpu.contract_precision<fp32>} : vector<32x4xf32>, vector<128x4xf32>, vector<32x128xf32> -> vector<32x128xf32>
    %120 = arith.addf %118, %119 : vector<32x128xf32>
    %121 = vector.broadcast %4 : vector<32x1xf32> to vector<32x128xf32>
    %122 = arith.addf %120, %121 : vector<32x128xf32>
    %cst_42 = arith.constant dense<0.000000e+00> : vector<128xf32>
    %123 = vector.multi_reduction <add>, %122, %cst_42 [0] : vector<32x128xf32> to vector<128xf32>
    %124 = vector.shape_cast %123 : vector<128xf32> to vector<1x128xf32>
    %cst_43 = arith.constant 3.125000e-02 : f32
    %125 = vector.broadcast %cst_43 : f32 to vector<1x128xf32>
    %126 = arith.mulf %124, %125 : vector<1x128xf32>
    %127 = vector.broadcast %126 : vector<1x128xf32> to vector<32x128xf32>
    %128 = arith.subf %122, %127 : vector<32x128xf32>
    %129 = arith.mulf %128, %128 : vector<32x128xf32>
    %cst_44 = arith.constant dense<0.000000e+00> : vector<128xf32>
    %130 = vector.multi_reduction <add>, %129, %cst_44 [0] : vector<32x128xf32> to vector<128xf32>
    %131 = vector.shape_cast %130 : vector<128xf32> to vector<1x128xf32>
    %cst_45 = arith.constant 3.125000e-02 : f32
    %132 = vector.broadcast %cst_45 : f32 to vector<1x128xf32>
    %133 = arith.mulf %131, %132 : vector<1x128xf32>
    %cst_46 = arith.constant 9.99999974E-6 : f32
    %134 = vector.broadcast %cst_46 : f32 to vector<1x128xf32>
    %135 = arith.addf %133, %134 : vector<1x128xf32>
    %136 = math.rsqrt %135 : vector<1x128xf32>
    %137 = vector.broadcast %136 : vector<1x128xf32> to vector<32x128xf32>
    %138 = arith.mulf %128, %137 : vector<32x128xf32>
    %139 = vector.broadcast %5 : vector<32x1xf32> to vector<32x128xf32>
    %140 = arith.mulf %138, %139 : vector<32x128xf32>
    %141 = vector.broadcast %6 : vector<32x1xf32> to vector<32x128xf32>
    %142 = arith.addf %140, %141 : vector<32x128xf32>
    %cst_47 = arith.constant 0.000000e+00 : f32
    %143 = vector.broadcast %cst_47 : f32 to vector<32x128xf32>
    %144 = arith.cmpf oge, %142, %143 : vector<32x128xf32>
    %cst_48 = arith.constant 0.00999999977 : f32
    %145 = vector.broadcast %cst_48 : f32 to vector<32x128xf32>
    %146 = arith.mulf %145, %142 : vector<32x128xf32>
    %147 = arith.select %144, %142, %146 : vector<32x128xi1>, vector<32x128xf32>
    %148 = vector.broadcast %7 : vector<32x1xf32> to vector<32x128xf32>
    %149 = arith.mulf %147, %148 : vector<32x128xf32>
    %cst_49 = arith.constant dense<0.000000e+00> : vector<128xf32>
    %150 = vector.multi_reduction <add>, %149, %cst_49 [0] : vector<32x128xf32> to vector<128xf32>
    %151 = vector.shape_cast %150 : vector<128xf32> to vector<1x128xf32>
    %152 = vector.broadcast %8 : f32 to vector<1x128xf32>
    %153 = arith.addf %151, %152 : vector<1x128xf32>
    %c0_50 = arith.constant 0 : index
    %154 = arith.index_cast %85 : i32 to index
    %155 = vector.load %arg8[%c0_50, %154] : memref<1x256xf32, #tpu.memory_space<vmem>>, vector<1x128xf32>
    tpu.vector_store %arg8[%c0_50, %154], %153 {strides = array<i32>} : memref<1x256xf32, #tpu.memory_space<vmem>>, vector<1x128xf32>,
    %c2_i32 = arith.constant 2 : i32
    return
  }
  func.func @transform_0(%arg0: i32) -> (i32, i32) {
    %c0_i32 = arith.constant 0 : i32
    %c0_i32_0 = arith.constant 0 : i32
    return %arg0, %c0_i32 : i32, i32
  }
  func.func @transform_1(%arg0: i32) -> (i32, i32) {
    %c0_i32 = arith.constant 0 : i32
    %c0_i32_0 = arith.constant 0 : i32
    return %arg0, %c0_i32 : i32, i32
  }
  func.func @transform_2(%arg0: i32) -> (i32, i32) {
    %c0_i32 = arith.constant 0 : i32
    %c0_i32_0 = arith.constant 0 : i32
    %c0_i32_1 = arith.constant 0 : i32
    return %c0_i32, %c0_i32_0 : i32, i32
  }
  func.func @transform_3(%arg0: i32) -> (i32, i32) {
    %c0_i32 = arith.constant 0 : i32
    %c0_i32_0 = arith.constant 0 : i32
    %c0_i32_1 = arith.constant 0 : i32
    return %c0_i32, %c0_i32_0 : i32, i32
  }
  func.func @transform_4(%arg0: i32) -> (i32, i32) {
    %c0_i32 = arith.constant 0 : i32
    %c0_i32_0 = arith.constant 0 : i32
    %c0_i32_1 = arith.constant 0 : i32
    return %c0_i32, %c0_i32_0 : i32, i32
  }
  func.func @transform_5(%arg0: i32) -> (i32, i32) {
    %c0_i32 = arith.constant 0 : i32
    %c0_i32_0 = arith.constant 0 : i32
    %c0_i32_1 = arith.constant 0 : i32
    return %c0_i32, %c0_i32_0 : i32, i32
  }
  func.func @transform_6(%arg0: i32) -> (i32, i32) {
    %c0_i32 = arith.constant 0 : i32
    %c0_i32_0 = arith.constant 0 : i32
    %c0_i32_1 = arith.constant 0 : i32
    return %c0_i32, %c0_i32_0 : i32, i32
  }
  func.func @transform_7(%arg0: i32) -> (i32, i32) {
    %c0_i32 = arith.constant 0 : i32
    %c0_i32_0 = arith.constant 0 : i32
    return %c0_i32, %arg0 : i32, i32
  }
}

</mosaic_0001>

<bundles_post_ra>
// kernel: tpu_custom_call.1
= control target key start
LH: loop header
LB: loop body
LE: loop exit
PB: predicated region body
PF: predicated region fallthrough
CT: control target
= control target key end

     0   :  { %s10117_s0 = inlined_call_operand.vmem [shape: f32[512,16], index: 0, kind: input, shape index: {}]   ;;  %s10118_s1 = inlined_call_operand.vmem [shape: f32[512,4], index: 1, kind: input, shape index: {}]   ;;  %s10119_s2 = inlined_call_operand.vmem [shape: f32[32,16], index: 2, kind: input, shape index: {}]   ;;  %s10120_s3 = inlined_call_operand.vmem [shape: f32[32,32], index: 3, kind: input, shape index: {}]   ;;  %s10121_s4 = inlined_call_operand.vmem [shape: f32[32,4], index: 4, kind: input, shape index: {}]   ;;  %s10122_s5 = inlined_call_operand.vmem [shape: f32[32,8], index: 5, kind: input, shape index: {}]   ;;  %s10123_s6 = inlined_call_operand.<no memory space> [shape: f32[1,1], index: 6, kind: input, shape index: {}]   ;;  %s10124_s7 = inlined_call_operand.hbm [shape: f32[1,512], index: 7, kind: output, shape index: {}]  }
   0x1   :  { %12 = sst [smem:[#allocation2]] %s10123_s6 }
   0x2   :  { %13 = vsyncpa [#allocation4], 0 }
   0x3   :  { %15 = vsyncpa [#allocation4 + $0x1], 0  ;;  %s8282_s26 = smov 0   ;;  %s8284_s27 = smov 0  }
   0x4   :  { %s8286_s28 = smov 0   ;;  %s8288_s29 = smov 0  }
   0x5 LB: > { %s5386_s6 = sadd.s32 4294967295, %s8229_s29   ;;  %s5387_s30 = sadd.s32 4294967294, %s8229_s29   ;;  %s8229_s29 = sphi %s8288_s29, %s10435_s29   ;;  %s8225_s28 = sphi %s8286_s28, %s10434_s28   ;;  %s8221_s27 = sphi %s8284_s27, %s10433_s27   ;;  %s8217_s26 = sphi %s8282_s26, %s10432_s26  }
   0x6   : > { %s8305_s8 = sadd.s32 1, %s8229_s29   ;;  %s185_s9 = sadd.s32 1, %s8225_s28 }
   0x7   : > { %s182_s10 = ssub.s32 %s8229_s29, %s8305_s8  ;;  %p195_p0 = scmp.ne.s32.totalorder %s8225_s28, %s8221_s27 }
   0x8   : > { %p183_p1 = scmp.eq.s32.totalorder %s182_s10, 0  ;;  %p196_p2 = scmp.eq.s32.totalorder %s5386_s6, 1 }
   0x9   : > { %p201_p3 = scmp.ne.s32.totalorder %s8221_s27, %s8217_s26  ;;  %p202_p4 = scmp.eq.s32.totalorder %s5387_s30, 1 }
   0xa   : > { %s8315_s11 = scalar_select %p183_p1, %s8225_s28, %s185_s9  }
   0xb   : > { %p8317_p5 = por %p196_p2, %p195_p0  ;;  %p8321_p6 = por %p202_p4, %p201_p3 }
   0xc   : > { %p5390_p7 = scmp.ge.s32.totalorder %s8229_s29, 1  ;;  %p253_p8 = scmp.lt.s32.totalorder %s8229_s29, 3 }
   0xe   : > { %p254_p9 = pnand %p5390_p7, %p253_p8 }
  0x10   : > { %257 = sbr.rel (%p254_p9) target bundleno = 1524 (0x5f4), region = 48 }
  0x17   : > { %s8327_s14 = sshll.u32 %s5386_s6, 5  ;;  %vm372_vm0 = vcmask 130048   ;;  %v308_v0 = vld [vmem:[%s10119_s2] sm:$0xff]  ;;  %vm1289_vm1 = vcmask 31744   ;;  %vm2120_vm2 = vcmask 261120   ;;  %s287_s20 = sand.u32 1, %s8221_s27  }
  0x18   : > { %p291_p10 = scmp.lt.s32.totalorder %s8327_s14, 63  ;;  %v374_v1 = vsel %vm372_vm0, %v308_v0, 0  ;;  %s5391_s22 = sshll.u32 %s287_s20, 1 }
  0x19   : > { %v8334_v2 = vand.u32 4294901760, %v374_v1  ;;  %s9983_s23 = scalar_lea.vmem [#allocation3], %s5391_s22  ;;  %s10070_s30 = scalar_lea.hbm %s10124_s7, %s8327_s14 }
  0x1a   : > { %s8337_s17 = scalar_select %p291_p10, %s8327_s14, 63 }
  0x1b   : > { %v8340_v3 = vsub.f32 %v374_v1, %v8334_v2  ;;  %s5316_s24 = sshll.u32 %s9983_s23, 4  ;;  %s5302_s9 = scalar_lea.sflag [#allocation4], %s287_s20  ;;  %s10072_s24 = int_to_ptr.vmem [resolvable:$true] %s5316_s24 }
  0x1c   : > { %s5393_s18 = sshll.u32 %s8337_s17, 3  ;;  %s8167_s10 = scalar_lea.vmem %s10072_s24, 32 }
  0x1d   : > { %10255 = vst [vmem:[#allocation6_spill] sm:$0xff] %v8340_v3  ;;  %s8348_s21 = scalar_lea.vmem %s10117_s0, %s5393_s18  ;;  %v8358_v11 = vand.u32 4294901760, %v8340_v3  ;;  %s8636_s15 = scalar_lea.vmem %s10118_s1, %s5393_s18 }
  0x1e   : > { %v320_v4 = vld [vmem:[%s8348_s21] sm:$0xff]  ;;  %v321_v5 = vld [vmem:[%s8348_s21 + $0x8] sm:$0xff]  ;;  %v322_v6 = vld [vmem:[%s8348_s21 + $0x10] sm:$0xff]  ;;  %p8168_p11 = scmp.ne.s32.totalorder %s10072_s24, %s8167_s10  ;;  %s8238_s16 = smov [#allocation3]  }
  0x1f   : > { %v386_v7 = vsel %vm372_vm0, %v320_v4, 0  ;;  %v389_v8 = vsel %vm372_vm0, %v321_v5, 0  ;;  %v323_v9 = vld [vmem:[%s8348_s21 + $0x18] sm:$0xff]  ;;  %v392_v10 = vsel %vm372_vm0, %v322_v6, 0  ;;  %10256 = vst [vmem:[#allocation7_spill] sm:$0xff] %v8358_v11  ;;  %v324_v16 = vld [vmem:[%s8348_s21 + $0x20] sm:$0xff]  ;;  %v517_v23 = vsub.f32 %v8340_v3, %v8358_v11 }
  0x20   : > { %v434_v12 = vand.u32 4294901760, %v386_v7  ;;  %v437_v13 = vand.u32 4294901760, %v389_v8  ;;  %v395_v14 = vsel %vm372_vm0, %v323_v9, 0  ;;  %v440_v15 = vand.u32 4294901760, %v392_v10  ;;  %v325_v17 = vld [vmem:[%s8348_s21 + $0x28] sm:$0xff]  ;;  %v326_v26 = vld [vmem:[%s8348_s21 + $0x30] sm:$0xff]  ;;  %p8169_p12 = pnand %p8168_p11, %p8317_p5 }
  0x21   : > { %v443_v18 = vand.u32 4294901760, %v395_v14  ;;  %v398_v21 = vsel %vm372_vm0, %v324_v16, 0  ;;  %v401_v22 = vsel %vm372_vm0, %v325_v17, 0  ;;  %v327_v27 = vld [vmem:[%s8348_s21 + $0x38] sm:$0xff]  ;;  %v8376_v28 = vand.u32 4294901760, %v517_v23  ;;  %v328_v34 = vld [vmem:[%s8348_s21 + $0x40] sm:$0xff] }
  0x22   : > { %v8363_v19 = vpack.c.bf16 %v437_v13, %v434_v12  ;;  %v446_v24 = vand.u32 4294901760, %v398_v21  ;;  %v449_v25 = vand.u32 4294901760, %v401_v22  ;;  %v404_v30 = vsel %vm372_vm0, %v326_v26, 0  ;;  %v329_v35 = vld [vmem:[%s8348_s21 + $0x48] sm:$0xff]  ;;  %v330_v41 = vld [vmem:[%s8348_s21 + $0x50] sm:$0xff]  ;;  %v331_v42 = vld [vmem:[%s8348_s21 + $0x58] sm:$0xff]  ;;  %p8170_p13 = pneg %p8169_p12 }
  0x23   : > { %v8365_v20 = vpack.c.bf16 %v443_v18, %v440_v15  ;;  %6043 = vmatprep.mubr.f32.mxu0 %v8376_v28  ;;  %v407_v31 = vsel %vm372_vm0, %v327_v27, 0  ;;  %v452_v32 = vand.u32 4294901760, %v404_v30  ;;  %v410_v37 = vsel %vm372_vm0, %v328_v34, 0  ;;  %v332_v63 = vld [vmem:[%s8348_s21 + $0x60] sm:$0xff]  ;;  %v333_v0 = vld [vmem:[%s8348_s21 + $0x68] sm:$0xff]  ;;  %v310_v16 = vld [vmem:[%s10119_s2 + $0x10] sm:$0xff] }
  0x24   : > { %7092 = vmatprep.subr.bf16.mxu0 %v8363_v19  ;;  %v8378_v29 = vpack.c.bf16 %v449_v25, %v446_v24  ;;  %v455_v33 = vand.u32 4294901760, %v407_v31  ;;  %v413_v38 = vsel %vm372_vm0, %v329_v35, 0  ;;  %v458_v39 = vand.u32 4294901760, %v410_v37  ;;  %s8171_s17 = sshll.u32 %s8238_s16, 4  ;;  %s8172_s17 = int_to_ptr.vmem [resolvable:$false] %s8171_s17 }
  0x25   : > { %7094 = vmatpush3.bf16.xpose.msra.mxu0 %v8363_v19  ;;  %v461_v40 = vand.u32 4294901760, %v413_v38  ;;  %v416_v43 = vsel %vm372_vm0, %v330_v41, 0  ;;  %v419_v45 = vsel %vm372_vm0, %v331_v42, 0  ;;  %v8399_v46 = vsub.f32 %v386_v7, %v434_v12  ;;  %v334_v12 = vld [vmem:[%s8348_s21 + $0x70] sm:$0xff]  ;;  %s8173_s14 = scalar_lea.vmem %s8172_s17, 64  ;;  %p8174_p0 = scmp.lt.s32.totalorder %s10072_s24, %s8172_s17 }
  0x26   : > { %7096 = vmatprep.subr.bf16.mxu0 %v8365_v20  ;;  %v8387_v36 = vpack.c.bf16 %v455_v33, %v452_v32  ;;  %v8401_v47 = vsub.f32 %v389_v8, %v437_v13  ;;  %v8403_v48 = vsub.f32 %v392_v10, %v440_v15  ;;  %v8405_v49 = vsub.f32 %v395_v14, %v443_v18  ;;  %v335_v13 = vld [vmem:[%s8348_s21 + $0x78] sm:$0xff]  ;;  %v309_v15 = vld [vmem:[%s10119_s2 + $0x8] sm:$0xff]  ;;  %p8175_p1 = scmp.lt.s32.totalorder %s8173_s14, %s8167_s10 }
  0x27   : > { %v8396_v44 = vpack.c.bf16 %v461_v40, %v458_v39  ;;  %v8407_v50 = vsub.f32 %v398_v21, %v446_v24  ;;  %v8409_v51 = vsub.f32 %v401_v22, %v449_v25  ;;  %v8411_v52 = vsub.f32 %v404_v30, %v452_v32  ;;  %v311_v32 = vld [vmem:[%s10119_s2 + $0x18] sm:$0xff] }
  0x28   : > { %v8413_v53 = vsub.f32 %v407_v31, %v455_v33  ;;  %v8415_v54 = vsub.f32 %v410_v37, %v458_v39  ;;  %v8417_v55 = vsub.f32 %v413_v38, %v461_v40  ;;  %v8421_v56 = vpack.c.bf16 %v8401_v47, %v8399_v46  ;;  %p8176_p2 = por %p8175_p1, %p8174_p0 }
  0x29   : > { %v8425_v57 = vpack.c.bf16 %v8405_v49, %v8403_v48  ;;  %v8430_v58 = vpack.c.bf16 %v8409_v51, %v8407_v50  ;;  %v464_v61 = vand.u32 4294901760, %v416_v43  ;;  %v467_v62 = vand.u32 4294901760, %v419_v45 }
  0x2a   : > { %v8434_v59 = vpack.c.bf16 %v8413_v53, %v8411_v52  ;;  %v8438_v60 = vpack.c.bf16 %v8417_v55, %v8415_v54  ;;  %v422_v4 = vsel %vm372_vm0, %v332_v63, 0  ;;  %v425_v5 = vsel %vm372_vm0, %v333_v0, 0  ;;  %p8177_p3 = pnand %p8176_p2, %p8170_p13 }
  0x2b   : > { %v8443_v1 = vpack.c.bf16 %v467_v62, %v464_v61  ;;  %v8447_v6 = vsub.f32 %v416_v43, %v464_v61  ;;  %v8449_v7 = vsub.f32 %v419_v45, %v467_v62  ;;  %v470_v9 = vand.u32 4294901760, %v422_v4 }
  0x2c   : > { %v473_v10 = vand.u32 4294901760, %v425_v5  ;;  %v428_v17 = vsel %vm372_vm0, %v334_v12, 0  ;;  %v431_v18 = vsel %vm372_vm0, %v335_v13, 0  ;;  %v377_v23 = vsel %vm372_vm0, %v309_v15, 0 }
  0x2d   : > { %7098 = vmatpush3.bf16.xpose.msra.mxu0 %v8365_v20  ;;  %v8454_v8 = vpack.c.bf16 %v8449_v7, %v8447_v6  ;;  %v8469_v21 = vsub.f32 %v422_v4, %v470_v9  ;;  %v380_v24 = vsel %vm372_vm0, %v310_v16, 0  ;;  %v476_v26 = vand.u32 4294901760, %v428_v17 }
  0x2e   : > { %7100 = vmatprep.subr.bf16.mxu0 %v8378_v29  ;;  %v8459_v14 = vpack.c.bf16 %v473_v10, %v470_v9  ;;  %v8471_v22 = vsub.f32 %v425_v5, %v473_v10  ;;  %v479_v27 = vand.u32 4294901760, %v431_v18  ;;  %v10146_v30 = vand.u32 4294901760, %v8399_v46 }
  0x2f   : > { %v10144_v31 = vand.u32 4294901760, %v8401_v47  ;;  %v8486_v33 = vand.u32 4294901760, %v377_v23  ;;  %v8488_v34 = vand.u32 4294901760, %v380_v24  ;;  %v383_v35 = vsel %vm372_vm0, %v311_v32, 0 }
  0x30   : > { %v8478_v25 = vpack.c.bf16 %v8471_v22, %v8469_v21  ;;  %v8491_v37 = vpack.c.bf16 %v479_v27, %v476_v26  ;;  %v558_v38 = vsub.f32 %v8399_v46, %v10146_v30  ;;  %v8499_v40 = vsub.f32 %v428_v17, %v476_v26 }
  0x31   : > { %v565_v39 = vsub.f32 %v8401_v47, %v10144_v31  ;;  %v8501_v41 = vsub.f32 %v431_v18, %v479_v27  ;;  %v8504_v42 = vsub.f32 %v377_v23, %v8486_v33  ;;  %v8506_v43 = vand.u32 4294901760, %v383_v35 }
  0x32   : > { %v8510_v45 = vsub.f32 %v380_v24, %v8488_v34  ;;  %v559_v62 = vand.u32 4294901760, %v558_v38  ;;  %v10142_v0 = vand.u32 4294901760, %v8403_v48  ;;  %v10127_v4 = vand.u32 4294901760, %v8405_v49 }
  0x33   : > { %10257 = vst [vmem:[#allocation8_spill] sm:$0xff] %v8504_v42  ;;  %10258 = vst [vmem:[#allocation9_spill] sm:$0xff] %v8506_v43  ;;  %v8514_v61 = vpack.c.bf16 %v8501_v41, %v8499_v40  ;;  %v566_v63 = vand.u32 4294901760, %v565_v39  ;;  %v8520_v5 = vand.u32 4294901760, %v8504_v42  ;;  %v8523_v9 = vsub.f32 %v383_v35, %v8506_v43 }
  0x34   : > { %10259 = vst [vmem:[#allocation10_spill] sm:$0xff] %v8510_v45  ;;  %v8526_v10 = vand.u32 4294901760, %v8510_v45  ;;  %v572_v13 = vsub.f32 %v8403_v48, %v10142_v0  ;;  %v579_v15 = vsub.f32 %v8405_v49, %v10127_v4  ;;  %v10126_v26 = vand.u32 4294901760, %v8407_v50 }
  0x35   : > { %7102 = vmatpush3.bf16.xpose.msra.mxu0 %v8378_v29  ;;  %10260 = vst [vmem:[#allocation11_spill] sm:$0xff] %v8520_v5  ;;  %10261 = vst [vmem:[#allocation12_spill] sm:$0xff] %v8523_v9  ;;  %v7123_v12 = vpack.c.bf16 %v566_v63, %v559_v62  ;;  %v527_v16 = vsub.f32 %v8504_v42, %v8520_v5  ;;  %v8537_v17 = vand.u32 4294901760, %v8523_v9  ;;  %v10125_v27 = vand.u32 4294901760, %v8409_v51 }
  0x36   : > { %7104 = vmatprep.subr.bf16.mxu0 %v8387_v36  ;;  %10262 = vst [vmem:[#allocation13_spill] sm:$0xff] %v8526_v10  ;;  %v537_v18 = vsub.f32 %v8510_v45, %v8526_v10  ;;  %v573_v23 = vand.u32 4294901760, %v572_v13  ;;  %v580_v24 = vand.u32 4294901760, %v579_v15  ;;  %v586_v62 = vsub.f32 %v8407_v50, %v10126_v26 }
  0x37   : > { %10263 = vst [vmem:[#allocation14_spill] sm:$0xff] %v8537_v17  ;;  %v8544_v32 = vand.u32 4294901760, %v527_v16  ;;  %v547_v35 = vsub.f32 %v8523_v9, %v8537_v17  ;;  %v593_v63 = vsub.f32 %v8409_v51, %v10125_v27  ;;  %v10131_v27 = vand.u32 4294901760, %v8415_v54 }
  0x38   : > { %v8548_v38 = vand.u32 4294901760, %v537_v18  ;;  %v7127_v39 = vpack.c.bf16 %v580_v24, %v573_v23  ;;  %v587_v15 = vand.u32 4294901760, %v586_v62  ;;  %v10129_v18 = vand.u32 4294901760, %v8411_v52 }
  0x39   : > { %v8557_v13 = vand.u32 4294901760, %v547_v35  ;;  %v594_v16 = vand.u32 4294901760, %v593_v63  ;;  %v10128_v23 = vand.u32 4294901760, %v8413_v53  ;;  %v10130_v26 = vand.u32 4294901760, %v8417_v55 }
  0x3a   : > { %v600_v35 = vsub.f32 %v8411_v52, %v10129_v18 }
  0x3b   : > { %10264 = vst [vmem:[#allocation15_spill] sm:$0xff] %v8557_v13  ;;  %v7131_v24 = vpack.c.bf16 %v594_v16, %v587_v15  ;;  %v614_v15 = vsub.f32 %v8415_v54, %v10131_v27  ;;  %v621_v16 = vsub.f32 %v8417_v55, %v10130_v26 }
  0x3c   : > { %v601_v62 = vand.u32 4294901760, %v600_v35  ;;  %v10133_v35 = vand.u32 4294901760, %v8447_v6 }
  0x3d   : > { %7106 = vmatpush3.bf16.xpose.msra.mxu0 %v8387_v36 }
  0x3e   : > { %7108 = vmatprep.subr.bf16.mxu0 %v8396_v44 }
  0x45   : > { %7110 = vmatpush3.bf16.xpose.msra.mxu0 %v8396_v44 }
  0x46   : > { %7112 = vmatprep.subr.bf16.mxu0 %v8443_v1 }
  0x4d   : > { %7114 = vmatpush3.bf16.xpose.msra.mxu0 %v8443_v1 }
  0x4e   : > { %7116 = vmatprep.subr.bf16.mxu0 %v8459_v14 }
  0x55   : > { %7118 = vmatpush3.bf16.xpose.msra.mxu0 %v8459_v14 }
  0x56   : > { %7120 = vmatprep.subr.bf16.mxu0 %v8491_v37 }
  0x5d   : > { %7122 = vmatpush3.bf16.xpose.msra.mxu0 %v8491_v37 }
  0x5e   : > { %7124 = vmatprep.subr.bf16.mxu0 %v7123_v12 }
  0x64   : > { %6044 = vmatmul.mubr.f32.vlgmr.msra.gmra.mrb[0].mxu0 %v8544_v32 }
  0x65   : > { %7126 = vmatpush3.bf16.xpose.msra.mxu0 %v7123_v12  ;;  %6046 = vmatprep.mubr.f32.mxu0 %v8548_v38  ;;  %v607_v12 = vsub.f32 %v8413_v53, %v10128_v23  ;;  %v615_v23 = vand.u32 4294901760, %v614_v15  ;;  %v10135_v15 = vand.u32 4294901760, %v8469_v21 }
  0x66   : > { %7128 = vmatprep.subr.bf16.mxu0 %v7127_v39 }
  0x67   : > { %v608_v63 = vand.u32 4294901760, %v607_v12  ;;  %v10132_v12 = vand.u32 4294901760, %v8449_v7 }
  0x68   : > { %6047 = vmatmul.mubr.f32.gmra.mrb[2].mxu0 %v8557_v13 }
  0x69   : > { %6081 = vmatprep.mubr.f32.mxu0 %v8334_v2  ;;  %v7135_v4 = vpack.c.bf16 %v608_v63, %v601_v62  ;;  %v628_v62 = vsub.f32 %v8447_v6, %v10133_v35  ;;  %v635_v63 = vsub.f32 %v8449_v7, %v10132_v12 }
  0x6b   : > { %v629_v26 = vand.u32 4294901760, %v628_v62  ;;  %v10141_v62 = vand.u32 4294901760, %v8499_v40 }
  0x6d   : > { %7130 = vmatpush3.bf16.xpose.msra.mxu0 %v7127_v39  ;;  %v622_v39 = vand.u32 4294901760, %v621_v16  ;;  %v10134_v16 = vand.u32 4294901760, %v8471_v22 }
  0x6e   : > { %7132 = vmatprep.subr.bf16.mxu0 %v7131_v24 }
  0x6f   : > { %v7139_v18 = vpack.c.bf16 %v622_v39, %v615_v23  ;;  %v642_v23 = vsub.f32 %v8469_v21, %v10135_v15  ;;  %v649_v39 = vsub.f32 %v8471_v22, %v10134_v16 }
  0x71   : > { %v643_v12 = vand.u32 4294901760, %v642_v23  ;;  %v338_v23 = vld [vmem:[%s8636_s15 + $0x10] sm:$0xff] }
  0x75   : > { %7134 = vmatpush3.bf16.xpose.msra.mxu0 %v7131_v24  ;;  %v636_v24 = vand.u32 4294901760, %v635_v63  ;;  %v10139_v63 = vand.u32 4294901760, %v8501_v41 }
  0x76   : > { %7136 = vmatprep.subr.bf16.mxu0 %v7135_v4 }
  0x77   : > { %v7143_v27 = vpack.c.bf16 %v636_v24, %v629_v26  ;;  %v656_v26 = vsub.f32 %v8499_v40, %v10141_v62  ;;  %v663_v24 = vsub.f32 %v8501_v41, %v10139_v63 }
  0x79   : > { %v657_v16 = vand.u32 4294901760, %v656_v26 }
  0x7d   : > { %7138 = vmatpush3.bf16.xpose.msra.mxu0 %v7135_v4  ;;  %v650_v4 = vand.u32 4294901760, %v649_v39  ;;  %v339_v39 = vld [vmem:[%s8636_s15 + $0x18] sm:$0xff] }
  0x7e   : > { %7140 = vmatprep.subr.bf16.mxu0 %v7139_v18  ;;  %v1312_v26 = vsel %vm1289_vm1, %v339_v39, 0  ;;  %v340_v39 = vld [vmem:[%s8636_s15 + $0x20] sm:$0xff] }
  0x7f   : > { %v7147_v35 = vpack.c.bf16 %v650_v4, %v643_v12  ;;  %v1309_v4 = vsel %vm1289_vm1, %v338_v23, 0 }
  0x85   : > { %7142 = vmatpush3.bf16.xpose.msra.mxu0 %v7139_v18  ;;  %v664_v18 = vand.u32 4294901760, %v663_v24 }
  0x86   : > { %7144 = vmatprep.subr.bf16.mxu0 %v7143_v27 }
  0x87   : > { %v7151_v15 = vpack.c.bf16 %v664_v18, %v657_v16 }
  0x8d   : > { %7146 = vmatpush3.bf16.xpose.msra.mxu0 %v7143_v27 }
  0x8e   : > { %7148 = vmatprep.subr.bf16.mxu0 %v7147_v35 }
  0x95   : > { %7150 = vmatpush3.bf16.xpose.msra.mxu0 %v7147_v35 }
  0x96   : > { %7152 = vmatprep.subr.bf16.mxu0 %v7151_v15 }
  0x9d   : > { %7154 = vmatpush3.bf16.xpose.msra.mxu0 %v7151_v15 }
  0x9e   : > { %7156 = vmatprep.subr.bf16.mxu0 %v8421_v56 }
  0xa4   : > { %6082 = vmatmul.mubr.f32.vlgmr.msra.gmra.mrb[0].mxu0 %v8486_v33 }
  0xa5   : > { %7158 = vmatpush3.bf16.xpose.msra.mxu0 %v8421_v56  ;;  %6084 = vmatprep.mubr.f32.mxu0 %v8488_v34  ;;  %v336_v56 = vld [vmem:[%s8636_s15] sm:$0xff] }
  0xa6   : > { %7160 = vmatprep.subr.bf16.mxu0 %v8425_v57 }
  0xa8   : > { %6085 = vmatmul.mubr.f32.gmra.mrb[2].mxu0 %v8506_v43 }
  0xa9   : > { %6119 = vmatprep.mubr.f32.mxu0 %v8340_v3  ;;  %v10268_v3 = vand.u32 4294901760, %v8405_v49  ;;  %v349_v49 = vld [vmem:[%s8636_s15 + $0x68] sm:$0xff] }
  0xad   : > { %7162 = vmatpush3.bf16.xpose.msra.mxu0 %v8425_v57  ;;  %v337_v57 = vld [vmem:[%s8636_s15 + $0x8] sm:$0xff] }
  0xae   : > { %7164 = vmatprep.subr.bf16.mxu0 %v8430_v58 }
  0xb5   : > { %7166 = vmatpush3.bf16.xpose.msra.mxu0 %v8430_v58  ;;  %v1303_v58 = vsel %vm1289_vm1, %v336_v56, 0  ;;  %v1357_v56 = vand.u32 4294901760, %v1309_v4 }
  0xb6   : > { %7168 = vmatprep.subr.bf16.mxu0 %v8434_v59 }
  0xbd   : > { %7170 = vmatpush3.bf16.xpose.msra.mxu0 %v8434_v59  ;;  %v1306_v59 = vsel %vm1289_vm1, %v337_v57, 0  ;;  %v1360_v57 = vand.u32 4294901760, %v1312_v26 }
  0xbe   : > { %7172 = vmatprep.subr.bf16.mxu0 %v8438_v60 }
  0xbf   : > { %v8671_v23 = vpack.c.bf16 %v1360_v57, %v1357_v56 }
  0xc5   : > { %7174 = vmatpush3.bf16.xpose.msra.mxu0 %v8438_v60  ;;  %v1351_v60 = vand.u32 4294901760, %v1303_v58 }
  0xc6   : > { %7176 = vmatprep.subr.bf16.mxu0 %v8454_v8 }
  0xcd   : > { %7178 = vmatpush3.bf16.xpose.msra.mxu0 %v8454_v8  ;;  %v1354_v8 = vand.u32 4294901760, %v1306_v59 }
  0xce   : > { %7180 = vmatprep.subr.bf16.mxu0 %v8478_v25 }
  0xcf   : > { %v8651_v12 = vpack.c.bf16 %v1354_v8, %v1351_v60 }
  0xd5   : > { %7182 = vmatpush3.bf16.xpose.msra.mxu0 %v8478_v25  ;;  %v8644_v25 = vsub.f32 %v1303_v58, %v1351_v60  ;;  %v8666_v60 = vsub.f32 %v1312_v26, %v1360_v57  ;;  %v1315_v26 = vsel %vm1289_vm1, %v340_v39, 0 }
  0xd6   : > { %7184 = vmatprep.subr.bf16.mxu0 %v8514_v61  ;;  %v1363_v57 = vand.u32 4294901760, %v1315_v26 }
  0xd7   : > { %v10137_v27 = vand.u32 4294901760, %v8644_v25 }
  0xd9   : > { %v1475_v15 = vsub.f32 %v8644_v25, %v10137_v27 }
  0xdb   : > { %v1476_v24 = vand.u32 4294901760, %v1475_v15 }
  0xdd   : > { %7186 = vmatpush3.bf16.xpose.msra.mxu0 %v8514_v61  ;;  %v8646_v61 = vsub.f32 %v1306_v59, %v1354_v8  ;;  %v8664_v59 = vsub.f32 %v1309_v4, %v1357_v56  ;;  %v341_v4 = vld [vmem:[%s8636_s15 + $0x28] sm:$0xff] }
  0xde   : > { %7188 = vmatprep.subr.bf16.mxu0 %v8363_v19 }
  0xdf   : > { %v10136_v35 = vand.u32 4294901760, %v8646_v61  ;;  %v10138_v8 = vand.u32 4294901760, %v8664_v59 }
  0xe1   : > { %v1482_v16 = vsub.f32 %v8646_v61, %v10136_v35  ;;  %v10140_v35 = vand.u32 4294901760, %v8666_v60  ;;  %v1489_v15 = vsub.f32 %v8664_v59, %v10138_v8  ;;  %v8684_v8 = vsub.f32 %v1315_v26, %v1363_v57  ;;  %v343_v26 = vld [vmem:[%s8636_s15 + $0x38] sm:$0xff] }
  0xe3   : > { %v1483_v18 = vand.u32 4294901760, %v1482_v16  ;;  %v1496_v16 = vsub.f32 %v8666_v60, %v10140_v35  ;;  %v10143_v35 = vand.u32 4294901760, %v8684_v8 }
  0xe4   : > { %6120 = vmatmul.mubr.f32.vlgmr.msra.gmra.mrb[0].mxu0 %v8504_v42 }
  0xe5   : > { %7190 = vmatpush3.bf16.xpose.msra.mxu0 %v8363_v19  ;;  %6122 = vmatprep.mubr.f32.mxu0 %v8510_v45  ;;  %v7315_v58 = vpack.c.bf16 %v1483_v18, %v1476_v24  ;;  %v1318_v24 = vsel %vm1289_vm1, %v341_v4, 0  ;;  %v1490_v18 = vand.u32 4294901760, %v1489_v15  ;;  %v1497_v56 = vand.u32 4294901760, %v1496_v16  ;;  %v342_v4 = vld [vmem:[%s8636_s15 + $0x30] sm:$0xff] }
  0xe6   : > { %7192 = vmatprep.subr.bf16.mxu0 %v8365_v20  ;;  %v1503_v15 = vsub.f32 %v8684_v8, %v10143_v35  ;;  %v10266_v45 = vand.u32 4294901760, %v8401_v47  ;;  %v346_v47 = vld [vmem:[%s8636_s15 + $0x50] sm:$0xff] }
  0xe7   : > { %7316 = vmatprep.subr.bf16.mxu1 %v7315_v58  ;;  %v7319_v27 = vpack.c.bf16 %v1497_v56, %v1490_v18 }
  0xe8   : > { %6123 = vmatmul.mubr.f32.gmra.mrb[2].mxu0 %v8523_v9  ;;  %7318 = vmatpush3.bf16.xpose.msra.mxu1 %v7315_v58  ;;  %v1366_v58 = vand.u32 4294901760, %v1318_v24  ;;  %v1504_v18 = vand.u32 4294901760, %v1503_v15 }
  0xe9   : > { %6157 = vmatprep.mubr.f32.mxu0 %v8358_v11  ;;  %7320 = vmatprep.subr.bf16.mxu1 %v7319_v27 }
  0xea   : > { %v8686_v63 = vsub.f32 %v1318_v24, %v1366_v58  ;;  %v8691_v39 = vpack.c.bf16 %v1366_v58, %v1363_v57  ;;  %v1321_v24 = vsel %vm1289_vm1, %v342_v4, 0 }
  0xeb   : > { %v1369_v57 = vand.u32 4294901760, %v1321_v24 }
  0xec   : > { %v10145_v62 = vand.u32 4294901760, %v8686_v63 }
  0xed   : > { %7194 = vmatpush3.bf16.xpose.msra.mxu0 %v8365_v20  ;;  %v8704_v35 = vsub.f32 %v1321_v24, %v1369_v57  ;;  %v345_v24 = vld [vmem:[%s8636_s15 + $0x48] sm:$0xff] }
  0xee   : > { %7196 = vmatprep.subr.bf16.mxu0 %v8378_v29  ;;  %v1510_v16 = vsub.f32 %v8686_v63, %v10145_v62 }
  0xef   : > { %v10148_v62 = vand.u32 4294901760, %v8704_v35 }
  0xf0   : > { %7322 = vmatpush3.bf16.xpose.msra.mxu1 %v7319_v27  ;;  %v1324_v27 = vsel %vm1289_vm1, %v343_v26, 0  ;;  %v1511_v56 = vand.u32 4294901760, %v1510_v16  ;;  %v344_v26 = vld [vmem:[%s8636_s15 + $0x40] sm:$0xff] }
  0xf1   : > { %v1372_v58 = vand.u32 4294901760, %v1324_v27  ;;  %v1517_v15 = vsub.f32 %v8704_v35, %v10148_v62 }
  0xf2   : > { %v7323_v0 = vpack.c.bf16 %v1511_v56, %v1504_v18 }
  0xf3   : > { %v8706_v31 = vsub.f32 %v1324_v27, %v1372_v58  ;;  %v8711_v4 = vpack.c.bf16 %v1372_v58, %v1369_v57  ;;  %v1327_v27 = vsel %vm1289_vm1, %v344_v26, 0  ;;  %v1518_v18 = vand.u32 4294901760, %v1517_v15 }
  0xf4   : > { %7324 = vmatprep.subr.bf16.mxu1 %v7323_v0  ;;  %v1375_v57 = vand.u32 4294901760, %v1327_v27 }
  0xf5   : > { %7198 = vmatpush3.bf16.xpose.msra.mxu0 %v8378_v29  ;;  %v10150_v30 = vand.u32 4294901760, %v8706_v31 }
  0xf6   : > { %7200 = vmatprep.subr.bf16.mxu0 %v8387_v36  ;;  %v8724_v62 = vsub.f32 %v1327_v27, %v1375_v57 }
  0xf7   : > { %v1524_v16 = vsub.f32 %v8706_v31, %v10150_v30  ;;  %v10265_v30 = vand.u32 4294901760, %v8399_v46 }
  0xf8   : > { %7326 = vmatpush3.bf16.xpose.msra.mxu1 %v7323_v0  ;;  %v1330_v0 = vsel %vm1289_vm1, %v345_v24, 0  ;;  %v10153_v26 = vand.u32 4294901760, %v8724_v62 }
  0xf9   : > { %v1525_v56 = vand.u32 4294901760, %v1524_v16  ;;  %v1378_v58 = vand.u32 4294901760, %v1330_v0  ;;  %v7219_v42 = vpack.c.bf16 %v10266_v45, %v10265_v30  ;;  %v347_v30 = vld [vmem:[%s8636_s15 + $0x58] sm:$0xff]  ;;  %v1333_v45 = vsel %vm1289_vm1, %v346_v47, 0 }
  0xfa   : > { %v1531_v24 = vsub.f32 %v8724_v62, %v10153_v26  ;;  %v1336_v27 = vsel %vm1289_vm1, %v347_v30, 0  ;;  %v1342_v30 = vsel %vm1289_vm1, %v349_v49, 0 }
  0xfb   : > { %v7327_v11 = vpack.c.bf16 %v1525_v56, %v1518_v18  ;;  %v8726_v9 = vsub.f32 %v1330_v0, %v1378_v58  ;;  %v8735_v16 = vpack.c.bf16 %v1378_v58, %v1375_v57  ;;  %v1381_v18 = vand.u32 4294901760, %v1333_v45 }
  0xfc   : > { %v1384_v56 = vand.u32 4294901760, %v1336_v27 }
  0xfd   : > { %7202 = vmatpush3.bf16.xpose.msra.mxu0 %v8387_v36  ;;  %7328 = vmatprep.subr.bf16.mxu1 %v7327_v11  ;;  %v10154_v15 = vand.u32 4294901760, %v8726_v9  ;;  %v8747_v58 = vsub.f32 %v1333_v45, %v1381_v18 }
  0xfe   : > { %7204 = vmatprep.subr.bf16.mxu0 %v8396_v44  ;;  %v8749_v26 = vsub.f32 %v1336_v27, %v1384_v56 }
  0xff   : > { %v1538_v46 = vsub.f32 %v8726_v9, %v10154_v15  ;;  %v10267_v15 = vand.u32 4294901760, %v8403_v48  ;;  %v10158_v47 = vand.u32 4294901760, %v8747_v58 }
 0x100   : > { %7330 = vmatpush3.bf16.xpose.msra.mxu1 %v7327_v11  ;;  %v1532_v11 = vand.u32 4294901760, %v1531_v24  ;;  %v10157_v24 = vand.u32 4294901760, %v8749_v26 }
 0x101   : > { %v1539_v0 = vand.u32 4294901760, %v1538_v46  ;;  %v7223_v13 = vpack.c.bf16 %v10268_v3, %v10267_v15  ;;  %v1545_v46 = vsub.f32 %v8747_v58, %v10158_v47  ;;  %v348_v3 = vld [vmem:[%s8636_s15 + $0x60] sm:$0xff] }
 0x102   : > { %v1552_v48 = vsub.f32 %v8749_v26, %v10157_v24  ;;  %v1339_v15 = vsel %vm1289_vm1, %v348_v3, 0  ;;  %v10269_v3 = vand.u32 4294901760, %v8407_v50 }
 0x103   : > { %v7331_v57 = vpack.c.bf16 %v1539_v0, %v1532_v11  ;;  %v1546_v45 = vand.u32 4294901760, %v1545_v46  ;;  %v1390_v11 = vand.u32 4294901760, %v1342_v30  ;;  %v8770_v0 = vpack.c.bf16 %v1384_v56, %v1381_v18 }
 0x104   : > { %v1553_v27 = vand.u32 4294901760, %v1552_v48  ;;  %v10270_v46 = vand.u32 4294901760, %v8409_v51  ;;  %v351_v51 = vld [vmem:[%s8636_s15 + $0x78] sm:$0xff] }
 0x105   : > { %7206 = vmatpush3.bf16.xpose.msra.mxu0 %v8396_v44  ;;  %7332 = vmatprep.subr.bf16.mxu1 %v7331_v57  ;;  %v8775_v47 = vsub.f32 %v1342_v30, %v1390_v11 }
 0x106   : > { %7208 = vmatprep.subr.bf16.mxu0 %v8443_v1  ;;  %v7227_v48 = vpack.c.bf16 %v10270_v46, %v10269_v3 }
 0x108   : > { %7334 = vmatpush3.bf16.xpose.msra.mxu1 %v7331_v57  ;;  %v7335_v57 = vpack.c.bf16 %v1553_v27, %v1546_v45  ;;  %v1348_v45 = vsel %vm1289_vm1, %v351_v51, 0  ;;  %v10273_v51 = vand.u32 4294901760, %v8415_v54  ;;  %v317_v54 = vld [vmem:[%s10121_s4 + $0x8] sm:$0xff] }
 0x10a   : > { %7336 = vmatprep.subr.bf16.mxu1 %v7335_v57 }
 0x10d   : > { %7210 = vmatpush3.bf16.xpose.msra.mxu0 %v8443_v1 }
 0x10e   : > { %7212 = vmatprep.subr.bf16.mxu0 %v8459_v14 }
 0x110   : > { %7338 = vmatpush3.bf16.xpose.msra.mxu1 %v7335_v57 }
 0x115   : > { %7214 = vmatpush3.bf16.xpose.msra.mxu0 %v8459_v14 }
 0x116   : > { %7216 = vmatprep.subr.bf16.mxu0 %v8491_v37 }
 0x11d   : > { %7218 = vmatpush3.bf16.xpose.msra.mxu0 %v8491_v37 }
 0x11e   : > { %7220 = vmatprep.subr.bf16.mxu0 %v7219_v42 }
 0x124   : > { %6158 = vmatmul.mubr.f32.vlgmr.msra.gmra.mrb[0].mxu0 %v8520_v5 }
 0x125   : > { %7222 = vmatpush3.bf16.xpose.msra.mxu0 %v7219_v42  ;;  %6160 = vmatprep.mubr.f32.mxu0 %v8526_v10  ;;  %v1387_v42 = vand.u32 4294901760, %v1339_v15 }
 0x126   : > { %7224 = vmatprep.subr.bf16.mxu0 %v7223_v13 }
 0x127   : > { %v8773_v24 = vsub.f32 %v1339_v15, %v1387_v42  ;;  %v8783_v18 = vpack.c.bf16 %v1390_v11, %v1387_v42  ;;  %v350_v15 = vld [vmem:[%s8636_s15 + $0x70] sm:$0xff]  ;;  %v1396_v42 = vand.u32 4294901760, %v1348_v45 }
 0x128   : > { %6161 = vmatmul.mubr.f32.gmra.mrb[2].mxu0 %v8537_v17  ;;  %v10161_v17 = vand.u32 4294901760, %v8775_v47  ;;  %v1345_v30 = vsel %vm1289_vm1, %v350_v15, 0 }
 0x129   : > { %6195 = vmatprep.mubr.f32.mxu0 %v8334_v2  ;;  %v10160_v49 = vand.u32 4294901760, %v8773_v24  ;;  %v8797_v46 = vsub.f32 %v1348_v45, %v1396_v42 }
 0x12a   : > { %v1566_v50 = vsub.f32 %v8775_v47, %v10161_v17  ;;  %v10272_v17 = vand.u32 4294901760, %v8413_v53 }
 0x12b   : > { %v1559_v56 = vsub.f32 %v8773_v24, %v10160_v49  ;;  %v10271_v49 = vand.u32 4294901760, %v8411_v52  ;;  %v1579_v15 = vand.u32 4294901760, %v8797_v46 }
 0x12c   : > { %v1567_v57 = vand.u32 4294901760, %v1566_v50 }
 0x12d   : > { %7226 = vmatpush3.bf16.xpose.msra.mxu0 %v7223_v13  ;;  %v1560_v27 = vand.u32 4294901760, %v1559_v56  ;;  %v1393_v13 = vand.u32 4294901760, %v1345_v30  ;;  %v7231_v10 = vpack.c.bf16 %v10272_v17, %v10271_v49  ;;  %v1580_v52 = vsub.f32 %v8797_v46, %v1579_v15 }
 0x12e   : > { %7228 = vmatprep.subr.bf16.mxu0 %v7227_v48 }
 0x12f   : > { %v7339_v11 = vpack.c.bf16 %v1567_v57, %v1560_v27  ;;  %v8795_v3 = vsub.f32 %v1345_v30, %v1393_v13  ;;  %v8805_v56 = vpack.c.bf16 %v1396_v42, %v1393_v13  ;;  %v1581_v17 = vand.u32 4294901760, %v1580_v52 }
 0x130   : > { %v10274_v30 = vand.u32 4294901760, %v8417_v55  ;;  %v7347_v27 = vpack.c.bf16 %v8646_v61, %v8644_v25  ;;  %v10277_v42 = vand.u32 4294901760, %v8447_v6  ;;  %v7351_v52 = vpack.c.bf16 %v8666_v60, %v8664_v59 }
 0x131   : > { %7340 = vmatprep.subr.bf16.mxu1 %v7339_v11  ;;  %v1572_v5 = vand.u32 4294901760, %v8795_v3  ;;  %v7355_v6 = vpack.c.bf16 %v8686_v63, %v8684_v8 }
 0x132   : > { %7342 = vmatpush3.bf16.xpose.msra.mxu1 %v7339_v11  ;;  %v7235_v45 = vpack.c.bf16 %v10274_v30, %v10273_v51  ;;  %v10278_v11 = vand.u32 4294901760, %v8449_v7  ;;  %v10281_v7 = vand.u32 4294901760, %v8499_v40  ;;  %v10282_v51 = vand.u32 4294901760, %v8501_v41 }
 0x133   : > { %v1573_v50 = vsub.f32 %v8795_v3, %v1572_v5  ;;  %v7367_v40 = vpack.c.bf16 %v8749_v26, %v8747_v58  ;;  %v7371_v41 = vpack.c.bf16 %v8775_v47, %v8773_v24 }
 0x134   : > { %v7247_v30 = vpack.c.bf16 %v10282_v51, %v10281_v7  ;;  %v10291_v7 = vand.u32 4294901760, %v8646_v61  ;;  %v10295_v61 = vand.u32 4294901760, %v8666_v60  ;;  %v10298_v60 = vand.u32 4294901760, %v8686_v63 }
 0x135   : > { %7230 = vmatpush3.bf16.xpose.msra.mxu0 %v7227_v48  ;;  %v1574_v53 = vand.u32 4294901760, %v1573_v50  ;;  %v316_v48 = vld [vmem:[%s10121_s4] sm:$0xff]  ;;  %v7239_v50 = vpack.c.bf16 %v10278_v11, %v10277_v42  ;;  %v319_v11 = vld [vmem:[%s10121_s4 + $0x18] sm:$0xff]  ;;  %v10300_v63 = vand.u32 4294901760, %v8706_v31 }
 0x136   : > { %7232 = vmatprep.subr.bf16.mxu0 %v7231_v10  ;;  %v8823_v57 = vsel %vm1289_vm1, %v316_v48, 0  ;;  %v8887_v48 = vld [vmem:[%s10122_s5 + $0x8] sm:$0xff] }
 0x137   : > { %v7343_v49 = vpack.c.bf16 %v1581_v17, %v1574_v53  ;;  %v8829_v55 = vand.u32 4294901760, %v8823_v57  ;;  %v10279_v53 = vand.u32 4294901760, %v8469_v21  ;;  %v10280_v17 = vand.u32 4294901760, %v8471_v22 }
 0x138   : > { %v7359_v21 = vpack.c.bf16 %v8706_v31, %v8704_v35  ;;  %v7363_v22 = vpack.c.bf16 %v8726_v9, %v8724_v62 }
 0x139   : > { %7344 = vmatprep.subr.bf16.mxu1 %v7343_v49  ;;  %10275 = vst [vmem:[#allocation16_spill] sm:$0xff] %v8829_v55  ;;  %6309 = vmatprep.mubr.f32.mxu1 %v8829_v55 }
 0x13a   : > { %7346 = vmatpush3.bf16.xpose.msra.mxu1 %v7343_v49  ;;  %v7243_v49 = vpack.c.bf16 %v10280_v17, %v10279_v53  ;;  %v8917_v17 = vsub.f32 %v8823_v57, %v8829_v55 }
 0x13b   : > { %7348 = vmatprep.subr.bf16.mxu1 %v7347_v27 }
 0x13c   : > { %10285 = vst [vmem:[#allocation20_spill] sm:$0xff] %v8917_v17 }
 0x13d   : > { %7234 = vmatpush3.bf16.xpose.msra.mxu0 %v7231_v10  ;;  %v8832_v10 = vsel %vm1289_vm1, %v317_v54, 0  ;;  %v318_v54 = vld [vmem:[%s10121_s4 + $0x10] sm:$0xff] }
 0x13e   : > { %7236 = vmatprep.subr.bf16.mxu0 %v7235_v45  ;;  %v8835_v13 = vand.u32 4294901760, %v8832_v10  ;;  %v1297_v42 = vsel %vm1289_vm1, %v318_v54, 0 }
 0x140   : > { %10276 = vst [vmem:[#allocation17_spill] sm:$0xff] %v8835_v13 }
 0x141   : > { %6310 = vmatmul.mubr.f32.vlgmr.msra.gmra.mrb[0].mxu1 %v8835_v13 }
 0x142   : > { %7350 = vmatpush3.bf16.xpose.msra.mxu1 %v7347_v27  ;;  %v7375_v27 = vpack.c.bf16 %v8797_v46, %v8795_v3  ;;  %v5408_v46 = vld [vmem:[%s8348_s21 + $0xe0] sm:$0xff] }
 0x143   : > { %7352 = vmatprep.subr.bf16.mxu1 %v7351_v52 }
 0x145   : > { %7238 = vmatpush3.bf16.xpose.msra.mxu0 %v7235_v45  ;;  %v8231_v45 = vmov 0  }
 0x146   : > { %7240 = vmatprep.subr.bf16.mxu0 %v7239_v50  ;;  %8137 = vset.pattern.permute.xlu0 %v8231_v45 }
 0x147   : > { %8138 = vset.pattern.permute.xlu1 %v8231_v45  ;;  %v5397_v45 = vld [vmem:[%s8348_s21 + $0x88] sm:$0xff] }
 0x14a   : > { %7354 = vmatpush3.bf16.xpose.msra.mxu1 %v7351_v52  ;;  %v1300_v52 = vsel %vm1289_vm1, %v319_v11, 0 }
 0x14b   : > { %7356 = vmatprep.subr.bf16.mxu1 %v7355_v6  ;;  %v8913_v53 = vand.u32 4294901760, %v1300_v52 }
 0x14d   : > { %7242 = vmatpush3.bf16.xpose.msra.mxu0 %v7239_v50  ;;  %v8908_v50 = vand.u32 4294901760, %v1297_v42  ;;  %10284 = vst [vmem:[#allocation19_spill] sm:$0xff] %v8913_v53  ;;  %v8943_v57 = vsub.f32 %v1300_v52, %v8913_v53  ;;  %v5398_v52 = vld [vmem:[%s8348_s21 + $0x90] sm:$0xff] }
 0x14e   : > { %7244 = vmatprep.subr.bf16.mxu0 %v7243_v49  ;;  %v9040_v31 = vsel %vm372_vm0, %v5398_v52, 0  ;;  %v10308_v52 = vand.u32 4294901760, %v8749_v26 }
 0x14f   : > { %10283 = vst [vmem:[#allocation18_spill] sm:$0xff] %v8908_v50  ;;  %6312 = vmatprep.mubr.f32.mxu1 %v8908_v50  ;;  %10288 = vst [vmem:[#allocation23_spill] sm:$0xff] %v8943_v57 }
 0x150   : > { %6313 = vmatmul.mubr.f32.gmra.mrb[2].mxu1 %v8913_v53 }
 0x151   : > { %6347 = vmatprep.mubr.f32.mxu1 %v8917_v17 }
 0x152   : > { %7358 = vmatpush3.bf16.xpose.msra.mxu1 %v7355_v6  ;;  %v10290_v6 = vand.u32 4294901760, %v8644_v25  ;;  %v10294_v25 = vand.u32 4294901760, %v8664_v59  ;;  %v10297_v59 = vand.u32 4294901760, %v8684_v8  ;;  %v10299_v8 = vand.u32 4294901760, %v8704_v35 }
 0x153   : > { %7360 = vmatprep.subr.bf16.mxu1 %v7359_v21 }
 0x154   : > { %v7411_v51 = vpack.c.bf16 %v10291_v7, %v10290_v6  ;;  %v7423_v54 = vpack.c.bf16 %v10300_v63, %v10299_v8  ;;  %v10301_v7 = vand.u32 4294901760, %v8724_v62 }
 0x155   : > { %7246 = vmatpush3.bf16.xpose.msra.mxu0 %v7243_v49  ;;  %v8233_v49 = vmov 2  }
 0x156   : > { %7248 = vmatprep.subr.bf16.mxu0 %v7247_v30 }
 0x15a   : > { %7362 = vmatpush3.bf16.xpose.msra.mxu1 %v7359_v21 }
 0x15b   : > { %7364 = vmatprep.subr.bf16.mxu1 %v7363_v22 }
 0x15d   : > { %7250 = vmatpush3.bf16.xpose.msra.mxu0 %v7247_v30 }
 0x15e   : > { %7252 = vmatprep.subr.bf16.mxu0 %v8363_v19 }
 0x162   : > { %7366 = vmatpush3.bf16.xpose.msra.mxu1 %v7363_v22  ;;  %v7415_v22 = vpack.c.bf16 %v10295_v61, %v10294_v25  ;;  %v2978_v61 = vand.u32 4294901760, %v9040_v31 }
 0x163   : > { %7368 = vmatprep.subr.bf16.mxu1 %v7367_v40 }
 0x164   : > { %6196 = vmatmul.mubr.f32.vlgmr.msra.gmra.mrb[0].mxu0 %v8486_v33 }
 0x165   : > { %7254 = vmatpush3.bf16.xpose.msra.mxu0 %v8363_v19  ;;  %6198 = vmatprep.mubr.f32.mxu0 %v8488_v34  ;;  %v8874_v19 = vld [vmem:[%s10122_s5] sm:$0xff] }
 0x166   : > { %7256 = vmatprep.subr.bf16.mxu0 %v8365_v20  ;;  %354 = vperm.xlu0 %8137, %v8874_v19  }
 0x168   : > { %6199 = vmatmul.mubr.f32.gmra.mrb[2].mxu0 %v8506_v43 }
 0x169   : > { %6233 = vmatprep.mubr.f32.mxu0 %v8334_v2 }
 0x16a   : > { %7370 = vmatpush3.bf16.xpose.msra.mxu1 %v7367_v40  ;;  %359 = vperm.xlu0 %8137, %v8887_v48   ;;  %v9004_v40 = vand.u32 4294901760, %v8943_v57 }
 0x16b   : > { %7372 = vmatprep.subr.bf16.mxu1 %v7371_v41 }
 0x16c   : > { %10296 = vst [vmem:[#allocation27_spill] sm:$0xff] %v9004_v40 }
 0x16d   : > { %7258 = vmatpush3.bf16.xpose.msra.mxu0 %v8365_v20  ;;  %v8882_v20 = vld [vmem:[%s10122_s5 + $0x10] sm:$0xff] }
 0x16e   : > { %7260 = vmatprep.subr.bf16.mxu0 %v8378_v29  ;;  %364 = vperm.xlu1 %8138, %v8882_v20  }
 0x172   : > { %7374 = vmatpush3.bf16.xpose.msra.mxu1 %v7371_v41  ;;  %v7419_v41 = vpack.c.bf16 %v10298_v60, %v10297_v59  ;;  %v5400_v60 = vld [vmem:[%s8348_s21 + $0xa0] sm:$0xff] }
 0x173   : > { %7376 = vmatprep.subr.bf16.mxu1 %v7375_v27 }
 0x175   : > { %7262 = vmatpush3.bf16.xpose.msra.mxu0 %v8378_v29  ;;  %v8897_v29 = vld [vmem:[%s10122_s5 + $0x18] sm:$0xff] }
 0x176   : > { %7264 = vmatprep.subr.bf16.mxu0 %v8387_v36  ;;  %369 = vperm.xlu1 %8138, %v8897_v29  }
 0x17a   : > { %7378 = vmatpush3.bf16.xpose.msra.mxu1 %v7375_v27  ;;  %v9021_v27 = vsel %vm372_vm0, %v5397_v45, 0  ;;  %v9072_v45 = vsel %vm372_vm0, %v5400_v60, 0  ;;  %v10310_v60 = vand.u32 4294901760, %v8773_v24 }
 0x17b   : > { %7380 = vmatprep.subr.bf16.mxu1 %v8651_v12  ;;  %v2975_v11 = vand.u32 4294901760, %v9021_v27 }
 0x17d   : > { %7266 = vmatpush3.bf16.xpose.msra.mxu0 %v8387_v36  ;;  %v8924_v36 = vsub.f32 %v8832_v10, %v8835_v13 }
 0x17e   : > { %7268 = vmatprep.subr.bf16.mxu0 %v8396_v44 }
 0x17f   : > { %10286 = vst [vmem:[#allocation21_spill] sm:$0xff] %v8924_v36  ;;  %v8991_v30 = vand.u32 4294901760, %v8924_v36 }
 0x181   : > { %6348 = vmatmul.mubr.f32.vlgmr.msra.gmra.mrb[0].mxu1 %v8924_v36  ;;  %10292 = vst [vmem:[#allocation25_spill] sm:$0xff] %v8991_v30 }
 0x182   : > { %7382 = vmatpush3.bf16.xpose.msra.mxu1 %v8651_v12 }
 0x183   : > { %7384 = vmatprep.subr.bf16.mxu1 %v8671_v23 }
 0x185   : > { %7270 = vmatpush3.bf16.xpose.msra.mxu0 %v8396_v44  ;;  %v8940_v44 = vsub.f32 %v1297_v42, %v8908_v50 }
 0x186   : > { %7272 = vmatprep.subr.bf16.mxu0 %v8443_v1 }
 0x187   : > { %10287 = vst [vmem:[#allocation22_spill] sm:$0xff] %v8940_v44  ;;  %6350 = vmatprep.mubr.f32.mxu1 %v8940_v44  ;;  %v8995_v21 = vand.u32 4294901760, %v8940_v44 }
 0x188   : > { %6351 = vmatmul.mubr.f32.gmra.mrb[2].mxu1 %v8943_v57 }
 0x189   : > { %10293 = vst [vmem:[#allocation26_spill] sm:$0xff] %v8995_v21  ;;  %v1454_v6 = vsub.f32 %v8940_v44, %v8995_v21 }
 0x18a   : > { %7386 = vmatpush3.bf16.xpose.msra.mxu1 %v8671_v23 }
 0x18b   : > { %7388 = vmatprep.subr.bf16.mxu1 %v8691_v39  ;;  %v9063_v62 = vand.u32 4294901760, %v1454_v6 }
 0x18d   : > { %7274 = vmatpush3.bf16.xpose.msra.mxu0 %v8443_v1  ;;  %v8946_v1 = vand.u32 4294901760, %v8917_v17  ;;  %10304 = vst [vmem:[#allocation29_spill] sm:$0xff] %v9063_v62 }
 0x18e   : > { %7276 = vmatprep.subr.bf16.mxu0 %v8459_v14 }
 0x18f   : > { %10289 = vst [vmem:[#allocation24_spill] sm:$0xff] %v8946_v1  ;;  %6385 = vmatprep.mubr.f32.mxu1 %v8946_v1 }
 0x192   : > { %7390 = vmatpush3.bf16.xpose.msra.mxu1 %v8691_v39 }
 0x193   : > { %7392 = vmatprep.subr.bf16.mxu1 %v8711_v4 }
 0x195   : > { %7278 = vmatpush3.bf16.xpose.msra.mxu0 %v8459_v14  ;;  %v1434_v14 = vsub.f32 %v8917_v17, %v8946_v1 }
 0x196   : > { %7280 = vmatprep.subr.bf16.mxu0 %v8491_v37 }
 0x197   : > { %v8960_v10 = vand.u32 4294901760, %v1434_v14  ;;  %v5399_v14 = vld [vmem:[%s8348_s21 + $0x98] sm:$0xff] }
 0x19a   : > { %7394 = vmatpush3.bf16.xpose.msra.mxu1 %v8711_v4 }
 0x19b   : > { %7396 = vmatprep.subr.bf16.mxu1 %v8735_v16 }
 0x19d   : > { %7282 = vmatpush3.bf16.xpose.msra.mxu0 %v8491_v37  ;;  %v8232_v37 = vmov 1  }
 0x19e   : > { %7284 = vmatprep.subr.bf16.mxu0 %v8651_v12  ;;  %8140 = vset.pattern.permute.xlu1 %v8232_v37 }
 0x19f   : > { %1242 = vperm.xlu1 %8140, %v8887_v48   ;;  %8139 = vset.pattern.permute.xlu0 %v8232_v37 }
 0x1a0   : > { %1238 = vperm.xlu0 %8139, %v8874_v19  }
 0x1a2   : > { %7398 = vmatpush3.bf16.xpose.msra.mxu1 %v8735_v16 }
 0x1a3   : > { %7400 = vmatprep.subr.bf16.mxu1 %v8770_v0  ;;  %8141 = vset.pattern.permute.xlu1 %v8233_v49 }
 0x1a4   : > { %6234 = vmatmul.mubr.f32.vlgmr.msra.gmra.mrb[0].mxu0 %v8486_v33  ;;  %1258 = vperm.xlu1 %8141, %v8874_v19   ;;  %v5396_v19 = vld [vmem:[%s8348_s21 + $0x80] sm:$0xff] }
 0x1a5   : > { %7286 = vmatpush3.bf16.xpose.msra.mxu0 %v8651_v12  ;;  %6236 = vmatprep.mubr.f32.mxu0 %v8488_v34 }
 0x1a6   : > { %7288 = vmatprep.subr.bf16.mxu0 %v8671_v23  ;;  %8142 = vset.pattern.permute.xlu0 %v8233_v49 }
 0x1a7   : > { %1262 = vperm.xlu0 %8142, %v8887_v48  }
 0x1a8   : > { %6237 = vmatmul.mubr.f32.gmra.mrb[2].mxu0 %v8506_v43  ;;  %8143 = vset.pattern.permute.xlu1 %v8232_v37  ;;  %v9043_v37 = vsel %vm372_vm0, %v5399_v14, 0 }
 0x1a9   : > { %6271 = vmatprep.mubr.f32.mxu0 %v8960_v10  ;;  %1246 = vperm.xlu1 %8143, %v8882_v20  }
 0x1aa   : > { %7402 = vmatpush3.bf16.xpose.msra.mxu1 %v8770_v0 }
 0x1ab   : > { %7404 = vmatprep.subr.bf16.mxu1 %v8783_v18  ;;  %1266 = vperm.xlu0 %8142, %v8882_v20   ;;  %v9018_v20 = vsel %vm372_vm0, %v5396_v19, 0  ;;  %v1464_v19 = vsub.f32 %v8943_v57, %v9004_v40 }
 0x1ac   : > { %v2972_v42 = vand.u32 4294901760, %v9018_v20 }
 0x1ad   : > { %7290 = vmatpush3.bf16.xpose.msra.mxu0 %v8671_v23  ;;  %1250 = vperm.xlu1 %8143, %v8897_v29   ;;  %v9078_v63 = vand.u32 4294901760, %v1464_v19 }
 0x1ae   : > { %7292 = vmatprep.subr.bf16.mxu0 %v8691_v39  ;;  %v9037_v35 = vpack.c.bf16 %v2975_v11, %v2972_v42 }
 0x1af   : > { %10306 = vst [vmem:[#allocation31_spill] sm:$0xff] %v9078_v63 }
 0x1b1   : > { %8144 = vset.pattern.permute.xlu1 %v8233_v49  ;;  %v1444_v49 = vsub.f32 %v8924_v36, %v8991_v30 }
 0x1b2   : > { %7406 = vmatpush3.bf16.xpose.msra.mxu1 %v8783_v18  ;;  %1270 = vperm.xlu1 %8144, %v8897_v29  }
 0x1b3   : > { %7408 = vmatprep.subr.bf16.mxu1 %v8805_v56  ;;  %v9057_v59 = vand.u32 4294901760, %v1444_v49  ;;  %v10171_v49 = vand.u32 4294901760, %v9072_v45 }
 0x1b5   : > { %7294 = vmatpush3.bf16.xpose.msra.mxu0 %v8691_v39  ;;  %10303 = vst [vmem:[#allocation28_spill] sm:$0xff] %v9057_v59 }
 0x1b6   : > { %7296 = vmatprep.subr.bf16.mxu0 %v8711_v4 }
 0x1ba   : > { %7410 = vmatpush3.bf16.xpose.msra.mxu1 %v8805_v56 }
 0x1bb   : > { %7412 = vmatprep.subr.bf16.mxu1 %v7411_v51 }
 0x1bd   : > { %7298 = vmatpush3.bf16.xpose.msra.mxu0 %v8711_v4 }
 0x1be   : > { %7300 = vmatprep.subr.bf16.mxu0 %v8735_v16 }
 0x1c1   : > { %6386 = vmatmul.mubr.f32.vlgmr.msra.gmra.mrb[0].mxu1 %v8991_v30 }
 0x1c2   : > { %7414 = vmatpush3.bf16.xpose.msra.mxu1 %v7411_v51  ;;  %6388 = vmatprep.mubr.f32.mxu1 %v8995_v21  ;;  %v10302_v51 = vand.u32 4294901760, %v8726_v9 }
 0x1c3   : > { %7416 = vmatprep.subr.bf16.mxu1 %v7415_v22 }
 0x1c4   : > { %v7427_v25 = vpack.c.bf16 %v10302_v51, %v10301_v7  ;;  %v5402_v7 = vld [vmem:[%s8348_s21 + $0xb0] sm:$0xff]  ;;  %v5403_v51 = vld [vmem:[%s8348_s21 + $0xb8] sm:$0xff] }
 0x1c5   : > { %7302 = vmatpush3.bf16.xpose.msra.mxu0 %v8735_v16  ;;  %6389 = vmatmul.mubr.f32.gmra.mrb[2].mxu1 %v9004_v40 }
 0x1c6   : > { %7304 = vmatprep.subr.bf16.mxu0 %v8770_v0  ;;  %6423 = vmatprep.mubr.f32.mxu1 %v8829_v55 }
 0x1ca   : > { %7418 = vmatpush3.bf16.xpose.msra.mxu1 %v7415_v22  ;;  %v2981_v22 = vand.u32 4294901760, %v9043_v37 }
 0x1cb   : > { %7420 = vmatprep.subr.bf16.mxu1 %v7419_v41 }
 0x1cc   : > { %v9069_v9 = vpack.c.bf16 %v2981_v22, %v2978_v61 }
 0x1cd   : > { %7306 = vmatpush3.bf16.xpose.msra.mxu0 %v8770_v0 }
 0x1ce   : > { %7308 = vmatprep.subr.bf16.mxu0 %v8783_v18  ;;  %10305 = vst [vmem:[#allocation30_spill] sm:$0xff] %v9069_v9 }
 0x1d2   : > { %7422 = vmatpush3.bf16.xpose.msra.mxu1 %v7419_v41  ;;  %v5401_v41 = vld [vmem:[%s8348_s21 + $0xa8] sm:$0xff] }
 0x1d3   : > { %7424 = vmatprep.subr.bf16.mxu1 %v7423_v54  ;;  %v9075_v8 = vsel %vm372_vm0, %v5401_v41, 0  ;;  %v10311_v41 = vand.u32 4294901760, %v8775_v47 }
 0x1d4   : > { %v10166_v6 = vand.u32 4294901760, %v9075_v8 }
 0x1d5   : > { %7310 = vmatpush3.bf16.xpose.msra.mxu0 %v8783_v18  ;;  %v7435_v19 = vpack.c.bf16 %v10311_v41, %v10310_v60  ;;  %v5406_v41 = vld [vmem:[%s8348_s21 + $0xd0] sm:$0xff] }
 0x1d6   : > { %7312 = vmatprep.subr.bf16.mxu0 %v8805_v56  ;;  %v9097_v26 = vpack.c.bf16 %v10166_v6, %v10171_v49  ;;  %v9199_v49 = vsub.f32 %v9021_v27, %v2975_v11 }
 0x1d8   : > { %10309 = vst [vmem:[#allocation32_spill] sm:$0xff] %v9097_v26 }
 0x1da   : > { %7426 = vmatpush3.bf16.xpose.msra.mxu1 %v7423_v54  ;;  %v10307_v54 = vand.u32 4294901760, %v8747_v58  ;;  %v9100_v58 = vsel %vm372_vm0, %v5402_v7, 0  ;;  %v5405_v7 = vld [vmem:[%s8348_s21 + $0xc8] sm:$0xff] }
 0x1db   : > { %7428 = vmatprep.subr.bf16.mxu1 %v7427_v25 }
 0x1dc   : > { %v7431_v14 = vpack.c.bf16 %v10308_v52, %v10307_v54  ;;  %v5404_v52 = vld [vmem:[%s8348_s21 + $0xc0] sm:$0xff] }
 0x1dd   : > { %7314 = vmatpush3.bf16.xpose.msra.mxu0 %v8805_v56  ;;  %v9122_v47 = vsel %vm372_vm0, %v5404_v52, 0  ;;  %v7439_v52 = vpack.c.bf16 %v1579_v15, %v1572_v5  ;;  %v5409_v15 = vld [vmem:[%s8348_s21 + $0xe8] sm:$0xff] }
 0x1de   : > { %7524 = vmatprep.subr.bf16.mxu0 %v9037_v35 }
 0x1e2   : > { %7430 = vmatpush3.bf16.xpose.msra.mxu1 %v7427_v25  ;;  %v9103_v25 = vsel %vm372_vm0, %v5403_v51, 0  ;;  %v9125_v51 = vsel %vm372_vm0, %v5405_v7, 0 }
 0x1e3   : > { %7432 = vmatprep.subr.bf16.mxu1 %v7431_v14  ;;  %v10164_v54 = vand.u32 4294901760, %v9103_v25  ;;  %v10167_v60 = vand.u32 4294901760, %v9125_v51 }
 0x1e4   : > { %6272 = vmatmul.mubr.f32.vlgmr.msra.gmra.mrb[4].mxu0 %v9057_v59 }
 0x1e5   : > { %7526 = vmatpush3.bf16.xpose.msra.mxu0 %v9037_v35  ;;  %6274 = vmatprep.mubr.f32.mxu0 %v9063_v62 }
 0x1e6   : > { %7528 = vmatprep.subr.bf16.mxu0 %v9069_v9 }
 0x1e8   : > { %6275 = vmatmul.mubr.f32.gmra.mrb[6].mxu0 %v9078_v63 }
 0x1e9   : > { %6583 = vmatprep.mubr.f32.mxu0 %v8376_v28  ;;  %v10165_v28 = vand.u32 4294901760, %v9100_v58 }
 0x1ea   : > { %7434 = vmatpush3.bf16.xpose.msra.mxu1 %v7431_v14  ;;  %v10170_v14 = vand.u32 4294901760, %v9122_v47 }
 0x1eb   : > { %7436 = vmatprep.subr.bf16.mxu1 %v7435_v19  ;;  %v9119_v24 = vpack.c.bf16 %v10164_v54, %v10165_v28  ;;  %v5407_v54 = vld [vmem:[%s8348_s21 + $0xd8] sm:$0xff]  ;;  %v9144_v28 = vsel %vm372_vm0, %v5406_v41, 0  ;;  %v9166_v41 = vsel %vm372_vm0, %v5409_v15, 0 }
 0x1ec   : > { %v9141_v7 = vpack.c.bf16 %v10167_v60, %v10170_v14  ;;  %v9147_v6 = vsel %vm372_vm0, %v5407_v54, 0  ;;  %v10169_v5 = vand.u32 4294901760, %v9144_v28  ;;  %v9163_v54 = vsel %vm372_vm0, %v5408_v46, 0 }
 0x1ed   : > { %7530 = vmatpush3.bf16.xpose.msra.mxu0 %v9069_v9  ;;  %10312 = vst [vmem:[#allocation33_spill] sm:$0xff] %v9119_v24  ;;  %v10168_v3 = vand.u32 4294901760, %v9147_v6  ;;  %v10172_v60 = vand.u32 4294901760, %v9166_v41 }
 0x1ee   : > { %7532 = vmatprep.subr.bf16.mxu0 %v9097_v26 }
 0x1f2   : > { %7438 = vmatpush3.bf16.xpose.msra.mxu1 %v7435_v19  ;;  %v9160_v19 = vpack.c.bf16 %v10168_v3, %v10169_v5  ;;  %v5410_v3 = vld [vmem:[%s8348_s21 + $0xf0] sm:$0xff]  ;;  %v5411_v5 = vld [vmem:[%s8348_s21 + $0xf8] sm:$0xff] }
 0x1f3   : > { %7440 = vmatprep.subr.bf16.mxu1 %v7439_v52  ;;  %v9186_v15 = vsel %vm372_vm0, %v5410_v3, 0  ;;  %v9189_v14 = vsel %vm372_vm0, %v5411_v5, 0 }
 0x1f4   : > { %v10176_v3 = vand.u32 4294901760, %v9186_v15 }
 0x1f5   : > { %7534 = vmatpush3.bf16.xpose.msra.mxu0 %v9097_v26 }
 0x1f6   : > { %7536 = vmatprep.subr.bf16.mxu0 %v9119_v24 }
 0x1fa   : > { %7442 = vmatpush3.bf16.xpose.msra.mxu1 %v7439_v52  ;;  %v10173_v52 = vand.u32 4294901760, %v9163_v54 }
 0x1fb   : > { %7444 = vmatprep.subr.bf16.mxu1 %v8651_v12 }
 0x1fc   : > { %v9182_v46 = vpack.c.bf16 %v10172_v60, %v10173_v52  ;;  %v10174_v60 = vand.u32 4294901760, %v9189_v14  ;;  %v9230_v52 = vsub.f32 %v9043_v37, %v2981_v22  ;;  %v10314_v37 = vand.u32 4294901760, %v9075_v8 }
 0x1fd   : > { %7538 = vmatpush3.bf16.xpose.msra.mxu0 %v9119_v24 }
 0x1fe   : > { %7540 = vmatprep.subr.bf16.mxu0 %v9141_v7  ;;  %v9214_v27 = vpack.c.bf16 %v10174_v60, %v10176_v3  ;;  %v9246_v22 = vsub.f32 %v9075_v8, %v10314_v37  ;;  %v10315_v37 = vand.u32 4294901760, %v9100_v58 }
 0x201   : > { %6424 = vmatmul.mubr.f32.vlgmr.msra.gmra.mrb[0].mxu1 %v8835_v13 }
 0x202   : > { %7446 = vmatpush3.bf16.xpose.msra.mxu1 %v8651_v12  ;;  %6426 = vmatprep.mubr.f32.mxu1 %v8908_v50  ;;  %v9194_v12 = vsub.f32 %v9018_v20, %v2972_v42  ;;  %v10177_v20 = vand.u32 4294901760, %v9199_v49 }
 0x203   : > { %7448 = vmatprep.subr.bf16.mxu1 %v8671_v23 }
 0x204   : > { %v10175_v5 = vand.u32 4294901760, %v9194_v12  ;;  %v3103_v11 = vsub.f32 %v9199_v49, %v10177_v20  ;;  %v10180_v20 = vand.u32 4294901760, %v9230_v52 }
 0x205   : > { %7542 = vmatpush3.bf16.xpose.msra.mxu0 %v9141_v7  ;;  %6427 = vmatmul.mubr.f32.gmra.mrb[2].mxu1 %v8913_v53 }
 0x206   : > { %7544 = vmatprep.subr.bf16.mxu0 %v9160_v19  ;;  %6461 = vmatprep.mubr.f32.mxu1 %v8829_v55  ;;  %v3096_v42 = vsub.f32 %v9194_v12, %v10175_v5  ;;  %v3104_v5 = vand.u32 4294901760, %v3103_v11 }
 0x208   : > { %v3097_v60 = vand.u32 4294901760, %v3096_v42 }
 0x20a   : > { %7450 = vmatpush3.bf16.xpose.msra.mxu1 %v8671_v23  ;;  %v9225_v23 = vsub.f32 %v9040_v31, %v2978_v61  ;;  %v10313_v31 = vand.u32 4294901760, %v9072_v45  ;;  %v7555_v42 = vpack.c.bf16 %v3104_v5, %v3097_v60 }
 0x20b   : > { %7452 = vmatprep.subr.bf16.mxu1 %v8691_v39 }
 0x20c   : > { %v10193_v3 = vand.u32 4294901760, %v9225_v23  ;;  %v9241_v61 = vsub.f32 %v9072_v45, %v10313_v31  ;;  %v10192_v45 = vand.u32 4294901760, %v9246_v22 }
 0x20d   : > { %7546 = vmatpush3.bf16.xpose.msra.mxu0 %v9160_v19 }
 0x20e   : > { %7548 = vmatprep.subr.bf16.mxu0 %v9182_v46  ;;  %v3110_v11 = vsub.f32 %v9225_v23, %v10193_v3  ;;  %v10181_v40 = vand.u32 4294901760, %v9241_v61  ;;  %v3131_v60 = vsub.f32 %v9246_v22, %v10192_v45 }
 0x210   : > { %v3111_v31 = vand.u32 4294901760, %v3110_v11  ;;  %v3124_v8 = vsub.f32 %v9241_v61, %v10181_v40  ;;  %v10316_v11 = vand.u32 4294901760, %v9103_v25  ;;  %v3132_v40 = vand.u32 4294901760, %v3131_v60 }
 0x212   : > { %7454 = vmatpush3.bf16.xpose.msra.mxu1 %v8691_v39  ;;  %v3117_v39 = vsub.f32 %v9230_v52, %v10180_v20  ;;  %v9268_v20 = vsub.f32 %v9100_v58, %v10315_v37  ;;  %v10317_v58 = vld [vmem:[#allocation15_spill] sm:$0xff] }
 0x213   : > { %7456 = vmatprep.subr.bf16.mxu1 %v8711_v4 }
 0x214   : > { %v3118_v21 = vand.u32 4294901760, %v3117_v39  ;;  %v3125_v39 = vand.u32 4294901760, %v3124_v8 }
 0x215   : > { %7550 = vmatpush3.bf16.xpose.msra.mxu0 %v9182_v46 }
 0x216   : > { %7552 = vmatprep.subr.bf16.mxu0 %v9214_v27  ;;  %v7559_v5 = vpack.c.bf16 %v3118_v21, %v3111_v31  ;;  %v10191_v21 = vand.u32 4294901760, %v9268_v20 }
 0x21a   : > { %7458 = vmatpush3.bf16.xpose.msra.mxu1 %v8711_v4  ;;  %v9273_v4 = vsub.f32 %v9103_v25, %v10316_v11  ;;  %v7563_v25 = vpack.c.bf16 %v3132_v40, %v3125_v39 }
 0x21b   : > { %7460 = vmatprep.subr.bf16.mxu1 %v8735_v16 }
 0x21c   : > { %v10190_v31 = vand.u32 4294901760, %v9273_v4 }
 0x21d   : > { %7554 = vmatpush3.bf16.xpose.msra.mxu0 %v9214_v27 }
 0x21e   : > { %7556 = vmatprep.subr.bf16.mxu0 %v7555_v42 }
 0x222   : > { %7462 = vmatpush3.bf16.xpose.msra.mxu1 %v8735_v16  ;;  %v10319_v16 = vand.u32 4294901760, %v9125_v51 }
 0x223   : > { %7464 = vmatprep.subr.bf16.mxu1 %v8770_v0 }
 0x224   : > { %6584 = vmatmul.mubr.f32.vlgmr.msra.gmra.mrb[8].mxu0 %v8544_v32  ;;  %v3138_v32 = vsub.f32 %v9268_v20, %v10191_v21  ;;  %v9297_v60 = vsub.f32 %v9125_v51, %v10319_v16  ;;  %v10321_v51 = vand.u32 4294901760, %v9147_v6 }
 0x225   : > { %7558 = vmatpush3.bf16.xpose.msra.mxu0 %v7555_v42  ;;  %6586 = vmatprep.mubr.f32.mxu0 %v8548_v38  ;;  %v3145_v38 = vsub.f32 %v9273_v4, %v10190_v31  ;;  %v10318_v42 = vand.u32 4294901760, %v9122_v47 }
 0x226   : > { %7560 = vmatprep.subr.bf16.mxu0 %v7559_v5  ;;  %v3139_v40 = vand.u32 4294901760, %v3138_v32  ;;  %v10182_v39 = vand.u32 4294901760, %v9297_v60 }
 0x227   : > { %v9292_v8 = vsub.f32 %v9122_v47, %v10318_v42  ;;  %v3146_v37 = vand.u32 4294901760, %v3145_v38  ;;  %v10320_v47 = vand.u32 4294901760, %v9144_v28 }
 0x228   : > { %6587 = vmatmul.mubr.f32.gmra.mrb[10].mxu0 %v10317_v58 }
 0x229   : > { %6621 = vmatprep.mubr.f32.mxu0 %v8334_v2  ;;  %v10184_v11 = vand.u32 4294901760, %v9292_v8  ;;  %v9306_v58 = vsub.f32 %v9144_v28, %v10320_v47  ;;  %v7567_v32 = vpack.c.bf16 %v3146_v37, %v3139_v40  ;;  %v10322_v37 = vand.u32 4294901760, %v9163_v54 }
 0x22a   : > { %7466 = vmatpush3.bf16.xpose.msra.mxu1 %v8770_v0  ;;  %v3159_v0 = vsub.f32 %v9297_v60, %v10182_v39 }
 0x22b   : > { %7468 = vmatprep.subr.bf16.mxu1 %v8783_v18  ;;  %v3152_v38 = vsub.f32 %v9292_v8, %v10184_v11  ;;  %v10183_v42 = vand.u32 4294901760, %v9306_v58 }
 0x22c   : > { %v3160_v47 = vand.u32 4294901760, %v3159_v0 }
 0x22d   : > { %7562 = vmatpush3.bf16.xpose.msra.mxu0 %v7559_v5  ;;  %v9311_v5 = vsub.f32 %v9147_v6, %v10321_v51  ;;  %v3153_v16 = vand.u32 4294901760, %v3152_v38  ;;  %v3166_v6 = vsub.f32 %v9306_v58, %v10183_v42  ;;  %v9332_v51 = vsub.f32 %v9163_v54, %v10322_v37  ;;  %v312_v54 = vld [vmem:[%s10120_s3] sm:$0xff] }
 0x22e   : > { %7564 = vmatprep.subr.bf16.mxu0 %v7563_v25  ;;  %v10323_v38 = vand.u32 4294901760, %v9166_v41  ;;  %v10325_v37 = vand.u32 4294901760, %v9189_v14 }
 0x22f   : > { %v10187_v28 = vand.u32 4294901760, %v9311_v5  ;;  %v3167_v0 = vand.u32 4294901760, %v3166_v6  ;;  %v10186_v42 = vand.u32 4294901760, %v9332_v51 }
 0x231   : > { %v3173_v40 = vsub.f32 %v9311_v5, %v10187_v28 }
 0x232   : > { %7470 = vmatpush3.bf16.xpose.msra.mxu1 %v8783_v18  ;;  %v9337_v18 = vsub.f32 %v9166_v41, %v10323_v38  ;;  %v9362_v38 = vsub.f32 %v9189_v14, %v10325_v37 }
 0x233   : > { %7472 = vmatprep.subr.bf16.mxu1 %v8805_v56  ;;  %v3174_v39 = vand.u32 4294901760, %v3173_v40 }
 0x234   : > { %v10185_v11 = vand.u32 4294901760, %v9337_v18  ;;  %v7611_v1 = vpack.c.bf16 %v9337_v18, %v9332_v51 }
 0x235   : > { %7566 = vmatpush3.bf16.xpose.msra.mxu0 %v7563_v25  ;;  %v7571_v25 = vpack.c.bf16 %v3160_v47, %v3153_v16  ;;  %v2122_v16 = vsel %vm2120_vm2, %v312_v54, 0  ;;  %v7575_v47 = vpack.c.bf16 %v3174_v39, %v3167_v0 }
 0x236   : > { %7568 = vmatprep.subr.bf16.mxu0 %v7567_v32  ;;  %v9346_v41 = vand.u32 4294901760, %v2122_v16  ;;  %v3187_v6 = vsub.f32 %v9337_v18, %v10185_v11 }
 0x238   : > { %v9365_v39 = vsub.f32 %v2122_v16, %v9346_v41  ;;  %v3188_v11 = vand.u32 4294901760, %v3187_v6 }
 0x23a   : > { %7474 = vmatpush3.bf16.xpose.msra.mxu1 %v8805_v56  ;;  %v10324_v56 = vand.u32 4294901760, %v9186_v15  ;;  %v9369_v0 = vand.u32 4294901760, %v9365_v39 }
 0x23c   : > { %v9357_v40 = vsub.f32 %v9186_v15, %v10324_v56  ;;  %10326 = vst [vmem:[#allocation15_spill] sm:$0xff] %v9369_v0  ;;  %v10188_v56 = vand.u32 4294901760, %v9362_v38  ;;  %v2205_v14 = vsub.f32 %v9365_v39, %v9369_v0 }
 0x23d   : > { %7570 = vmatpush3.bf16.xpose.msra.mxu0 %v7567_v32  ;;  %v3180_v32 = vsub.f32 %v9332_v51, %v10186_v42 }
 0x23e   : > { %7572 = vmatprep.subr.bf16.mxu0 %v7571_v25  ;;  %v10189_v15 = vand.u32 4294901760, %v9357_v40 }
 0x23f   : > { %v3181_v54 = vand.u32 4294901760, %v3180_v32  ;;  %v3201_v32 = vsub.f32 %v9362_v38, %v10188_v56 }
 0x240   : > { %v3194_v37 = vsub.f32 %v9357_v40, %v10189_v15 }
 0x241   : > { %6462 = vmatmul.mubr.f32.vlgmr.msra.gmra.mrb[0].mxu1 %v8835_v13  ;;  %v7579_v16 = vpack.c.bf16 %v3188_v11, %v3181_v54  ;;  %v3202_v42 = vand.u32 4294901760, %v3201_v32  ;;  %v7587_v11 = vpack.c.bf16 %v9199_v49, %v9194_v12  ;;  %v7591_v54 = vpack.c.bf16 %v9230_v52, %v9225_v23 }
 0x242   : > { %6464 = vmatprep.mubr.f32.mxu1 %v8908_v50  ;;  %v3195_v6 = vand.u32 4294901760, %v3194_v37  ;;  %v9402_v37 = vpop.permute.xlu1 %364 }
 0x243   : > { %10331 = vst [vmem:[#allocation36_spill] sm:$0xff] %v9402_v37 }
 0x244   : > { %v7583_v28 = vpack.c.bf16 %v3202_v42, %v3195_v6  ;;  %v7595_v42 = vpack.c.bf16 %v9246_v22, %v9241_v61 }
 0x245   : > { %7574 = vmatpush3.bf16.xpose.msra.mxu0 %v7571_v25  ;;  %6465 = vmatmul.mubr.f32.gmra.mrb[2].mxu1 %v8913_v53  ;;  %v9377_v25 = vand.u32 4294901760, %v2205_v14  ;;  %v7599_v14 = vpack.c.bf16 %v9273_v4, %v9268_v20 }
 0x246   : > { %7576 = vmatprep.subr.bf16.mxu0 %v7575_v47  ;;  %v9408_v31 = vpop.permute.xlu1 %369 }
 0x247   : > { %10327 = vst [vmem:[#allocation34_spill] sm:$0xff] %v9377_v25  ;;  %6475 = vmatprep.mubr.f32.mxu1 %v9377_v25  ;;  %10332 = vst [vmem:[#allocation37_spill] sm:$0xff] %v9408_v31 }
 0x24d   : > { %7578 = vmatpush3.bf16.xpose.msra.mxu0 %v7575_v47  ;;  %v10328_v47 = vld [vmem:[#allocation6_spill] sm:$0xff] }
 0x24e   : > { %7580 = vmatprep.subr.bf16.mxu0 %v7579_v16 }
 0x255   : > { %7582 = vmatpush3.bf16.xpose.msra.mxu0 %v7579_v16 }
 0x256   : > { %7584 = vmatprep.subr.bf16.mxu0 %v7583_v28 }
 0x25d   : > { %7586 = vmatpush3.bf16.xpose.msra.mxu0 %v7583_v28  ;;  %v9396_v28 = vpop.permute.xlu0 %354 }
 0x25e   : > { %7588 = vmatprep.subr.bf16.mxu0 %v7587_v11  ;;  %10329 = vst [vmem:[#allocation6_spill] sm:$0xff] %v9396_v28 }
 0x261   : > { %v9400_v16 = vpop.permute.xlu0 %359 }
 0x262   : > { %10330 = vst [vmem:[#allocation35_spill] sm:$0xff] %v9400_v16 }
 0x264   : > { %6622 = vmatmul.mubr.f32.vlgmr.msra.gmra.mrb[8].mxu0 %v8486_v33 }
 0x265   : > { %7590 = vmatpush3.bf16.xpose.msra.mxu0 %v7587_v11  ;;  %6624 = vmatprep.mubr.f32.mxu0 %v8488_v34 }
 0x266   : > { %7592 = vmatprep.subr.bf16.mxu0 %v7591_v54 }
 0x268   : > { %6625 = vmatmul.mubr.f32.gmra.mrb[10].mxu0 %v8506_v43 }
 0x269   : > { %6659 = vmatprep.mubr.f32.mxu0 %v10328_v47 }
 0x26d   : > { %7594 = vmatpush3.bf16.xpose.msra.mxu0 %v7591_v54  ;;  %v7603_v54 = vpack.c.bf16 %v9297_v60, %v9292_v8 }
 0x26e   : > { %7596 = vmatprep.subr.bf16.mxu0 %v7595_v42 }
 0x275   : > { %7598 = vmatpush3.bf16.xpose.msra.mxu0 %v7595_v42 }
 0x276   : > { %7600 = vmatprep.subr.bf16.mxu0 %v7599_v14 }
 0x277   : > { %v6235_v32 = vpop.f32.mrb[0].mxu0 }
 0x278   : > { %v7955_v6 = vadd.f32 %v6235_v32, %v9400_v16  ;;  %v1181_v11 = vpop.f32.mrb[1].mxu0  ;;  %v7607_v32 = vpack.c.bf16 %v9311_v5, %v9306_v58 }
 0x279   : > { %v7956_v47 = vadd.f32 %v1181_v11, %v9396_v28 }
 0x27b   : > { %v1203_v56 = vadd.f32 %v7956_v47, %v7955_v6  ;;  %v6238_v15 = vpop.f32.mrb[2].mxu0 }
 0x27c   : > { %v1193_v21 = vpop.f32.mrb[3].mxu0  ;;  %v7957_v45 = vadd.f32 %v6238_v15, %v9408_v31 }
 0x27d   : > { %v7958_v42 = vadd.f32 %v1193_v21, %v9402_v37  ;;  %7602 = vmatpush3.bf16.xpose.msra.mxu0 %v7599_v14  ;;  %v7615_v37 = vpack.c.bf16 %v9362_v38, %v9357_v40 }
 0x27e   : > { %7604 = vmatprep.subr.bf16.mxu0 %v7603_v54 }
 0x27f   : > { %v1204_v3 = vadd.f32 %v7958_v42, %v1203_v56 }
 0x281   : > { %v1205_v25 = vadd.f32 %v7957_v45, %v1204_v3 }
 0x283   : > { %v1206_v11 = vrot.slane %v1205_v25, 4 }
 0x285   : > { %v1207_v28 = vadd.f32 %v1206_v11, %v1205_v25  ;;  %7606 = vmatpush3.bf16.xpose.msra.mxu0 %v7603_v54 }
 0x286   : > { %7608 = vmatprep.subr.bf16.mxu0 %v7607_v32 }
 0x287   : > { %v1208_v16 = vrot.slane %v1207_v28, 2 }
 0x289   : > { %v1209_v30 = vadd.f32 %v1208_v16, %v1207_v28 }
 0x28b   : > { %v1210_v57 = vrot.slane %v1209_v30, 1 }
 0x28d   : > { %v1211_v21 = vadd.f32 %v1210_v57, %v1209_v30  ;;  %7610 = vmatpush3.bf16.xpose.msra.mxu0 %v7607_v32  ;;  %v10334_v32 = vld [vmem:[#allocation8_spill] sm:$0xff] }
 0x28e   : > { %7612 = vmatprep.subr.bf16.mxu0 %v7611_v1 }
 0x28f   : > { %v1212_v14 = vmul.f32 0.03125, %v1211_v21 }
 0x291   : > { %v1215_v15 = vsub.f32 %v7958_v42, %v1212_v14  ;;  %v1216_v56 = vsub.f32 %v7957_v45, %v1212_v14  ;;  %v1213_v3 = vsub.f32 %v7956_v47, %v1212_v14  ;;  %v1214_v31 = vsub.f32 %v7955_v6, %v1212_v14  ;;  %v9419_v45 = vpop.permute.xlu1 %1242  ;;  %v10336_v14 = vld [vmem:[#allocation10_spill] sm:$0xff] }
 0x292   : > { %10333 = vst [vmem:[#allocation38_spill] sm:$0xff] %v9419_v45 }
 0x293   : > { %v1217_v25 = vmul.f32 %v1213_v3, %v1213_v3  ;;  %v1218_v54 = vmul.f32 %v1214_v31, %v1214_v31  ;;  %v1219_v11 = vmul.f32 %v1215_v15, %v1215_v15  ;;  %v1220_v16 = vmul.f32 %v1216_v56, %v1216_v56 }
 0x295   : > { %7614 = vmatpush3.bf16.xpose.msra.mxu0 %v7611_v1  ;;  %v1221_v28 = vadd.f32 %v1218_v54, %v1217_v25  ;;  %v9423_v21 = vpop.permute.xlu1 %1258  ;;  %v10338_v25 = vld [vmem:[#allocation7_spill] sm:$0xff]  ;;  %v9429_v54 = vpop.permute.xlu0 %1238 }
 0x296   : > { %7616 = vmatprep.subr.bf16.mxu0 %v7615_v37  ;;  %10335 = vst [vmem:[#allocation8_spill] sm:$0xff] %v9423_v21  ;;  %10339 = vst [vmem:[#allocation10_spill] sm:$0xff] %v9429_v54 }
 0x297   : > { %v1222_v44 = vadd.f32 %v1221_v28, %v1219_v11  ;;  %v313_v28 = vld [vmem:[%s10120_s3 + $0x8] sm:$0xff] }
 0x299   : > { %v1223_v36 = vadd.f32 %v1222_v44, %v1220_v16  ;;  %v9431_v11 = vpop.permute.xlu1 %1246  ;;  %v9438_v16 = vpop.permute.xlu0 %1262 }
 0x29a   : > { %10341 = vst [vmem:[#allocation7_spill] sm:$0xff] %v9438_v16 }
 0x29b   : > { %v1224_v57 = vrot.slane %v1223_v36, 4 }
 0x29d   : > { %7618 = vmatpush3.bf16.xpose.msra.mxu0 %v7615_v37  ;;  %v1225_v30 = vadd.f32 %v1224_v57, %v1223_v36  ;;  %v10337_v36 = vld [vmem:[#allocation12_spill] sm:$0xff]  ;;  %v9440_v57 = vpop.permute.xlu1 %1250  ;;  %v9454_v17 = vpop.permute.xlu0 %1266 }
 0x29e   : > { %7620 = vmatprep.subr.bf16.mxu0 %v9037_v35  ;;  %10340 = vst [vmem:[#allocation12_spill] sm:$0xff] %v9431_v11  ;;  %10342 = vst [vmem:[#allocation39_spill] sm:$0xff] %v9440_v57 }
 0x29f   : > { %v1226_v6 = vrot.slane %v1225_v30, 2  ;;  %10343 = vst [vmem:[#allocation40_spill] sm:$0xff] %v9454_v17 }
 0x2a1   : > { %v1227_v47 = vadd.f32 %v1226_v6, %v1225_v30  ;;  %v314_v30 = vld [vmem:[%s10120_s3 + $0x10] sm:$0xff]  ;;  %v2125_v6 = vsel %vm2120_vm2, %v313_v28, 0  ;;  %v9459_v53 = vpop.permute.xlu1 %1270 }
 0x2a2   : > { %10345 = vst [vmem:[#allocation42_spill] sm:$0xff] %v9459_v53 }
 0x2a3   : > { %v1228_v42 = vrot.slane %v1227_v47, 1 }
 0x2a4   : > { %6660 = vmatmul.mubr.f32.vlgmr.msra.gmra.mrb[8].mxu0 %v10334_v32 }
 0x2a5   : > { %7622 = vmatpush3.bf16.xpose.msra.mxu0 %v9037_v35  ;;  %v1229_v1 = vadd.f32 %v1228_v42, %v1227_v47  ;;  %6662 = vmatprep.mubr.f32.mxu0 %v10336_v14  ;;  %v315_v47 = vld [vmem:[%s10120_s3 + $0x18] sm:$0xff]  ;;  %v2128_v42 = vsel %vm2120_vm2, %v314_v30, 0 }
 0x2a6   : > { %7624 = vmatprep.subr.bf16.mxu0 %v9069_v9  ;;  %v2131_v14 = vsel %vm2120_vm2, %v315_v47, 0  ;;  %v9461_v30 = vand.u32 4294901760, %v2128_v42 }
 0x2a7   : > { %v1230_v44 = vmul.f32 0.03125, %v1229_v1  ;;  %v9451_v1 = vand.u32 4294901760, %v2125_v6 }
 0x2a8   : > { %6663 = vmatmul.mubr.f32.gmra.mrb[10].mxu0 %v10337_v36 }
 0x2a9   : > { %v1231_v37 = vadd.f32 1e-05, %v1230_v44  ;;  %6697 = vmatprep.mubr.f32.mxu0 %v10338_v25 }
 0x2ab   : > { %8155 = vrsqrt.f32 %v1231_v37 }
 0x2ad   : > { %7626 = vmatpush3.bf16.xpose.msra.mxu0 %v9069_v9  ;;  %v8234_v9 = vmov 3  }
 0x2ae   : > { %7628 = vmatprep.subr.bf16.mxu0 %v9097_v26  ;;  %8146 = vset.pattern.permute.xlu1 %v8234_v9 }
 0x2af   : > { %8145 = vset.pattern.permute.xlu0 %v8234_v9  ;;  %2752 = vperm.xlu1 %8146, %v8887_v48   ;;  %v9539_v48 = vld [vmem:[%s10122_s5 + $0x10] sm:$0xff] }
 0x2b3   : > { %2756 = vperm.xlu1 %8146, %v9539_v48  }
 0x2b5   : > { %v8156_v32 = vpop.eup %8155  ;;  %7630 = vmatpush3.bf16.xpose.msra.mxu0 %v9097_v26 }
 0x2b6   : > { %v1234_v44 = vmul.f32 %v8156_v32, %v1214_v31  ;;  %v1235_v36 = vmul.f32 %v8156_v32, %v1215_v15  ;;  %v1233_v37 = vmul.f32 %v8156_v32, %v1213_v3  ;;  %v1236_v25 = vmul.f32 %v8156_v32, %v1216_v56  ;;  %7632 = vmatprep.subr.bf16.mxu0 %v9119_v24 }
 0x2b7   : > { %v9457_v28 = vpop.f32.mrb[4].mxu0  ;;  %v9470_v56 = vsub.f32 %v2125_v6, %v9451_v1  ;;  %v9472_v3 = vand.u32 4294901760, %v2131_v14 }
 0x2b8   : > { %10344 = vst [vmem:[#allocation41_spill] sm:$0xff] %v9457_v28  ;;  %v1254_v50 = vmul.f32 %v9419_v45, %v1234_v44  ;;  %v1255_v13 = vmul.f32 %v9431_v11, %v1235_v36  ;;  %v1253_v47 = vmul.f32 %v9429_v54, %v1233_v37  ;;  %v1256_v31 = vmul.f32 %v9440_v57, %v1236_v25  ;;  %v9467_v15 = vpop.f32.mrb[5].mxu0 }
 0x2b9   : > { %10346 = vst [vmem:[#allocation43_spill] sm:$0xff] %v9467_v15  ;;  %v9479_v36 = vsub.f32 %v2128_v42, %v9461_v30  ;;  %v9489_v42 = vsub.f32 %v2131_v14, %v9472_v3 }
 0x2ba   : > { %v1273_v32 = vadd.f32 %v9423_v21, %v1253_v47  ;;  %v1274_v28 = vadd.f32 %v9438_v16, %v1254_v50  ;;  %v1276_v55 = vadd.f32 %v9459_v53, %v1256_v31  ;;  %v1275_v44 = vadd.f32 %v9454_v17, %v1255_v13 }
 0x2bb   : > { %v9481_v37 = vpop.f32.mrb[6].mxu0  ;;  %v9486_v13 = vand.u32 4294901760, %v9470_v56 }
 0x2bc   : > { %10347 = vst [vmem:[#allocation44_spill] sm:$0xff] %v9481_v37  ;;  %vm1277_vm3 = vcmp.ge.f32.partialorder %v1273_v32, 0.0  ;;  %v1281_v25 = vmul.f32 0.01, %v1273_v32  ;;  %vm1278_vm4 = vcmp.ge.f32.partialorder %v1274_v28, 0.0  ;;  %vm1280_vm5 = vcmp.ge.f32.partialorder %v1276_v55, 0.0 }
 0x2bd   : > { %v1282_v6 = vmul.f32 0.01, %v1274_v28  ;;  %v1284_v57 = vmul.f32 0.01, %v1276_v55  ;;  %vm1279_vm6 = vcmp.ge.f32.partialorder %v1275_v44, 0.0  ;;  %7634 = vmatpush3.bf16.xpose.msra.mxu0 %v9119_v24  ;;  %10348 = vst [vmem:[#allocation45_spill] sm:$0xff] %v9486_v13 }
 0x2be   : > { %v1283_v11 = vmul.f32 0.01, %v1275_v44  ;;  %v1285_v50 = vsel %vm1277_vm3, %v1273_v32, %v1281_v25  ;;  %7636 = vmatprep.subr.bf16.mxu0 %v9141_v7  ;;  %v9491_v31 = vpop.f32.mrb[7].mxu0  ;;  %v9494_v37 = vand.u32 4294901760, %v9479_v36 }
 0x2bf   : > { %v1286_v47 = vsel %vm1278_vm4, %v1274_v28, %v1282_v6  ;;  %10349 = vst [vmem:[#allocation46_spill] sm:$0xff] %v9491_v31  ;;  %v2134_v53 = vand.u32 4294901760, %v1285_v50  ;;  %v1288_v16 = vsel %vm1280_vm5, %v1276_v55, %v1284_v57  ;;  %v2215_v31 = vsub.f32 %v9470_v56, %v9486_v13 }
 0x2c0   : > { %v2137_v17 = vand.u32 4294901760, %v1286_v47  ;;  %v1287_v21 = vsel %vm1279_vm6, %v1275_v44, %v1283_v11  ;;  %v2143_v45 = vand.u32 4294901760, %v1288_v16  ;;  %10350 = vst [vmem:[#allocation47_spill] sm:$0xff] %v9494_v37  ;;  %v9504_v57 = vand.u32 4294901760, %v9489_v42 }
 0x2c1   : > { %v2140_v54 = vand.u32 4294901760, %v1287_v21  ;;  %v2244_v28 = vsub.f32 %v1285_v50, %v2134_v53  ;;  %v9514_v59 = vand.u32 4294901760, %v2215_v31  ;;  %v9525_v31 = vld [vmem:[%s10122_s5] sm:$0xff] }
 0x2c2   : > { %v9496_v32 = vpack.c.bf16 %v2137_v17, %v2134_v53  ;;  %v2251_v25 = vsub.f32 %v1286_v47, %v2137_v17  ;;  %v2265_v6 = vsub.f32 %v1288_v16, %v2143_v45  ;;  %10351 = vst [vmem:[#allocation48_spill] sm:$0xff] %v9504_v57  ;;  %v2225_v17 = vsub.f32 %v9479_v36, %v9494_v37 }
 0x2c3   : > { %v9498_v15 = vpack.c.bf16 %v2143_v45, %v2140_v54  ;;  %v2258_v14 = vsub.f32 %v1287_v21, %v2140_v54  ;;  %v2245_v55 = vand.u32 4294901760, %v2244_v28  ;;  %v2235_v43 = vsub.f32 %v9489_v42, %v9504_v57  ;;  %2748 = vperm.xlu0 %8145, %v9525_v31  }
 0x2c4   : > { %7476 = vmatprep.subr.bf16.mxu1 %v9496_v32  ;;  %v2252_v11 = vand.u32 4294901760, %v2251_v25  ;;  %v7491_v44 = vpack.c.bf16 %v2251_v25, %v2244_v28  ;;  %v2266_v50 = vand.u32 4294901760, %v2265_v6 }
 0x2c5   : > { %7478 = vmatpush3.bf16.msra.mxu1 %v9496_v32  ;;  %v2259_v53 = vand.u32 4294901760, %v2258_v14  ;;  %v7495_v45 = vpack.c.bf16 %v2265_v6, %v2258_v14  ;;  %7638 = vmatpush3.bf16.xpose.msra.mxu0 %v9141_v7  ;;  %v2246_v21 = vsub.f32 %v2244_v28, %v2245_v55  ;;  %v9529_v9 = vand.u32 4294901760, %v2235_v43 }
 0x2c6   : > { %7480 = vmatprep.subr.bf16.mxu1 %v9498_v15  ;;  %v2253_v54 = vsub.f32 %v2251_v25, %v2252_v11  ;;  %v7507_v16 = vpack.c.bf16 %v2252_v11, %v2245_v55  ;;  %7640 = vmatprep.subr.bf16.mxu0 %v9160_v19  ;;  %v2267_v63 = vsub.f32 %v2265_v6, %v2266_v50  ;;  %v9519_v55 = vand.u32 4294901760, %v2225_v17  ;;  %v5413_v11 = vld [vmem:[%s8636_s15 + $0x88] sm:$0xff] }
 0x2c7   : > { %v2260_v47 = vsub.f32 %v2258_v14, %v2259_v53  ;;  %v9512_v62 = vpack.c.bf16 %v2266_v50, %v2259_v53  ;;  %v2247_v24 = vand.u32 4294901760, %v2246_v21  ;;  %2760 = vperm.xlu0 %8145, %v8897_v29   ;;  %v10352_v43 = vand.u32 4294901760, %v9194_v12  ;;  %v5412_v12 = vld [vmem:[%s8636_s15 + $0x80] sm:$0xff] }
 0x2c8   : > { %v2254_v26 = vand.u32 4294901760, %v2253_v54  ;;  %v2268_v25 = vand.u32 4294901760, %v2267_v63  ;;  %v10353_v29 = vand.u32 4294901760, %v9199_v49  ;;  %v10354_v49 = vand.u32 4294901760, %v9225_v23 }
 0x2c9   : > { %7482 = vmatpush3.bf16.msra.mxu1 %v9498_v15  ;;  %v2261_v28 = vand.u32 4294901760, %v2260_v47  ;;  %v3796_v53 = vsel %vm1289_vm1, %v5412_v12, 0  ;;  %v3799_v23 = vsel %vm1289_vm1, %v5413_v11, 0  ;;  %v10359_v21 = vand.u32 4294901760, %v9241_v61  ;;  %v5416_v12 = vld [vmem:[%s8636_s15 + $0xa0] sm:$0xff]  ;;  %v5417_v11 = vld [vmem:[%s8636_s15 + $0xa8] sm:$0xff] }
 0x2ca   : > { %v7483_v6 = vpack.c.bf16 %v2254_v26, %v2247_v24  ;;  %v7651_v63 = vpack.c.bf16 %v10353_v29, %v10352_v43  ;;  %v10355_v26 = vand.u32 4294901760, %v9230_v52  ;;  %v10357_v52 = vld [vmem:[#allocation13_spill] sm:$0xff]  ;;  %v3844_v50 = vand.u32 4294901760, %v3796_v53 }
 0x2cb   : > { %v7487_v14 = vpack.c.bf16 %v2268_v25, %v2261_v28  ;;  %v3847_v17 = vand.u32 4294901760, %v3799_v23  ;;  %v10360_v54 = vand.u32 4294901760, %v9246_v22  ;;  %v8235_v47 = vmov 4   ;;  %v5415_v28 = vld [vmem:[%s8636_s15 + $0x98] sm:$0xff] }
 0x2cc   : > { %6476 = vmatmul.mubr.f32.vlgmr.msra.gmra.mrb[0].mxu1 %v9514_v59  ;;  %7484 = vmatprep.subr.bf16.mxu1 %v7483_v6  ;;  %v7655_v24 = vpack.c.bf16 %v10355_v26, %v10354_v49  ;;  %v3805_v25 = vsel %vm1289_vm1, %v5415_v28, 0  ;;  %v10361_v29 = vand.u32 4294901760, %v9268_v20  ;;  %v3808_v20 = vsel %vm1289_vm1, %v5416_v12, 0  ;;  %v5420_v12 = vld [vmem:[%s8636_s15 + $0xc0] sm:$0xff] }
 0x2cd   : > { %7486 = vmatpush3.bf16.msra.mxu1 %v7483_v6  ;;  %6478 = vmatprep.mubr.f32.mxu1 %v9519_v55  ;;  %v9592_v61 = vpack.c.bf16 %v3847_v17, %v3844_v50  ;;  %v9597_v6 = vsub.f32 %v3796_v53, %v3844_v50 }
 0x2ce   : > { %7488 = vmatprep.subr.bf16.mxu1 %v7487_v14  ;;  %7642 = vmatpush3.bf16.xpose.msra.mxu0 %v9160_v19 }
 0x2cf   : > { %7644 = vmatprep.subr.bf16.mxu0 %v9182_v46  ;;  %8147 = vset.pattern.permute.xlu1 %v8235_v47 }
 0x2d0   : > { %6479 = vmatmul.mubr.f32.gmra.mrb[2].mxu1 %v9529_v9  ;;  %2802 = vperm.xlu1 %8147, %v9525_v31  }
 0x2d1   : > { %7490 = vmatpush3.bf16.msra.mxu1 %v7487_v14  ;;  %6489 = vmatprep.mubr.f32.mxu1 %v9346_v41  ;;  %v8165_v14 = vld [vmem:[%s10122_s5 + $0x8] sm:$0xff] }
 0x2d2   : > { %7492 = vmatprep.subr.bf16.mxu1 %v7491_v44  ;;  %8148 = vset.pattern.permute.xlu0 %v8235_v47 }
 0x2d3   : > { %2806 = vperm.xlu0 %8148, %v8165_v14  }
 0x2d4   : > { %6490 = vmatmul.mubr.f32.vlgmr.msra.gmra.mrb[0].mxu1 %v9451_v1  ;;  %2810 = vperm.xlu1 %8147, %v9539_v48  }
 0x2d5   : > { %7494 = vmatpush3.bf16.msra.mxu1 %v7491_v44  ;;  %6492 = vmatprep.mubr.f32.mxu1 %v9461_v30  ;;  %v10356_v44 = vld [vmem:[#allocation11_spill] sm:$0xff] }
 0x2d6   : > { %7496 = vmatprep.subr.bf16.mxu1 %v7495_v45  ;;  %7646 = vmatpush3.bf16.xpose.msra.mxu0 %v9182_v46 }
 0x2d7   : > { %7648 = vmatprep.subr.bf16.mxu0 %v9214_v27 }
 0x2d8   : > { %6493 = vmatmul.mubr.f32.gmra.mrb[2].mxu1 %v9472_v3 }
 0x2d9   : > { %7498 = vmatpush3.bf16.msra.mxu1 %v7495_v45  ;;  %6503 = vmatprep.mubr.f32.mxu1 %v9365_v39  ;;  %v10358_v45 = vld [vmem:[#allocation14_spill] sm:$0xff] }
 0x2da   : > { %7500 = vmatprep.subr.bf16.mxu1 %v9496_v32 }
 0x2dc   : > { %6504 = vmatmul.mubr.f32.vlgmr.msra.gmra.mrb[0].mxu1 %v9470_v56 }
 0x2dd   : > { %7502 = vmatpush3.bf16.msra.mxu1 %v9496_v32  ;;  %6506 = vmatprep.mubr.f32.mxu1 %v9479_v36 }
 0x2de   : > { %7504 = vmatprep.subr.bf16.mxu1 %v9498_v15  ;;  %7650 = vmatpush3.bf16.xpose.msra.mxu0 %v9214_v27 }
 0x2df   : > { %7652 = vmatprep.subr.bf16.mxu0 %v7651_v63 }
 0x2e0   : > { %6507 = vmatmul.mubr.f32.gmra.mrb[2].mxu1 %v9489_v42 }
 0x2e1   : > { %7506 = vmatpush3.bf16.msra.mxu1 %v9498_v15  ;;  %6517 = vmatprep.mubr.f32.mxu1 %v9369_v0 }
 0x2e2   : > { %7508 = vmatprep.subr.bf16.mxu1 %v7507_v16 }
 0x2e4   : > { %6518 = vmatmul.mubr.f32.vlgmr.msra.gmra.mrb[0].mxu1 %v9486_v13  ;;  %v10375_v13 = vld [vmem:[#allocation28_spill] sm:$0xff] }
 0x2e5   : > { %7510 = vmatpush3.bf16.msra.mxu1 %v7507_v16  ;;  %6698 = vmatmul.mubr.f32.vlgmr.msra.gmra.mrb[8].mxu0 %v10356_v44  ;;  %v7659_v16 = vpack.c.bf16 %v10360_v54, %v10359_v21 }
 0x2e6   : > { %7512 = vmatprep.subr.bf16.mxu1 %v9512_v62  ;;  %7654 = vmatpush3.bf16.xpose.msra.mxu0 %v7651_v63  ;;  %v10362_v63 = vand.u32 4294901760, %v9273_v4  ;;  %v3811_v4 = vsel %vm1289_vm1, %v5417_v11, 0 }
 0x2e7   : > { %6520 = vmatprep.mubr.f32.mxu1 %v9494_v37  ;;  %7656 = vmatprep.subr.bf16.mxu0 %v7655_v24  ;;  %v3859_v54 = vand.u32 4294901760, %v3811_v4 }
 0x2e8   : > { %6521 = vmatmul.mubr.f32.gmra.mrb[2].mxu1 %v9504_v57  ;;  %6700 = vmatprep.mubr.f32.mxu0 %v10357_v52  ;;  %v7663_v49 = vpack.c.bf16 %v10362_v63, %v10361_v29  ;;  %v8166_v52 = vld [vmem:[%s10122_s5 + $0x18] sm:$0xff]  ;;  %v10365_v63 = vand.u32 4294901760, %v9306_v58  ;;  %v3820_v58 = vsel %vm1289_vm1, %v5420_v12, 0  ;;  %v5425_v12 = vld [vmem:[%s8636_s15 + $0xe8] sm:$0xff] }
 0x2e9   : > { %7514 = vmatpush3.bf16.msra.mxu1 %v9512_v62  ;;  %6531 = vmatprep.mubr.f32.mxu1 %v9346_v41  ;;  %v5414_v62 = vld [vmem:[%s8636_s15 + $0x90] sm:$0xff] }
 0x2ea   : > { %7516 = vmatprep.subr.bf16.mxu1 %v9496_v32  ;;  %6701 = vmatmul.mubr.f32.gmra.mrb[10].mxu0 %v10358_v45  ;;  %v3802_v22 = vsel %vm1289_vm1, %v5414_v62, 0  ;;  %v10364_v45 = vand.u32 4294901760, %v9297_v60 }
 0x2eb   : > { %6735 = vmatprep.mubr.f32.mxu0 %v8334_v2  ;;  %v3850_v26 = vand.u32 4294901760, %v3802_v22 }
 0x2ec   : > { %6532 = vmatmul.mubr.f32.vlgmr.msra.gmra.mrb[0].mxu1 %v9451_v1 }
 0x2ed   : > { %7518 = vmatpush3.bf16.msra.mxu1 %v9496_v32  ;;  %6534 = vmatprep.mubr.f32.mxu1 %v9461_v30  ;;  %v9599_v32 = vsub.f32 %v3799_v23, %v3847_v17  ;;  %v9626_v53 = vsub.f32 %v3802_v22, %v3850_v26  ;;  %v10363_v17 = vand.u32 4294901760, %v9292_v8  ;;  %v9653_v22 = vsub.f32 %v3811_v4, %v3859_v54 }
 0x2ee   : > { %7520 = vmatprep.subr.bf16.mxu1 %v9498_v15  ;;  %7658 = vmatpush3.bf16.xpose.msra.mxu0 %v7655_v24  ;;  %v8236_v24 = vmov 5  }
 0x2ef   : > { %7660 = vmatprep.subr.bf16.mxu0 %v7659_v16  ;;  %v9610_v43 = vpack.c.bf16 %v9599_v32, %v9597_v6  ;;  %8149 = vset.pattern.permute.xlu1 %v8236_v24  ;;  %v7667_v21 = vpack.c.bf16 %v10364_v45, %v10363_v17  ;;  %v10367_v17 = vand.u32 4294901760, %v9332_v51  ;;  %v10368_v45 = vand.u32 4294901760, %v9337_v18 }
 0x2f0   : > { %6535 = vmatmul.mubr.f32.gmra.mrb[2].mxu1 %v9472_v3  ;;  %2822 = vperm.xlu1 %8149, %v9525_v31  }
 0x2f1   : > { %7522 = vmatpush3.bf16.msra.mxu1 %v9498_v15  ;;  %6545 = vmatprep.mubr.f32.mxu1 %v9346_v41  ;;  %v3853_v15 = vand.u32 4294901760, %v3805_v25 }
 0x2f2   : > { %7716 = vmatprep.subr.bf16.mxu1 %v9592_v61  ;;  %8150 = vset.pattern.permute.xlu0 %v8236_v24 }
 0x2f3   : > { %v9621_v44 = vpack.c.bf16 %v3853_v15, %v3850_v26  ;;  %2826 = vperm.xlu0 %8150, %v8165_v14   ;;  %v9628_v23 = vsub.f32 %v3805_v25, %v3853_v15  ;;  %v8237_v25 = vmov 6  }
 0x2f4   : > { %6546 = vmatmul.mubr.f32.vlgmr.msra.gmra.mrb[0].mxu1 %v9451_v1  ;;  %8151 = vset.pattern.permute.xlu1 %v8235_v47  ;;  %v5419_v47 = vld [vmem:[%s8636_s15 + $0xb8] sm:$0xff] }
 0x2f5   : > { %6548 = vmatprep.mubr.f32.mxu1 %v9461_v30  ;;  %2814 = vperm.xlu1 %8151, %v8166_v52   ;;  %v9637_v50 = vpack.c.bf16 %v9628_v23, %v9626_v53  ;;  %v3817_v60 = vsel %vm1289_vm1, %v5419_v47, 0 }
 0x2f6   : > { %7662 = vmatpush3.bf16.xpose.msra.mxu0 %v7659_v16  ;;  %v5418_v16 = vld [vmem:[%s8636_s15 + $0xb0] sm:$0xff] }
 0x2f7   : > { %7664 = vmatprep.subr.bf16.mxu0 %v7663_v49  ;;  %2834 = vperm.xlu0 %8150, %v8166_v52   ;;  %v3814_v8 = vsel %vm1289_vm1, %v5418_v16, 0  ;;  %v5422_v16 = vld [vmem:[%s8636_s15 + $0xd0] sm:$0xff] }
 0x2f8   : > { %6549 = vmatmul.mubr.f32.gmra.mrb[2].mxu1 %v9472_v3  ;;  %v3862_v15 = vand.u32 4294901760, %v3814_v8 }
 0x2f9   : > { %6811 = vmatprep.mubr.f32.mxu1 %v8960_v10  ;;  %v3856_v10 = vand.u32 4294901760, %v3808_v20  ;;  %8152 = vset.pattern.permute.xlu1 %v8236_v24  ;;  %v3865_v24 = vand.u32 4294901760, %v3817_v60 }
 0x2fa   : > { %7718 = vmatpush3.bf16.xpose.msra.mxu1 %v9592_v61  ;;  %2830 = vperm.xlu1 %8152, %v9539_v48  }
 0x2fb   : > { %7720 = vmatprep.subr.bf16.mxu1 %v9621_v44  ;;  %v9646_v62 = vpack.c.bf16 %v3859_v54, %v3856_v10  ;;  %v9651_v28 = vsub.f32 %v3808_v20, %v3856_v10  ;;  %8154 = vset.pattern.permute.xlu0 %v8237_v25  ;;  %v9668_v11 = vpack.c.bf16 %v3865_v24, %v3862_v15  ;;  %v3868_v10 = vand.u32 4294901760, %v3820_v58 }
 0x2fc   : > { %2858 = vperm.xlu0 %8154, %v8165_v14   ;;  %v5421_v14 = vld [vmem:[%s8636_s15 + $0xc8] sm:$0xff]  ;;  %v9672_v20 = vsub.f32 %v3814_v8, %v3862_v15  ;;  %v9674_v4 = vsub.f32 %v3817_v60, %v3865_v24  ;;  %v3826_v8 = vsel %vm1289_vm1, %v5422_v16, 0  ;;  %v5424_v24 = vld [vmem:[%s8636_s15 + $0xe0] sm:$0xff] }
 0x2fd   : > { %v9658_v29 = vpack.c.bf16 %v9653_v22, %v9651_v28  ;;  %v9693_v60 = vsub.f32 %v3820_v58, %v3868_v10  ;;  %v3832_v58 = vsel %vm1289_vm1, %v5424_v24, 0  ;;  %v10234_v24 = vand.u32 4294901760, %v9599_v32 }
 0x2fe   : > { %7666 = vmatpush3.bf16.xpose.msra.mxu0 %v7663_v49  ;;  %v10366_v49 = vand.u32 4294901760, %v9311_v5  ;;  %8153 = vset.pattern.permute.xlu1 %v8237_v25  ;;  %v3823_v5 = vsel %vm1289_vm1, %v5421_v14, 0  ;;  %v10369_v25 = vand.u32 4294901760, %v9357_v40  ;;  %v10240_v37 = vand.u32 4294901760, %v9651_v28 }
 0x2ff   : > { %7668 = vmatprep.subr.bf16.mxu0 %v7667_v21  ;;  %2854 = vperm.xlu1 %8153, %v9525_v31   ;;  %v9680_v31 = vpack.c.bf16 %v9674_v4, %v9672_v20  ;;  %v3871_v54 = vand.u32 4294901760, %v3823_v5 }
 0x300   : > { %v7671_v26 = vpack.c.bf16 %v10366_v49, %v10365_v63  ;;  %v10370_v63 = vand.u32 4294901760, %v9362_v38 }
 0x301   : > { %v9689_v47 = vpack.c.bf16 %v3871_v54, %v3868_v10  ;;  %v9695_v18 = vsub.f32 %v3823_v5, %v3871_v54  ;;  %v3835_v5 = vsel %vm1289_vm1, %v5425_v12, 0  ;;  %v5426_v10 = vld [vmem:[%s8636_s15 + $0xf0] sm:$0xff]  ;;  %v5427_v54 = vld [vmem:[%s8636_s15 + $0xf8] sm:$0xff]  ;;  %v10371_v12 = vld [vmem:[#allocation30_spill] sm:$0xff] }
 0x302   : > { %7722 = vmatpush3.bf16.xpose.msra.mxu1 %v9621_v44  ;;  %v7679_v49 = vpack.c.bf16 %v10370_v63, %v10369_v25 }
 0x303   : > { %7724 = vmatprep.subr.bf16.mxu1 %v9646_v62  ;;  %2862 = vperm.xlu1 %8153, %v9539_v48   ;;  %v5423_v48 = vld [vmem:[%s8636_s15 + $0xd8] sm:$0xff]  ;;  %s9963_s15 = sld [smem:[#allocation2]] }
 0x304   : > { %v3829_v51 = vsel %vm1289_vm1, %v5423_v48, 0  ;;  %v3838_v48 = vsel %vm1289_vm1, %v5426_v10, 0 }
 0x305   : > { %v3877_v15 = vand.u32 4294901760, %v3829_v51 }
 0x306   : > { %7670 = vmatpush3.bf16.xpose.msra.mxu0 %v7667_v21  ;;  %v7675_v21 = vpack.c.bf16 %v10368_v45, %v10367_v17  ;;  %v3880_v45 = vand.u32 4294901760, %v3832_v58 }
 0x307   : > { %7672 = vmatprep.subr.bf16.mxu0 %v7671_v26  ;;  %2866 = vperm.xlu1 %8153, %v8166_v52   ;;  %v9700_v52 = vpack.c.bf16 %v9695_v18, %v9693_v60  ;;  %v9715_v38 = vsub.f32 %v3829_v51, %v3877_v15 }
 0x308   : > { %v9730_v51 = vsub.f32 %v3832_v58, %v3880_v45 }
 0x30a   : > { %7726 = vmatpush3.bf16.xpose.msra.mxu1 %v9646_v62 }
 0x30b   : > { %7728 = vmatprep.subr.bf16.mxu1 %v9668_v11 }
 0x30e   : > { %7674 = vmatpush3.bf16.xpose.msra.mxu0 %v7671_v26  ;;  %v3874_v26 = vand.u32 4294901760, %v3826_v8 }
 0x30f   : > { %7676 = vmatprep.subr.bf16.mxu0 %v7675_v21 }
 0x310   : > { %v9709_v14 = vpack.c.bf16 %v3877_v15, %v3874_v26  ;;  %v9713_v40 = vsub.f32 %v3826_v8, %v3874_v26  ;;  %v3841_v8 = vsel %vm1289_vm1, %v5427_v54, 0  ;;  %v10232_v15 = vand.u32 4294901760, %v9597_v6  ;;  %v10372_v54 = vld [vmem:[#allocation9_spill] sm:$0xff] }
 0x311   : > { %v3889_v26 = vand.u32 4294901760, %v3841_v8 }
 0x312   : > { %7730 = vmatpush3.bf16.xpose.msra.mxu1 %v9668_v11  ;;  %v9720_v17 = vpack.c.bf16 %v9715_v38, %v9713_v40 }
 0x313   : > { %7732 = vmatprep.subr.bf16.mxu1 %v9689_v47  ;;  %v9756_v10 = vsub.f32 %v3841_v8, %v3889_v26  ;;  %v10373_v8 = vld [vmem:[#allocation32_spill] sm:$0xff] }
 0x316   : > { %7678 = vmatpush3.bf16.xpose.msra.mxu0 %v7675_v21  ;;  %v3883_v21 = vand.u32 4294901760, %v3835_v5 }
 0x317   : > { %7680 = vmatprep.subr.bf16.mxu0 %v7679_v49 }
 0x318   : > { %v9726_v16 = vpack.c.bf16 %v3883_v21, %v3880_v45  ;;  %v9732_v25 = vsub.f32 %v3835_v5, %v3883_v21  ;;  %v3968_v5 = vsub.f32 %v9597_v6, %v10232_v15  ;;  %v3975_v45 = vsub.f32 %v9599_v32, %v10234_v24 }
 0x319   : > { %v10236_v24 = vand.u32 4294901760, %v9626_v53 }
 0x31a   : > { %7734 = vmatpush3.bf16.xpose.msra.mxu1 %v9689_v47  ;;  %v9737_v63 = vpack.c.bf16 %v9732_v25, %v9730_v51  ;;  %v3969_v15 = vand.u32 4294901760, %v3968_v5  ;;  %v3976_v57 = vand.u32 4294901760, %v3975_v45 }
 0x31b   : > { %7736 = vmatprep.subr.bf16.mxu1 %v9709_v14 }
 0x31e   : > { %7682 = vmatpush3.bf16.xpose.msra.mxu0 %v7679_v49  ;;  %v3886_v49 = vand.u32 4294901760, %v3838_v48 }
 0x31f   : > { %7684 = vmatprep.subr.bf16.mxu0 %v9037_v35 }
 0x320   : > { %v9746_v58 = vpack.c.bf16 %v3889_v26, %v3886_v49  ;;  %v9754_v21 = vsub.f32 %v3838_v48, %v3886_v49  ;;  %v10237_v48 = vand.u32 4294901760, %v9628_v23  ;;  %v7747_v49 = vpack.c.bf16 %v3976_v57, %v3969_v15  ;;  %v10374_v57 = vld [vmem:[#allocation33_spill] sm:$0xff] }
 0x322   : > { %7738 = vmatpush3.bf16.xpose.msra.mxu1 %v9709_v14  ;;  %v3989_v26 = vsub.f32 %v9628_v23, %v10237_v48 }
 0x323   : > { %7740 = vmatprep.subr.bf16.mxu1 %v9726_v16 }
 0x324   : > { %v3990_v45 = vand.u32 4294901760, %v3989_v26 }
 0x325   : > { %6736 = vmatmul.mubr.f32.vlgmr.msra.gmra.mrb[8].mxu0 %v8486_v33 }
 0x326   : > { %7686 = vmatpush3.bf16.xpose.msra.mxu0 %v9037_v35  ;;  %6738 = vmatprep.mubr.f32.mxu0 %v8488_v34  ;;  %v9763_v35 = vpack.c.bf16 %v9756_v10, %v9754_v21 }
 0x327   : > { %7688 = vmatprep.subr.bf16.mxu0 %v10371_v12 }
 0x329   : > { %6739 = vmatmul.mubr.f32.gmra.mrb[10].mxu0 %v10372_v54 }
 0x32a   : > { %7742 = vmatpush3.bf16.xpose.msra.mxu1 %v9726_v16  ;;  %6773 = vmatprep.mubr.f32.mxu0 %v8334_v2  ;;  %v3982_v2 = vsub.f32 %v9626_v53, %v10236_v24  ;;  %v3996_v24 = vsub.f32 %v9651_v28, %v10240_v37  ;;  %v10378_v37 = vld [vmem:[#allocation16_spill] sm:$0xff] }
 0x32b   : > { %7744 = vmatprep.subr.bf16.mxu1 %v9746_v58 }
 0x32c   : > { %v3983_v5 = vand.u32 4294901760, %v3982_v2  ;;  %v10376_v2 = vld [vmem:[#allocation29_spill] sm:$0xff]  ;;  %v3997_v26 = vand.u32 4294901760, %v3996_v24 }
 0x32e   : > { %7690 = vmatpush3.bf16.xpose.msra.mxu0 %v10371_v12  ;;  %v10241_v12 = vand.u32 4294901760, %v9653_v22  ;;  %v7751_v15 = vpack.c.bf16 %v3990_v45, %v3983_v5  ;;  %v10242_v5 = vand.u32 4294901760, %v9674_v4  ;;  %v10377_v45 = vld [vmem:[#allocation31_spill] sm:$0xff] }
 0x32f   : > { %7692 = vmatprep.subr.bf16.mxu0 %v10373_v8 }
 0x330   : > { %v4003_v48 = vsub.f32 %v9653_v22, %v10241_v12  ;;  %v4017_v24 = vsub.f32 %v9674_v4, %v10242_v5  ;;  %v10244_v5 = vand.u32 4294901760, %v9715_v38 }
 0x332   : > { %7746 = vmatpush3.bf16.xpose.msra.mxu1 %v9746_v58  ;;  %v4004_v0 = vand.u32 4294901760, %v4003_v48 }
 0x333   : > { %7748 = vmatprep.subr.bf16.mxu1 %v7747_v49 }
 0x334   : > { %v7755_v12 = vpack.c.bf16 %v4004_v0, %v3997_v26 }
 0x336   : > { %7694 = vmatpush3.bf16.xpose.msra.mxu0 %v10373_v8  ;;  %v4009_v8 = vand.u32 4294901760, %v9672_v20 }
 0x337   : > { %7696 = vmatprep.subr.bf16.mxu0 %v10374_v57 }
 0x339   : > { %6812 = vmatmul.mubr.f32.vlgmr.msra.gmra.mrb[4].mxu1 %v10375_v13  ;;  %v4010_v13 = vsub.f32 %v9672_v20, %v4009_v8 }
 0x33a   : > { %7750 = vmatpush3.bf16.xpose.msra.mxu1 %v7747_v49  ;;  %6814 = vmatprep.mubr.f32.mxu1 %v10376_v2  ;;  %v4018_v49 = vand.u32 4294901760, %v4017_v24  ;;  %v10250_v2 = vand.u32 4294901760, %v9693_v60  ;;  %v10249_v24 = vand.u32 4294901760, %v9713_v40 }
 0x33b   : > { %7752 = vmatprep.subr.bf16.mxu1 %v7751_v15  ;;  %v4011_v48 = vand.u32 4294901760, %v4010_v13 }
 0x33c   : > { %v4024_v26 = vsub.f32 %v9693_v60, %v10250_v2  ;;  %v10395_v2 = vld [vmem:[#allocation25_spill] sm:$0xff] }
 0x33d   : > { %6815 = vmatmul.mubr.f32.gmra.mrb[6].mxu1 %v10377_v45  ;;  %v7759_v0 = vpack.c.bf16 %v4018_v49, %v4011_v48  ;;  %v4038_v48 = vsub.f32 %v9713_v40, %v10249_v24 }
 0x33e   : > { %7698 = vmatpush3.bf16.xpose.msra.mxu0 %v10374_v57  ;;  %6849 = vmatprep.mubr.f32.mxu1 %v10378_v37  ;;  %v10243_v57 = vand.u32 4294901760, %v9695_v18  ;;  %v4025_v45 = vand.u32 4294901760, %v4024_v26 }
 0x33f   : > { %7700 = vmatprep.subr.bf16.mxu0 %v9141_v7  ;;  %v4039_v49 = vand.u32 4294901760, %v4038_v48 }
 0x342   : > { %7754 = vmatpush3.bf16.xpose.msra.mxu1 %v7751_v15  ;;  %v4031_v15 = vsub.f32 %v9695_v18, %v10243_v57  ;;  %v10247_v57 = vand.u32 4294901760, %v9732_v25 }
 0x343   : > { %7756 = vmatprep.subr.bf16.mxu1 %v7755_v12 }
 0x344   : > { %v4032_v13 = vand.u32 4294901760, %v4031_v15  ;;  %v10248_v15 = vand.u32 4294901760, %v9730_v51 }
 0x346   : > { %7702 = vmatpush3.bf16.xpose.msra.mxu0 %v9141_v7  ;;  %v7763_v7 = vpack.c.bf16 %v4032_v13, %v4025_v45  ;;  %v4052_v45 = vsub.f32 %v9730_v51, %v10248_v15 }
 0x347   : > { %7704 = vmatprep.subr.bf16.mxu0 %v9160_v19 }
 0x348   : > { %v4053_v13 = vand.u32 4294901760, %v4052_v45 }
 0x34a   : > { %7758 = vmatpush3.bf16.xpose.msra.mxu1 %v7755_v12  ;;  %v4045_v12 = vsub.f32 %v9715_v38, %v10244_v5  ;;  %v10245_v5 = vand.u32 4294901760, %v9756_v10 }
 0x34b   : > { %7760 = vmatprep.subr.bf16.mxu1 %v7759_v0 }
 0x34c   : > { %v4046_v26 = vand.u32 4294901760, %v4045_v12  ;;  %v10246_v12 = vand.u32 4294901760, %v9754_v21 }
 0x34e   : > { %7706 = vmatpush3.bf16.xpose.msra.mxu0 %v9160_v19  ;;  %v7767_v19 = vpack.c.bf16 %v4046_v26, %v4039_v49  ;;  %v4066_v49 = vsub.f32 %v9754_v21, %v10246_v12  ;;  %v4073_v26 = vsub.f32 %v9756_v10, %v10245_v5 }
 0x34f   : > { %7708 = vmatprep.subr.bf16.mxu0 %v9182_v46 }
 0x350   : > { %v4074_v45 = vand.u32 4294901760, %v4073_v26 }
 0x352   : > { %7762 = vmatpush3.bf16.xpose.msra.mxu1 %v7759_v0  ;;  %v4059_v0 = vsub.f32 %v9732_v25, %v10247_v57 }
 0x353   : > { %7764 = vmatprep.subr.bf16.mxu1 %v7763_v7 }
 0x354   : > { %v4060_v48 = vand.u32 4294901760, %v4059_v0 }
 0x356   : > { %7710 = vmatpush3.bf16.xpose.msra.mxu0 %v9182_v46  ;;  %v7771_v46 = vpack.c.bf16 %v4060_v48, %v4053_v13  ;;  %v10381_v13 = vld [vmem:[#allocation19_spill] sm:$0xff] }
 0x357   : > { %7712 = vmatprep.subr.bf16.mxu0 %v9214_v27  ;;  %v10388_v48 = vld [vmem:[#allocation43_spill] sm:$0xff] }
 0x35a   : > { %7766 = vmatpush3.bf16.xpose.msra.mxu1 %v7763_v7  ;;  %v4067_v7 = vand.u32 4294901760, %v4066_v49 }
 0x35b   : > { %7768 = vmatprep.subr.bf16.mxu1 %v7767_v19 }
 0x35c   : > { %v7775_v0 = vpack.c.bf16 %v4074_v45, %v4067_v7  ;;  %v10389_v45 = vld [vmem:[#allocation44_spill] sm:$0xff] }
 0x35e   : > { %7714 = vmatpush3.bf16.xpose.msra.mxu0 %v9214_v27  ;;  %v10379_v27 = vld [vmem:[#allocation17_spill] sm:$0xff] }
 0x362   : > { %7770 = vmatpush3.bf16.xpose.msra.mxu1 %v7767_v19  ;;  %v10380_v19 = vld [vmem:[#allocation18_spill] sm:$0xff] }
 0x363   : > { %7772 = vmatprep.subr.bf16.mxu1 %v7771_v46 }
 0x365   : > { %6774 = vmatmul.mubr.f32.vlgmr.msra.gmra.mrb[8].mxu0 %v8486_v33  ;;  %v10382_v33 = vld [vmem:[#allocation20_spill] sm:$0xff] }
 0x366   : > { %6776 = vmatprep.mubr.f32.mxu0 %v8488_v34  ;;  %v10383_v34 = vld [vmem:[#allocation21_spill] sm:$0xff] }
 0x369   : > { %6777 = vmatmul.mubr.f32.gmra.mrb[10].mxu0 %v10372_v54 }
 0x36a   : > { %7774 = vmatpush3.bf16.xpose.msra.mxu1 %v7771_v46 }
 0x36b   : > { %7776 = vmatprep.subr.bf16.mxu1 %v7775_v0 }
 0x372   : > { %7778 = vmatpush3.bf16.xpose.msra.mxu1 %v7775_v0 }
 0x373   : > { %7780 = vmatprep.subr.bf16.mxu1 %v9610_v43 }
 0x379   : > { %6850 = vmatmul.mubr.f32.vlgmr.msra.gmra.mrb[4].mxu1 %v10379_v27 }
 0x37a   : > { %7782 = vmatpush3.bf16.xpose.msra.mxu1 %v9610_v43  ;;  %6852 = vmatprep.mubr.f32.mxu1 %v10380_v19  ;;  %v10384_v43 = vld [vmem:[#allocation22_spill] sm:$0xff] }
 0x37b   : > { %7784 = vmatprep.subr.bf16.mxu1 %v9637_v50 }
 0x37d   : > { %6853 = vmatmul.mubr.f32.gmra.mrb[6].mxu1 %v10381_v13 }
 0x37e   : > { %6887 = vmatprep.mubr.f32.mxu1 %v10382_v33 }
 0x382   : > { %7786 = vmatpush3.bf16.xpose.msra.mxu1 %v9637_v50  ;;  %v10385_v50 = vld [vmem:[#allocation23_spill] sm:$0xff] }
 0x383   : > { %7788 = vmatprep.subr.bf16.mxu1 %v9658_v29 }
 0x38a   : > { %7790 = vmatpush3.bf16.xpose.msra.mxu1 %v9658_v29  ;;  %v10386_v29 = vld [vmem:[#allocation24_spill] sm:$0xff] }
 0x38b   : > { %7792 = vmatprep.subr.bf16.mxu1 %v9680_v31 }
 0x392   : > { %7794 = vmatpush3.bf16.xpose.msra.mxu1 %v9680_v31  ;;  %v9872_v31 = vpop.permute.xlu1 %2752 }
 0x393   : > { %7796 = vmatprep.subr.bf16.mxu1 %v9700_v52 }
 0x39a   : > { %7798 = vmatpush3.bf16.xpose.msra.mxu1 %v9700_v52 }
 0x39b   : > { %7800 = vmatprep.subr.bf16.mxu1 %v9720_v17 }
 0x3a2   : > { %7802 = vmatpush3.bf16.xpose.msra.mxu1 %v9720_v17  ;;  %v10387_v17 = vld [vmem:[#allocation41_spill] sm:$0xff] }
 0x3a3   : > { %7804 = vmatprep.subr.bf16.mxu1 %v9737_v63 }
 0x3aa   : > { %7806 = vmatpush3.bf16.xpose.msra.mxu1 %v9737_v63 }
 0x3ab   : > { %7808 = vmatprep.subr.bf16.mxu1 %v9763_v35 }
 0x3b2   : > { %7810 = vmatpush3.bf16.xpose.msra.mxu1 %v9763_v35  ;;  %v9875_v35 = vpop.permute.xlu0 %2748 }
 0x3b3   : > { %7812 = vmatprep.subr.bf16.mxu1 %v9592_v61 }
 0x3b9   : > { %6888 = vmatmul.mubr.f32.vlgmr.msra.gmra.mrb[4].mxu1 %v10383_v34  ;;  %v9883_v34 = vpop.permute.xlu1 %2756 }
 0x3ba   : > { %7814 = vmatpush3.bf16.xpose.msra.mxu1 %v9592_v61  ;;  %6890 = vmatprep.mubr.f32.mxu1 %v10384_v43 }
 0x3bb   : > { %7816 = vmatprep.subr.bf16.mxu1 %v9621_v44 }
 0x3bd   : > { %6891 = vmatmul.mubr.f32.gmra.mrb[6].mxu1 %v10385_v50  ;;  %v10390_v50 = vld [vmem:[#allocation46_spill] sm:$0xff]  ;;  %v9896_v24 = vpop.permute.xlu1 %2802 }
 0x3be   : > { %6925 = vmatprep.mubr.f32.mxu1 %v10386_v29 }
 0x3c2   : > { %7818 = vmatpush3.bf16.xpose.msra.mxu1 %v9621_v44 }
 0x3c3   : > { %7820 = vmatprep.subr.bf16.mxu1 %v9646_v62 }
 0x3c7   : > { %v6547_v52 = vpop.f32.mrb[0].mxu1 }
 0x3c8   : > { %v7959_v63 = vadd.f32 %v6547_v52, %v10387_v17  ;;  %v2725_v54 = vpop.f32.mrb[1].mxu1  ;;  %v9886_v52 = vpop.permute.xlu0 %2760 }
 0x3c9   : > { %v7960_v46 = vadd.f32 %v2725_v54, %v10388_v48 }
 0x3ca   : > { %v2764_v49 = vadd.f32 %v7959_v63, %v9872_v31  ;;  %7822 = vmatpush3.bf16.xpose.msra.mxu1 %v9646_v62 }
 0x3cb   : > { %v2763_v26 = vadd.f32 %v7960_v46, %v9875_v35  ;;  %v6550_v7 = vpop.f32.mrb[2].mxu1  ;;  %7824 = vmatprep.subr.bf16.mxu1 %v9668_v11 }
 0x3cc   : > { %v7961_v0 = vadd.f32 %v6550_v7, %v10389_v45  ;;  %v2737_v33 = vpop.f32.mrb[3].mxu1 }
 0x3cd   : > { %v2767_v43 = vadd.f32 %v2764_v49, %v2763_v26  ;;  %v7962_v29 = vadd.f32 %v2737_v33, %v10390_v50 }
 0x3ce   : > { %v2766_v63 = vadd.f32 %v7961_v0, %v9886_v52 }
 0x3cf   : > { %v2765_v17 = vadd.f32 %v7962_v29, %v9883_v34 }
 0x3d1   : > { %v2768_v54 = vadd.f32 %v2767_v43, %v2765_v17 }
 0x3d2   : > { %7826 = vmatpush3.bf16.xpose.msra.mxu1 %v9668_v11 }
 0x3d3   : > { %v2769_v48 = vadd.f32 %v2768_v54, %v2766_v63  ;;  %7828 = vmatprep.subr.bf16.mxu1 %v9689_v47 }
 0x3d5   : > { %v2770_v46 = vrot.slane %v2769_v48, 4 }
 0x3d7   : > { %v2771_v7 = vadd.f32 %v2770_v46, %v2769_v48 }
 0x3d9   : > { %v2772_v45 = vrot.slane %v2771_v7, 2 }
 0x3da   : > { %7830 = vmatpush3.bf16.xpose.msra.mxu1 %v9689_v47 }
 0x3db   : > { %v2773_v5 = vadd.f32 %v2772_v45, %v2771_v7  ;;  %7832 = vmatprep.subr.bf16.mxu1 %v9709_v14 }
 0x3dd   : > { %v2774_v33 = vrot.slane %v2773_v5, 1 }
 0x3df   : > { %v2775_v50 = vadd.f32 %v2774_v33, %v2773_v5 }
 0x3e1   : > { %v2776_v12 = vmul.f32 0.03125, %v2775_v50 }
 0x3e2   : > { %7834 = vmatpush3.bf16.xpose.msra.mxu1 %v9709_v14 }
 0x3e3   : > { %v2779_v0 = vsub.f32 %v2765_v17, %v2776_v12  ;;  %v2777_v43 = vsub.f32 %v2763_v26, %v2776_v12  ;;  %v2778_v29 = vsub.f32 %v2764_v49, %v2776_v12  ;;  %v2780_v57 = vsub.f32 %v2766_v63, %v2776_v12  ;;  %7836 = vmatprep.subr.bf16.mxu1 %v9726_v16  ;;  %v9900_v26 = vpop.permute.xlu1 %2810 }
 0x3e4   : > { %v10391_v12 = vand.u32 4294901760, %v9597_v6  ;;  %v10392_v49 = vand.u32 4294901760, %v9599_v32  ;;  %v10396_v6 = vld [vmem:[#allocation26_spill] sm:$0xff] }
 0x3e5   : > { %v2781_v54 = vmul.f32 %v2777_v43, %v2777_v43  ;;  %v2782_v15 = vmul.f32 %v2778_v29, %v2778_v29  ;;  %v2783_v48 = vmul.f32 %v2779_v0, %v2779_v0  ;;  %v2784_v7 = vmul.f32 %v2780_v57, %v2780_v57 }
 0x3e6   : > { %v7843_v63 = vpack.c.bf16 %v10392_v49, %v10391_v12  ;;  %v10397_v49 = vld [vmem:[#allocation27_spill] sm:$0xff] }
 0x3e7   : > { %v2785_v46 = vadd.f32 %v2782_v15, %v2781_v54 }
 0x3e9   : > { %v2786_v45 = vadd.f32 %v2785_v46, %v2783_v48  ;;  %v9907_v48 = vpop.permute.xlu1 %2822 }
 0x3ea   : > { %7838 = vmatpush3.bf16.xpose.msra.mxu1 %v9726_v16 }
 0x3eb   : > { %v2787_v5 = vadd.f32 %v2786_v45, %v2784_v7  ;;  %7840 = vmatprep.subr.bf16.mxu1 %v9746_v58  ;;  %v10393_v7 = vand.u32 4294901760, %v9626_v53  ;;  %v10394_v45 = vand.u32 4294901760, %v9628_v23  ;;  %v10398_v53 = vand.u32 4294901760, %v9651_v28 }
 0x3ec   : > { %v10399_v23 = vand.u32 4294901760, %v9653_v22 }
 0x3ed   : > { %v2788_v33 = vrot.slane %v2787_v5, 4  ;;  %v9915_v12 = vpop.permute.xlu1 %2814 }
 0x3ef   : > { %v2789_v17 = vadd.f32 %v2788_v33, %v2787_v5  ;;  %v7847_v5 = vpack.c.bf16 %v10394_v45, %v10393_v7 }
 0x3f1   : > { %v2790_v50 = vrot.slane %v2789_v17, 2 }
 0x3f2   : > { %7842 = vmatpush3.bf16.xpose.msra.mxu1 %v9746_v58 }
 0x3f3   : > { %v2791_v15 = vadd.f32 %v2790_v50, %v2789_v17  ;;  %7844 = vmatprep.subr.bf16.mxu1 %v7843_v63  ;;  %v9917_v17 = vpop.permute.xlu0 %2806  ;;  %v7851_v50 = vpack.c.bf16 %v10399_v23, %v10398_v53 }
 0x3f5   : > { %v2792_v54 = vrot.slane %v2791_v15, 1 }
 0x3f7   : > { %v2793_v46 = vadd.f32 %v2792_v54, %v2791_v15 }
 0x3f9   : > { %v2794_v33 = vmul.f32 0.03125, %v2793_v46  ;;  %6926 = vmatmul.mubr.f32.vlgmr.msra.gmra.mrb[4].mxu1 %v10395_v2  ;;  %v9925_v2 = vpop.permute.xlu1 %2830  ;;  %v10401_v46 = vand.u32 4294901760, %v9674_v4 }
 0x3fa   : > { %7846 = vmatpush3.bf16.xpose.msra.mxu1 %v7843_v63  ;;  %6928 = vmatprep.mubr.f32.mxu1 %v10396_v6  ;;  %10400 = vst [vmem:[#allocation11_spill] sm:$0xff] %v9925_v2  ;;  %v9927_v63 = vpop.permute.xlu0 %2826 }
 0x3fb   : > { %v2795_v32 = vadd.f32 1e-05, %v2794_v33  ;;  %7848 = vmatprep.subr.bf16.mxu1 %v7847_v5  ;;  %v7855_v7 = vpack.c.bf16 %v10401_v46, %v4009_v8  ;;  %v10403_v46 = vand.u32 4294901760, %v9693_v60 }
 0x3fd   : > { %8157 = vrsqrt.f32 %v2795_v32  ;;  %6929 = vmatmul.mubr.f32.gmra.mrb[6].mxu1 %v10397_v49  ;;  %v9929_v54 = vpop.permute.xlu1 %2854 }
 0x3fe   : > { %6963 = vmatprep.mubr.f32.mxu1 %v10378_v37  ;;  %v9935_v22 = vpop.permute.xlu0 %2834 }
 0x3ff   : > { %10402 = vst [vmem:[#allocation13_spill] sm:$0xff] %v9935_v22 }
 0x402   : > { %7850 = vmatpush3.bf16.xpose.msra.mxu1 %v7847_v5 }
 0x403   : > { %7852 = vmatprep.subr.bf16.mxu1 %v7851_v50 }
 0x407   : > { %v8158_v15 = vpop.eup %8157 }
 0x408   : > { %v2797_v45 = vmul.f32 %v8158_v15, %v2777_v43  ;;  %v2799_v33 = vmul.f32 %v8158_v15, %v2779_v0  ;;  %v2800_v28 = vmul.f32 %v8158_v15, %v2780_v57  ;;  %v2798_v6 = vmul.f32 %v8158_v15, %v2778_v29  ;;  %v9945_v0 = vpop.permute.xlu1 %2862  ;;  %v9947_v15 = vpop.permute.xlu0 %2858 }
 0x40a   : > { %v2817_v32 = vmul.f32 %v9896_v24, %v2797_v45  ;;  %v2819_v5 = vmul.f32 %v9900_v26, %v2799_v33  ;;  %v2820_v49 = vmul.f32 %v9915_v12, %v2800_v28  ;;  %v2818_v53 = vmul.f32 %v9917_v17, %v2798_v6  ;;  %7854 = vmatpush3.bf16.xpose.msra.mxu1 %v7851_v50 }
 0x40b   : > { %7856 = vmatprep.subr.bf16.mxu1 %v7855_v7  ;;  %v10404_v45 = vand.u32 4294901760, %v9695_v18 }
 0x40c   : > { %v2837_v20 = vadd.f32 %v9907_v48, %v2817_v32  ;;  %v2839_v4 = vadd.f32 %v9925_v2, %v2819_v5  ;;  %v2838_v8 = vadd.f32 %v9927_v63, %v2818_v53  ;;  %v2840_v57 = vadd.f32 %v9935_v22, %v2820_v49  ;;  %v9955_v53 = vpop.permute.xlu1 %2866 }
 0x40d   : > { %v7859_v33 = vpack.c.bf16 %v10404_v45, %v10403_v46  ;;  %v2884_v46 = vlaneseq  ;;  %v2882_v45 = vstv %s9963_s15 }
 0x40e   : > { %v2845_v43 = vmul.f32 0.01, %v2837_v20  ;;  %v2847_v29 = vmul.f32 0.01, %v2839_v4  ;;  %vm2841_vm7 = vcmp.ge.f32.partialorder %v2837_v20, 0.0  ;;  %vm2843_vm8 = vcmp.ge.f32.partialorder %v2839_v4, 0.0 }
 0x40f   : > { %v2848_v23 = vmul.f32 0.01, %v2840_v57  ;;  %vm2842_vm9 = vcmp.ge.f32.partialorder %v2838_v8, 0.0  ;;  %v2846_v50 = vmul.f32 0.01, %v2838_v8  ;;  %vm2844_vm10 = vcmp.ge.f32.partialorder %v2840_v57, 0.0 }
 0x410   : > { %v2849_v28 = vsel %vm2841_vm7, %v2837_v20, %v2845_v43  ;;  %v2851_v32 = vsel %vm2843_vm8, %v2839_v4, %v2847_v29  ;;  %v10405_v43 = vand.u32 4294901760, %v9713_v40  ;;  %v10406_v4 = vand.u32 4294901760, %v9715_v38 }
 0x411   : > { %v2869_v6 = vmul.f32 %v9929_v54, %v2849_v28  ;;  %v2850_v5 = vsel %vm2842_vm9, %v2838_v8, %v2846_v50  ;;  %v2852_v22 = vsel %vm2844_vm10, %v2840_v57, %v2848_v23  ;;  %v2871_v2 = vmul.f32 %v9945_v0, %v2851_v32 }
 0x412   : > { %v2870_v49 = vmul.f32 %v9947_v15, %v2850_v5  ;;  %7858 = vmatpush3.bf16.xpose.msra.mxu1 %v7855_v7  ;;  %v2872_v18 = vmul.f32 %v9955_v53, %v2852_v22  ;;  %v7863_v8 = vpack.c.bf16 %v10406_v4, %v10405_v43  ;;  %v10407_v23 = vand.u32 4294901760, %v9730_v51 }
 0x413   : > { %7860 = vmatprep.subr.bf16.mxu1 %v7859_v33  ;;  %v10408_v22 = vand.u32 4294901760, %v9732_v25  ;;  %vm9973_vm11 = vcmp.lt.s32.totalorder %v2884_v46, 128  ;;  %v10411_v51 = vand.u32 4294901760, %v9754_v21  ;;  %v10412_v25 = vand.u32 4294901760, %v9756_v10  ;;  %v10414_v21 = vld [vmem:[#allocation6_spill] sm:$0xff] }
 0x414   : > { %v2873_v60 = vadd.f32 %v2870_v49, %v2869_v6  ;;  %v10413_v49 = vld [vmem:[#allocation35_spill] sm:$0xff] }
 0x415   : > { %v7871_v32 = vpack.c.bf16 %v10412_v25, %v10411_v51 }
 0x416   : > { %v2874_v20 = vadd.f32 %v2873_v60, %v2871_v2  ;;  %v7867_v2 = vpack.c.bf16 %v10408_v22, %v10407_v23 }
 0x418   : > { %v2875_v29 = vadd.f32 %v2874_v20, %v2872_v18 }
 0x41a   : > { %v2876_v50 = vrot.slane %v2875_v29, 4  ;;  %7862 = vmatpush3.bf16.xpose.msra.mxu1 %v7859_v33 }
 0x41b   : > { %7864 = vmatprep.subr.bf16.mxu1 %v7863_v8 }
 0x41c   : > { %v2877_v7 = vadd.f32 %v2876_v50, %v2875_v29  ;;  %v10416_v50 = vld [vmem:[#allocation37_spill] sm:$0xff] }
 0x41e   : > { %v2878_v57 = vrot.slane %v2877_v7, 2 }
 0x420   : > { %v2879_v40 = vadd.f32 %v2878_v57, %v2877_v7 }
 0x422   : > { %v2880_v38 = vrot.slane %v2879_v40, 1  ;;  %7866 = vmatpush3.bf16.xpose.msra.mxu1 %v7863_v8  ;;  %v10415_v8 = vld [vmem:[#allocation36_spill] sm:$0xff] }
 0x423   : > { %7868 = vmatprep.subr.bf16.mxu1 %v7867_v2 }
 0x424   : > { %v2881_v33 = vadd.f32 %v2880_v38, %v2879_v40 }
 0x426   : > { %v2883_v6 = vadd.f32 %v2882_v45, %v2881_v33 }
 0x428   : > { %2888 = vst.msk [vmem:[%s9983_s23] sm:$0x1] %vm9973_vm11, %v2883_v6 }
 0x42a   : > { %7870 = vmatpush3.bf16.xpose.msra.mxu1 %v7867_v2 }
 0x42b   : > { %7872 = vmatprep.subr.bf16.mxu1 %v7871_v32 }
 0x432   : > { %7874 = vmatpush3.bf16.xpose.msra.mxu1 %v7871_v32 }
 0x433   : > { %7876 = vmatprep.subr.bf16.mxu1 %v9592_v61 }
 0x438   : > { %v6775_v5 = vpop.f32.mrb[8].mxu0 }
 0x439   : > { %v7963_v60 = vadd.f32 %v6775_v5, %v10413_v49  ;;  %v3719_v18 = vpop.f32.mrb[9].mxu0  ;;  %6964 = vmatmul.mubr.f32.vlgmr.msra.gmra.mrb[4].mxu1 %v10379_v27 }
 0x43a   : > { %v7964_v10 = vadd.f32 %v3719_v18, %v10414_v21  ;;  %7878 = vmatpush3.bf16.xpose.msra.mxu1 %v9592_v61  ;;  %6966 = vmatprep.mubr.f32.mxu1 %v10380_v19 }
 0x43b   : > { %7880 = vmatprep.subr.bf16.mxu1 %v9621_v44 }
 0x43c   : > { %v3741_v20 = vadd.f32 %v7964_v10, %v7963_v60  ;;  %v6778_v43 = vpop.f32.mrb[10].mxu0 }
 0x43d   : > { %v3731_v4 = vpop.f32.mrb[11].mxu0  ;;  %6967 = vmatmul.mubr.f32.gmra.mrb[6].mxu1 %v10381_v13  ;;  %v7965_v7 = vadd.f32 %v6778_v43, %v10416_v50 }
 0x43e   : > { %v7966_v29 = vadd.f32 %v3731_v4, %v10415_v8  ;;  %7001 = vmatprep.mubr.f32.mxu1 %v10378_v37 }
 0x440   : > { %v3742_v57 = vadd.f32 %v7966_v29, %v3741_v20 }
 0x442   : > { %v3743_v23 = vadd.f32 %v7965_v7, %v3742_v57  ;;  %7882 = vmatpush3.bf16.xpose.msra.mxu1 %v9621_v44 }
 0x443   : > { %7884 = vmatprep.subr.bf16.mxu1 %v9646_v62 }
 0x444   : > { %v3744_v61 = vrot.slane %v3743_v23, 4 }
 0x446   : > { %v3745_v22 = vadd.f32 %v3744_v61, %v3743_v23  ;;  %v10417_v61 = vld [vmem:[#allocation10_spill] sm:$0xff] }
 0x448   : > { %v3746_v2 = vrot.slane %v3745_v22, 2 }
 0x44a   : > { %v3747_v40 = vadd.f32 %v3746_v2, %v3745_v22  ;;  %7886 = vmatpush3.bf16.xpose.msra.mxu1 %v9646_v62  ;;  %v10418_v22 = vld [vmem:[#allocation38_spill] sm:$0xff] }
 0x44b   : > { %7888 = vmatprep.subr.bf16.mxu1 %v9668_v11 }
 0x44c   : > { %v3748_v46 = vrot.slane %v3747_v40, 1 }
 0x44e   : > { %v3749_v38 = vadd.f32 %v3748_v46, %v3747_v40  ;;  %v10419_v40 = vld [vmem:[#allocation12_spill] sm:$0xff] }
 0x450   : > { %v3750_v33 = vmul.f32 0.03125, %v3749_v38  ;;  %v10420_v38 = vld [vmem:[#allocation39_spill] sm:$0xff] }
 0x452   : > { %v3751_v37 = vsub.f32 %v7964_v10, %v3750_v33  ;;  %v3752_v6 = vsub.f32 %v7963_v60, %v3750_v33  ;;  %v3753_v51 = vsub.f32 %v7966_v29, %v3750_v33  ;;  %v3754_v25 = vsub.f32 %v7965_v7, %v3750_v33  ;;  %7890 = vmatpush3.bf16.xpose.msra.mxu1 %v9668_v11 }
 0x453   : > { %7892 = vmatprep.subr.bf16.mxu1 %v9689_v47 }
 0x454   : > { %v3755_v44 = vmul.f32 %v3751_v37, %v3751_v37  ;;  %v3756_v32 = vmul.f32 %v3752_v6, %v3752_v6  ;;  %v3757_v5 = vmul.f32 %v3753_v51, %v3753_v51  ;;  %v3758_v18 = vmul.f32 %v3754_v25, %v3754_v25 }
 0x456   : > { %v3759_v49 = vadd.f32 %v3756_v32, %v3755_v44 }
 0x458   : > { %v3760_v21 = vadd.f32 %v3759_v49, %v3757_v5 }
 0x45a   : > { %v3761_v62 = vadd.f32 %v3760_v21, %v3758_v18  ;;  %7894 = vmatpush3.bf16.xpose.msra.mxu1 %v9689_v47 }
 0x45b   : > { %7896 = vmatprep.subr.bf16.mxu1 %v9709_v14 }
 0x45c   : > { %v3762_v20 = vrot.slane %v3761_v62, 4 }
 0x45e   : > { %v3763_v10 = vadd.f32 %v3762_v20, %v3761_v62 }
 0x460   : > { %v3764_v60 = vrot.slane %v3763_v10, 2 }
 0x462   : > { %v3765_v43 = vadd.f32 %v3764_v60, %v3763_v10  ;;  %7898 = vmatpush3.bf16.xpose.msra.mxu1 %v9709_v14 }
 0x463   : > { %7900 = vmatprep.subr.bf16.mxu1 %v9726_v16 }
 0x464   : > { %v3766_v11 = vrot.slane %v3765_v43, 1 }
 0x466   : > { %v3767_v4 = vadd.f32 %v3766_v11, %v3765_v43 }
 0x468   : > { %v3768_v8 = vmul.f32 0.03125, %v3767_v4 }
 0x46a   : > { %v3769_v29 = vadd.f32 1e-05, %v3768_v8  ;;  %7902 = vmatpush3.bf16.xpose.msra.mxu1 %v9726_v16  ;;  %v10421_v16 = vld [vmem:[#allocation8_spill] sm:$0xff] }
 0x46b   : > { %7904 = vmatprep.subr.bf16.mxu1 %v9746_v58 }
 0x46c   : > { %8159 = vrsqrt.f32 %v3769_v29 }
 0x472   : > { %7906 = vmatpush3.bf16.xpose.msra.mxu1 %v9746_v58  ;;  %v10422_v58 = vld [vmem:[#allocation7_spill] sm:$0xff] }
 0x476   : > { %v8160_v47 = vpop.eup %8159 }
 0x477   : > { %v3771_v50 = vmul.f32 %v8160_v47, %v3751_v37  ;;  %v3772_v7 = vmul.f32 %v8160_v47, %v3752_v6  ;;  %v3773_v57 = vmul.f32 %v8160_v47, %v3753_v51  ;;  %v3774_v23 = vmul.f32 %v8160_v47, %v3754_v25  ;;  %v10423_v37 = vld [vmem:[#allocation40_spill] sm:$0xff]  ;;  %v10424_v51 = vld [vmem:[#allocation42_spill] sm:$0xff] }
 0x479   : > { %v3775_v14 = vmul.f32 %v3771_v50, %v10417_v61  ;;  %v3776_v2 = vmul.f32 %v3772_v7, %v10418_v22  ;;  %v3777_v46 = vmul.f32 %v3773_v57, %v10419_v40  ;;  %v3778_v33 = vmul.f32 %v3774_v23, %v10420_v38  ;;  %7002 = vmatmul.mubr.f32.vlgmr.msra.gmra.mrb[4].mxu1 %v10379_v27  ;;  %v10425_v27 = vld [vmem:[#allocation34_spill] sm:$0xff] }
 0x47a   : > { %7004 = vmatprep.mubr.f32.mxu1 %v10380_v19 }
 0x47b   : > { %v3779_v44 = vadd.f32 %v3775_v14, %v10421_v16  ;;  %v3780_v32 = vadd.f32 %v3776_v2, %v10422_v58  ;;  %v3781_v6 = vadd.f32 %v3777_v46, %v10423_v37  ;;  %v3782_v25 = vadd.f32 %v3778_v33, %v10424_v51 }
 0x47d   : > { %vm3785_vm12 = vcmp.ge.f32.partialorder %v3781_v6, 0.0  ;;  %vm3786_vm13 = vcmp.ge.f32.partialorder %v3782_v25, 0.0  ;;  %v3787_v5 = vmul.f32 0.01, %v3779_v44  ;;  %v3788_v49 = vmul.f32 0.01, %v3780_v32  ;;  %7005 = vmatmul.mubr.f32.gmra.mrb[6].mxu1 %v10381_v13 }
 0x47e   : > { %v3789_v18 = vmul.f32 0.01, %v3781_v6  ;;  %v3790_v21 = vmul.f32 0.01, %v3782_v25  ;;  %vm3783_vm14 = vcmp.ge.f32.partialorder %v3779_v44, 0.0  ;;  %vm3784_vm15 = vcmp.ge.f32.partialorder %v3780_v32, 0.0  ;;  %7015 = vmatprep.mubr.f32.mxu1 %v10425_v27 }
 0x47f   : > { %v3791_v19 = vsel %vm3783_vm14, %v3779_v44, %v3787_v5  ;;  %v3792_v62 = vsel %vm3784_vm15, %v3780_v32, %v3788_v49 }
 0x480   : > { %v3793_v20 = vsel %vm3785_vm12, %v3781_v6, %v3789_v18  ;;  %v3794_v10 = vsel %vm3786_vm13, %v3782_v25, %v3790_v21  ;;  %v4614_v60 = vand.u32 4294901760, %v3791_v19  ;;  %v4617_v43 = vand.u32 4294901760, %v3792_v62 }
 0x481   : > { %v4620_v11 = vand.u32 4294901760, %v3793_v20  ;;  %v4623_v4 = vand.u32 4294901760, %v3794_v10 }
 0x482   : > { %v7907_v8 = vpack.c.bf16 %v4617_v43, %v4614_v60  ;;  %v4724_v29 = vsub.f32 %v3791_v19, %v4614_v60  ;;  %v4731_v47 = vsub.f32 %v3792_v62, %v4617_v43 }
 0x483   : > { %v7911_v50 = vpack.c.bf16 %v4623_v4, %v4620_v11  ;;  %v4738_v7 = vsub.f32 %v3793_v20, %v4620_v11  ;;  %v4745_v13 = vsub.f32 %v3794_v10, %v4623_v4 }
 0x484   : > { %7908 = vmatprep.subr.bf16.mxu1 %v7907_v8  ;;  %v4725_v57 = vand.u32 4294901760, %v4724_v29  ;;  %v4732_v23 = vand.u32 4294901760, %v4731_v47  ;;  %v7923_v61 = vpack.c.bf16 %v4731_v47, %v4724_v29 }
 0x485   : > { %7910 = vmatpush3.bf16.msra.mxu1 %v7907_v8  ;;  %v4739_v14 = vand.u32 4294901760, %v4738_v7  ;;  %v4746_v22 = vand.u32 4294901760, %v4745_v13  ;;  %v7927_v2 = vpack.c.bf16 %v4745_v13, %v4738_v7 }
 0x486   : > { %7912 = vmatprep.subr.bf16.mxu1 %v7911_v50  ;;  %v4726_v40 = vsub.f32 %v4724_v29, %v4725_v57  ;;  %v4733_v46 = vsub.f32 %v4731_v47, %v4732_v23  ;;  %v7939_v38 = vpack.c.bf16 %v4732_v23, %v4725_v57 }
 0x487   : > { %v4740_v33 = vsub.f32 %v4738_v7, %v4739_v14  ;;  %v4747_v16 = vsub.f32 %v4745_v13, %v4746_v22  ;;  %v7943_v44 = vpack.c.bf16 %v4746_v22, %v4739_v14 }
 0x488   : > { %v4727_v58 = vand.u32 4294901760, %v4726_v40  ;;  %v4734_v32 = vand.u32 4294901760, %v4733_v46 }
 0x489   : > { %7914 = vmatpush3.bf16.msra.mxu1 %v7911_v50  ;;  %v4741_v37 = vand.u32 4294901760, %v4740_v33  ;;  %v4748_v6 = vand.u32 4294901760, %v4747_v16 }
 0x48a   : > { %v7915_v51 = vpack.c.bf16 %v4734_v32, %v4727_v58 }
 0x48b   : > { %v7919_v25 = vpack.c.bf16 %v4748_v6, %v4741_v37 }
 0x48c   : > { %7016 = vmatmul.mubr.f32.vlgmr.msra.gmra.mrb[4].mxu1 %v9514_v59  ;;  %7916 = vmatprep.subr.bf16.mxu1 %v7915_v51  ;;  %v10426_v59 = vld [vmem:[#allocation15_spill] sm:$0xff] }
 0x48d   : > { %7918 = vmatpush3.bf16.msra.mxu1 %v7915_v51  ;;  %7018 = vmatprep.mubr.f32.mxu1 %v9519_v55  ;;  %v10427_v55 = vld [vmem:[#allocation45_spill] sm:$0xff] }
 0x48e   : > { %7920 = vmatprep.subr.bf16.mxu1 %v7919_v25 }
 0x490   : > { %7019 = vmatmul.mubr.f32.gmra.mrb[6].mxu1 %v9529_v9  ;;  %v10428_v9 = vld [vmem:[#allocation47_spill] sm:$0xff] }
 0x491   : > { %7922 = vmatpush3.bf16.msra.mxu1 %v7919_v25  ;;  %7029 = vmatprep.mubr.f32.mxu1 %v9346_v41 }
 0x492   : > { %7924 = vmatprep.subr.bf16.mxu1 %v7923_v61 }
 0x494   : > { %7030 = vmatmul.mubr.f32.vlgmr.msra.gmra.mrb[4].mxu1 %v9451_v1 }
 0x495   : > { %7926 = vmatpush3.bf16.msra.mxu1 %v7923_v61  ;;  %7032 = vmatprep.mubr.f32.mxu1 %v9461_v30 }
 0x496   : > { %7928 = vmatprep.subr.bf16.mxu1 %v7927_v2 }
 0x498   : > { %7033 = vmatmul.mubr.f32.gmra.mrb[6].mxu1 %v9472_v3 }
 0x499   : > { %7930 = vmatpush3.bf16.msra.mxu1 %v7927_v2  ;;  %7043 = vmatprep.mubr.f32.mxu1 %v9365_v39  ;;  %v10429_v39 = vld [vmem:[#allocation48_spill] sm:$0xff] }
 0x49a   : > { %7932 = vmatprep.subr.bf16.mxu1 %v7907_v8 }
 0x49c   : > { %7044 = vmatmul.mubr.f32.vlgmr.msra.gmra.mrb[4].mxu1 %v9470_v56 }
 0x49d   : > { %7934 = vmatpush3.bf16.msra.mxu1 %v7907_v8  ;;  %7046 = vmatprep.mubr.f32.mxu1 %v9479_v36 }
 0x49e   : > { %7936 = vmatprep.subr.bf16.mxu1 %v7911_v50 }
 0x4a0   : > { %7047 = vmatmul.mubr.f32.gmra.mrb[6].mxu1 %v9489_v42 }
 0x4a1   : > { %7938 = vmatpush3.bf16.msra.mxu1 %v7911_v50  ;;  %7057 = vmatprep.mubr.f32.mxu1 %v10426_v59  ;;  %v10430_v59 = vld [vmem:[#allocation11_spill] sm:$0xff] }
 0x4a2   : > { %7940 = vmatprep.subr.bf16.mxu1 %v7939_v38 }
 0x4a4   : > { %7058 = vmatmul.mubr.f32.vlgmr.msra.gmra.mrb[4].mxu1 %v10427_v55 }
 0x4a5   : > { %7942 = vmatpush3.bf16.msra.mxu1 %v7939_v38  ;;  %7060 = vmatprep.mubr.f32.mxu1 %v10428_v9  ;;  %v10431_v9 = vld [vmem:[#allocation13_spill] sm:$0xff] }
 0x4a6   : > { %7944 = vmatprep.subr.bf16.mxu1 %v7943_v44 }
 0x4a8   : > { %7061 = vmatmul.mubr.f32.gmra.mrb[6].mxu1 %v10429_v39 }
 0x4a9   : > { %7946 = vmatpush3.bf16.msra.mxu1 %v7943_v44  ;;  %7071 = vmatprep.mubr.f32.mxu1 %v9346_v41 }
 0x4aa   : > { %7948 = vmatprep.subr.bf16.mxu1 %v7907_v8 }
 0x4ac   : > { %7072 = vmatmul.mubr.f32.vlgmr.msra.gmra.mrb[4].mxu1 %v9451_v1 }
 0x4ad   : > { %7950 = vmatpush3.bf16.msra.mxu1 %v7907_v8  ;;  %7074 = vmatprep.mubr.f32.mxu1 %v9461_v30 }
 0x4ae   : > { %7952 = vmatprep.subr.bf16.mxu1 %v7911_v50 }
 0x4b0   : > { %7075 = vmatmul.mubr.f32.gmra.mrb[6].mxu1 %v9472_v3 }
 0x4b1   : > { %7954 = vmatpush3.bf16.msra.mxu1 %v7911_v50  ;;  %7085 = vmatprep.mubr.f32.mxu1 %v9346_v41 }
 0x4b4   : > { %7086 = vmatmul.mubr.f32.vlgmr.msra.gmra.mrb[4].mxu1 %v9451_v1 }
 0x4b5   : > { %7088 = vmatprep.mubr.f32.mxu1 %v9461_v30 }
 0x4b8   : > { %7089 = vmatmul.mubr.f32.gmra.mrb[6].mxu1 %v9472_v3 }
 0x587   : > { %v7087_v56 = vpop.f32.mrb[4].mxu1 }
 0x588   : > { %v5228_v36 = vadd.f32 %v7087_v56, %v9872_v31  ;;  %v5205_v42 = vpop.f32.mrb[5].mxu1 }
 0x589   : > { %v5227_v5 = vadd.f32 %v5205_v42, %v9875_v35 }
 0x58b   : > { %v5231_v49 = vadd.f32 %v5228_v36, %v5227_v5  ;;  %v7090_v18 = vpop.f32.mrb[6].mxu1 }
 0x58c   : > { %v5217_v21 = vpop.f32.mrb[7].mxu1  ;;  %v5230_v19 = vadd.f32 %v7090_v18, %v9886_v52 }
 0x58d   : > { %v5229_v27 = vadd.f32 %v5217_v21, %v9883_v34 }
 0x58f   : > { %v5232_v41 = vadd.f32 %v5231_v49, %v5229_v27 }
 0x591   : > { %v5233_v62 = vadd.f32 %v5232_v41, %v5230_v19 }
 0x593   : > { %v5234_v1 = vrot.slane %v5233_v62, 4 }
 0x595   : > { %v5235_v20 = vadd.f32 %v5234_v1, %v5233_v62 }
 0x597   : > { %v5236_v30 = vrot.slane %v5235_v20, 2 }
 0x599   : > { %v5237_v10 = vadd.f32 %v5236_v30, %v5235_v20 }
 0x59b   : > { %v5238_v3 = vrot.slane %v5237_v10, 1 }
 0x59d   : > { %v5239_v60 = vadd.f32 %v5238_v3, %v5237_v10 }
 0x59f   : > { %v5240_v43 = vmul.f32 0.03125, %v5239_v60 }
 0x5a1   : > { %v5241_v31 = vsub.f32 %v5227_v5, %v5240_v43  ;;  %v5242_v11 = vsub.f32 %v5228_v36, %v5240_v43  ;;  %v5243_v4 = vsub.f32 %v5229_v27, %v5240_v43  ;;  %v5244_v35 = vsub.f32 %v5230_v19, %v5240_v43 }
 0x5a3   : > { %v5245_v8 = vmul.f32 %v5241_v31, %v5241_v31  ;;  %v5246_v29 = vmul.f32 %v5242_v11, %v5242_v11  ;;  %v5247_v47 = vmul.f32 %v5243_v4, %v5243_v4  ;;  %v5248_v34 = vmul.f32 %v5244_v35, %v5244_v35 }
 0x5a5   : > { %v5249_v50 = vadd.f32 %v5246_v29, %v5245_v8 }
 0x5a7   : > { %v5250_v7 = vadd.f32 %v5249_v50, %v5247_v47 }
 0x5a9   : > { %v5251_v52 = vadd.f32 %v5250_v7, %v5248_v34 }
 0x5ab   : > { %v5252_v13 = vrot.slane %v5251_v52, 4 }
 0x5ad   : > { %v5253_v57 = vadd.f32 %v5252_v13, %v5251_v52 }
 0x5af   : > { %v5254_v23 = vrot.slane %v5253_v57, 2 }
 0x5b1   : > { %v5255_v61 = vadd.f32 %v5254_v23, %v5253_v57 }
 0x5b3   : > { %v5256_v14 = vrot.slane %v5255_v61, 1 }
 0x5b5   : > { %v5257_v22 = vadd.f32 %v5256_v14, %v5255_v61 }
 0x5b7   : > { %v5258_v2 = vmul.f32 0.03125, %v5257_v22 }
 0x5b9   : > { %v5259_v40 = vadd.f32 1e-05, %v5258_v2 }
 0x5bb   : > { %8161 = vrsqrt.f32 %v5259_v40 }
 0x5c5   : > { %v8162_v46 = vpop.eup %8161 }
 0x5c6   : > { %v5261_v38 = vmul.f32 %v8162_v46, %v5241_v31  ;;  %v5262_v33 = vmul.f32 %v8162_v46, %v5242_v11  ;;  %v5263_v16 = vmul.f32 %v8162_v46, %v5243_v4  ;;  %v5264_v44 = vmul.f32 %v8162_v46, %v5244_v35 }
 0x5c8   : > { %v5265_v58 = vmul.f32 %v5261_v38, %v9896_v24  ;;  %v5266_v32 = vmul.f32 %v5262_v33, %v9917_v17  ;;  %v5267_v37 = vmul.f32 %v5263_v16, %v9900_v26  ;;  %v5268_v6 = vmul.f32 %v5264_v44, %v9915_v12 }
 0x5ca   : > { %v5269_v51 = vadd.f32 %v5265_v58, %v9907_v48  ;;  %v5270_v25 = vadd.f32 %v5266_v32, %v9927_v63  ;;  %v5271_v55 = vadd.f32 %v5267_v37, %v10430_v59  ;;  %v5272_v39 = vadd.f32 %v5268_v6, %v10431_v9 }
 0x5cc   : > { %vm5273_vm0 = vcmp.ge.f32.partialorder %v5269_v51, 0.0  ;;  %vm5274_vm1 = vcmp.ge.f32.partialorder %v5270_v25, 0.0  ;;  %vm5275_vm2 = vcmp.ge.f32.partialorder %v5271_v55, 0.0  ;;  %v5277_v56 = vmul.f32 0.01, %v5269_v51 }
 0x5cd   : > { %v5278_v36 = vmul.f32 0.01, %v5270_v25  ;;  %v5279_v24 = vmul.f32 0.01, %v5271_v55  ;;  %vm5276_vm3 = vcmp.ge.f32.partialorder %v5272_v39, 0.0 }
 0x5ce   : > { %v5280_v17 = vmul.f32 0.01, %v5272_v39  ;;  %v5281_v42 = vsel %vm5273_vm0, %v5269_v51, %v5277_v56 }
 0x5cf   : > { %v5282_v26 = vsel %vm5274_vm1, %v5270_v25, %v5278_v36  ;;  %v5283_v12 = vsel %vm5275_vm2, %v5271_v55, %v5279_v24  ;;  %v5285_v48 = vmul.f32 %v5281_v42, %v9929_v54 }
 0x5d0   : > { %v5286_v63 = vmul.f32 %v5282_v26, %v9947_v15  ;;  %v5284_v5 = vsel %vm5276_vm3, %v5272_v39, %v5280_v17  ;;  %v5287_v49 = vmul.f32 %v5283_v12, %v9945_v0 }
 0x5d1   : > { %v5288_v21 = vmul.f32 %v5284_v5, %v9955_v53 }
 0x5d2   : > { %v5289_v18 = vadd.f32 %v5286_v63, %v5285_v48 }
 0x5d4   : > { %v5290_v27 = vadd.f32 %v5289_v18, %v5287_v49 }
 0x5d6   : > { %v5291_v19 = vadd.f32 %v5290_v27, %v5288_v21 }
 0x5d8   : > { %v5292_v41 = vrot.slane %v5291_v19, 4 }
 0x5da   : > { %v5293_v62 = vadd.f32 %v5292_v41, %v5291_v19 }
 0x5dc   : > { %v5294_v1 = vrot.slane %v5293_v62, 2 }
 0x5de   : > { %v5295_v20 = vadd.f32 %v5294_v1, %v5293_v62 }
 0x5e0   : > { %v5296_v30 = vrot.slane %v5295_v20, 1 }
 0x5e2   : > { %v5297_v54 = vadd.f32 %v5296_v30, %v5295_v20 }
 0x5e4   : > { %v5298_v15 = vadd.f32 %v5297_v54, %v2882_v45 }
 0x5e6   : > { %5428 = vst.msk [vmem:[%s9983_s23 + $0x1] sm:$0x1] %vm9973_vm11, %v5298_v15 }
 0x5e7   : > { %8180 = shalt.err (!%p8177_p3)
}
 0x5e8   : > { %s8181_s18 = scalar_lea.hbm %s10070_s30, 32  ;;  %s8185_s15 = scalar_lea.hbm %s10124_s7, 64 }
 0x5e9   : > { %p8182_p4 = scmp.ne.s32.totalorder %s10070_s30, %s8181_s18  ;;  %p8186_p9 = scmp.lt.u32.totalorder %s10070_s30, %s10124_s7 }
 0x5ea   : > { %p8187_p10 = scmp.lt.u32.totalorder %s8185_s15, %s8181_s18  ;;  %p8189_p12 = scmp.lt.u32.totalorder %s8181_s18, %s10070_s30 }
 0x5eb   : > { %p8183_p7 = pnand %p8182_p4, %p8317_p5 }
 0x5ec   : > { %p8188_p11 = por %p8187_p10, %p8186_p9 }
 0x5ed   : > { %p8184_p8 = pneg %p8183_p7 }
 0x5ee   : > { %p8190_p13 = por %p8189_p12, %p8188_p11 }
 0x5f0   : > { %p8191_p0 = pnand %p8190_p13, %p8184_p8 }
 0x5f2   : > { %8194 = shalt.err (!%p8191_p0)
}
 0x5f3   : > { %8091 = dma.vmem_to_hbm [thread:$0]  (%p8317_p5), %s10072_s24, 32, %s10070_s30, %s5302_s9  }
 0x5f4 PF: > { %p8097_p1 = scmp.ge.s32.totalorder %s8229_s29, 2  ;;  %s5328_s23 = sand.u32 1, %s8217_s26  }
 0x5f5   : > { %s5329_s25 = scalar_lea.sflag [#allocation4], %s5328_s23 }
 0x5f6   : > { %p8094_p2 = pnand %p8097_p1, %p8321_p6 }
 0x5f8   : > { %8212 = dma.done.wait (!%p8094_p2), %s5329_s25, 32  }
 0x5f9   : > { %8214 = vsyncadd (!%p8094_p2), %s5329_s25, 4294967264  ;;  %p18_p3 = scmp.ge.s32.totalorder %s8305_s8, 4   ;;  %s10432_s26 = smov %s8221_s27 }
 0x5fa   : > { %s10433_s27 = smov %s8225_s28  ;;  %s10434_s28 = smov %s8315_s11 }
 0x5fb   : > { %s10435_s29 = smov %s8305_s8  ;;  %20 = sbr.rel (!%p18_p3) target bundleno = 5 (0x5), region = 89 }
 0x602   :  { %5334 = vsyncpa [#allocation4], 1 }
 0x603   :  { %5336 = vsyncpa [#allocation4 + $0x1], 1 }

</bundles_post_ra>
